<compile_context>
chip_gen: v5e
topology: v5e:2x2
jax: 0.10.0
libtpu: 0.0.40
codegen_flags: <defaults>
</compile_context>

<pallas_src>
import math
import functools

import jax
import jax.numpy as jnp
from jax.experimental import pallas as pl
from jax.experimental.pallas import tpu as pltpu

LN_EPS = 1e-5
NEG_INF = -1e9


def _layer_norm(v, gamma, beta):
    # v: (Tq, D) f32; gamma/beta: (1, D) f32
    mean = jnp.mean(v, axis=-1, keepdims=True)
    var = jnp.mean(jnp.square(v - mean), axis=-1, keepdims=True)
    return (v - mean) * jax.lax.rsqrt(var + LN_EPS) * gamma + beta


def _attention(q_in_bf, k_sc, v_sc, bias, wq_ref, bq_ref, wo_ref, bo_ref, comb_sc,
               *, num_heads, d_k):
    """Multi-head attention for one query-row tile.

    q_in_bf : (tq, D) bf16 activations.
    k_sc/v_sc : (H, Skv, d_k) bf16 VMEM scratch holding cached K/V projections.
    bias : (tq, Skv) f32 additive mask bias.
    comb_sc : (tq, D) bf16 VMEM scratch used to assemble the head-combined context.
    1/sqrt(d_k) is already folded into wq/bq by the wrapper.
    """
    # Full-contraction Q projection: one (tq, D) x (D, D) MXU matmul, f32 accumulation.
    Qb = (jnp.dot(q_in_bf, wq_ref[...], preferred_element_type=jnp.float32)
          + bq_ref[...]).astype(jnp.bfloat16)

    # Static unroll over heads.  K/V stay in VMEM scratch (leading-dim indexing, no lane
    # relayout per head); only the small (tq, D) Q is lane-sliced per head.
    for h in range(num_heads):
        lo = h * d_k
        qh = Qb[:, lo:lo + d_k]                                        # (tq, d_k)
        # Qh @ Kh^T via rhs-transposed dot_general (no explicit transpose).
        s = jax.lax.dot_general(qh, k_sc[h], (((1,), (1,)), ((), ())),
                                preferred_element_type=jnp.float32)    # (tq, Skv)
        s = s + bias
        s = s - jnp.max(s, axis=-1, keepdims=True)
        e = jnp.exp(s)
        inv = pl.reciprocal(jnp.sum(e, axis=-1, keepdims=True), approx=True)  # EUP slot
        ctx = jnp.dot((e * inv).astype(jnp.bfloat16), v_sc[h],
                      preferred_element_type=jnp.float32)               # (tq, d_k)
        # Head combine: column write into scratch (no concatenate, no per-head Wo matmul).
        comb_sc[:, lo:lo + d_k] = ctx.astype(jnp.bfloat16)

    # Single full-contraction (K = D) output projection.
    return (jnp.dot(comb_sc[...], wo_ref[...], preferred_element_type=jnp.float32)
            + bo_ref[...])


def decoder_layer_kernel(
        x_ref, enc_ref, tgt_mask_ref, src_mask_ref,
        sa_wq_ref, sa_bq_ref, sa_wk_ref, sa_bk_ref, sa_wv_ref, sa_bv_ref, sa_wo_ref, sa_bo_ref,
        ca_wq_ref, ca_bq_ref, ca_wk_ref, ca_bk_ref, ca_wv_ref, ca_bv_ref, ca_wo_ref, ca_bo_ref,
        ff_w1_ref, ff_b1_ref, ff_w2_ref, ff_b2_ref,
        ln_g_ref, ln_b_ref,
        o_ref,
        sa_k_sc, sa_v_sc, ca_k_sc, ca_v_sc, comb_sc,
        *, num_heads, d_k, q_tile):
    qi = pl.program_id(1)

    # ---- K/V projection cache: computed once per batch element (qi == 0) into persistent
    #      head-major bf16 VMEM scratch, reused by every query tile (qi axis "arbitrary").
    #      Per-head (D x d_k) weight slabs keep the contraction at full depth (K = D) and
    #      write each head's slab directly (no (S, 2D) f32 intermediate, no lane slicing).
    @pl.when(qi == 0)
    def _():
        x_kv = x_ref[0]      # (S, D)      bf16
        enc = enc_ref[0]     # (S_enc, D)  bf16
        for h in range(num_heads):
            sa_k_sc[h] = (jnp.dot(x_kv, sa_wk_ref[h], preferred_element_type=jnp.float32)
                          + sa_bk_ref[h]).astype(jnp.bfloat16)
            sa_v_sc[h] = (jnp.dot(x_kv, sa_wv_ref[h], preferred_element_type=jnp.float32)
                          + sa_bv_ref[h]).astype(jnp.bfloat16)
            ca_k_sc[h] = (jnp.dot(enc, ca_wk_ref[h], preferred_element_type=jnp.float32)
                          + ca_bk_ref[h]).astype(jnp.bfloat16)
            ca_v_sc[h] = (jnp.dot(enc, ca_wv_ref[h], preferred_element_type=jnp.float32)
                          + ca_bv_ref[h]).astype(jnp.bfloat16)

    # ---- query-row tile sliced from the already-resident full-sequence block
    #      (no duplicate x input / no redundant DMA).
    row0 = pl.multiple_of(qi * q_tile, q_tile)
    x_q = x_ref[0, pl.ds(row0, q_tile), :]                      # (tq, D) bf16

    # masks (int8 on the wire) -> additive f32 biases, computed once per grid step
    tgt_bias = jnp.where(tgt_mask_ref[...].astype(jnp.float32) == 0.0,
                         NEG_INF, 0.0).astype(jnp.float32)
    src_bias = jnp.where(src_mask_ref[...].astype(jnp.float32) == 0.0,
                         NEG_INF, 0.0).astype(jnp.float32)

    # --- self-attention + residual + norm1 (dropout == identity, eval mode) ---
    attn = _attention(x_q, sa_k_sc, sa_v_sc, tgt_bias,
                      sa_wq_ref, sa_bq_ref, sa_wo_ref, sa_bo_ref, comb_sc,
                      num_heads=num_heads, d_k=d_k)
    x1 = _layer_norm(x_q.astype(jnp.float32) + attn, ln_g_ref[0], ln_b_ref[0])

    # --- cross-attention + residual + norm2 ---
    attn = _attention(x1.astype(jnp.bfloat16), ca_k_sc, ca_v_sc, src_bias,
                      ca_wq_ref, ca_bq_ref, ca_wo_ref, ca_bo_ref, comb_sc,
                      num_heads=num_heads, d_k=d_k)
    x2 = _layer_norm(x1 + attn, ln_g_ref[1], ln_b_ref[1])

    # --- position-wise feed-forward + residual + norm3 (hidden bounded to (tq, d_ff)) ---
    h = jnp.dot(x2.astype(jnp.bfloat16), ff_w1_ref[...],
                preferred_element_type=jnp.float32) + ff_b1_ref[...]
    h = jnp.maximum(h, 0.0)
    ff = jnp.dot(h.astype(jnp.bfloat16), ff_w2_ref[...],
                 preferred_element_type=jnp.float32) + ff_b2_ref[...]
    x3 = _layer_norm(x2 + ff, ln_g_ref[2], ln_b_ref[2])

    o_ref[0] = x3.astype(o_ref.dtype)


def _vmem_limit_bytes(frac=0.8):
    # ~80% of physical VMEM (v5e/v6e 128 MiB -> ~102 MiB, v7x 64 MiB -> ~51 MiB): leaves
    # headroom for pipeline buffers / spills instead of pinning the limit at capacity.
    try:
        return int(pltpu.get_tpu_info().vmem_capacity_bytes * frac)
    except Exception:
        return None


def decoder_layer(x, enc_output, src_mask, tgt_mask, params, *, num_heads, q_tile=256):
    B, S, D = x.shape
    S_enc = enc_output.shape[1]
    d_ff = params["ff_w1"].shape[1]
    d_k = D // num_heads
    tq = min(q_tile, S)
    assert S % tq == 0, "S must be divisible by the query tile"

    bf16, f32 = jnp.bfloat16, jnp.float32
    scale = 1.0 / math.sqrt(d_k)

    x_bf = x.astype(bf16)
    enc_bf = enc_output.astype(bf16)
    # int8 masks: 4x less HBM traffic than f32 (semantics: nonzero == keep).
    tgt_mask_i8 = (tgt_mask != 0).astype(jnp.int8)
    src_mask_i8 = (src_mask != 0).astype(jnp.int8)

    def w(name, s=1.0):          # bf16 MXU weight (optionally pre-scaled)
        return (params[name] * s).astype(bf16)

    def b(name, s=1.0):          # f32 row-vector bias (optionally pre-scaled)
        return (params[name] * s).reshape(1, -1).astype(f32)

    def w_head_major(name):      # (D, D) -> (H, D, d_k): per-head weight slabs
        return params[name].reshape(D, num_heads, d_k).transpose(1, 0, 2).astype(bf16)

    def b_head_major(name):      # (D,) -> (H, 1, d_k)
        return params[name].reshape(num_heads, 1, d_k).astype(f32)

    ln_g = params["ln_g"].reshape(3, 1, D).astype(f32)
    ln_b = params["ln_b"].reshape(3, 1, D).astype(f32)

    kernel = functools.partial(decoder_layer_kernel,
                               num_heads=num_heads, d_k=d_k, q_tile=tq)

    def make_call(weight_buffering):
        def const_spec(shape):
            # Constant weights: index_map never changes across the grid.
            n = len(shape)
            idx = lambda bi, qi, _n=n: (0,) * _n
            if weight_buffering is None:
                return pl.BlockSpec(shape, idx)
            return pl.BlockSpec(shape, idx, pipeline_mode=weight_buffering)

        grid_spec = pltpu.PrefetchScalarGridSpec(
            num_scalar_prefetch=0,
            grid=(B, S // tq),
            in_specs=[
                pl.BlockSpec((1, S, D), lambda bi, qi: (bi, 0, 0)),      # x (full sequence)
                pl.BlockSpec((1, S_enc, D), lambda bi, qi: (bi, 0, 0)),  # enc_output (full)
                pl.BlockSpec((tq, S), lambda bi, qi: (qi, 0)),           # tgt_mask row tile (i8)
                pl.BlockSpec((tq, S_enc), lambda bi, qi: (qi, 0)),       # src_mask row tile (i8)
                const_spec((D, D)), const_spec((1, D)),                  # self Wq (scaled), bq
                const_spec((num_heads, D, d_k)), const_spec((num_heads, 1, d_k)),  # self Wk, bk
                const_spec((num_heads, D, d_k)), const_spec((num_heads, 1, d_k)),  # self Wv, bv
                const_spec((D, D)), const_spec((1, D)),                  # self Wo, bo
                const_spec((D, D)), const_spec((1, D)),                  # cross Wq (scaled), bq
                const_spec((num_heads, D, d_k)), const_spec((num_heads, 1, d_k)),  # cross Wk, bk
                const_spec((num_heads, D, d_k)), const_spec((num_heads, 1, d_k)),  # cross Wv, bv
                const_spec((D, D)), const_spec((1, D)),                  # cross Wo, bo
                const_spec((D, d_ff)), const_spec((1, d_ff)),            # fc1
                const_spec((d_ff, D)), const_spec((1, D)),               # fc2
                const_spec((3, 1, D)), const_spec((3, 1, D)),            # LN gamma/beta
            ],
            out_specs=pl.BlockSpec((1, tq, D), lambda bi, qi: (bi, qi, 0)),
            scratch_shapes=[
                pltpu.VMEM((num_heads, S, d_k), bf16),       # self-attn K cache (head-major)
                pltpu.VMEM((num_heads, S, d_k), bf16),       # self-attn V cache
                pltpu.VMEM((num_heads, S_enc, d_k), bf16),   # cross-attn K cache
                pltpu.VMEM((num_heads, S_enc, d_k), bf16),   # cross-attn V cache
                pltpu.VMEM((tq, D), bf16),                   # head-combine buffer
            ],
        )
        return pl.pallas_call(
            kernel,
            out_shape=jax.ShapeDtypeStruct((B, S, D), bf16),
            grid_spec=grid_spec,
            compiler_params=pltpu.CompilerParams(
                # batch axis parallel (megacore split on v7x); query-tile axis arbitrary
                # because the K/V caches written at qi == 0 are reused by later tiles.
                dimension_semantics=("parallel", "arbitrary"),
                vmem_limit_bytes=_vmem_limit_bytes()),
        )

    args = (x_bf, enc_bf, tgt_mask_i8, src_mask_i8,
            w("sa_wq", scale), b("sa_bq", scale),
            w_head_major("sa_wk"), b_head_major("sa_bk"),
            w_head_major("sa_wv"), b_head_major("sa_bv"),
            w("sa_wo"), b("sa_bo"),
            w("ca_wq", scale), b("ca_bq", scale),
            w_head_major("ca_wk"), b_head_major("ca_bk"),
            w_head_major("ca_wv"), b_head_major("ca_bv"),
            w("ca_wo"), b("ca_bo"),
            w("ff_w1"), b("ff_b1"), w("ff_w2"), b("ff_b2"),
            ln_g, ln_b)

    try:
        # Single-buffer the constant weights (halves their VMEM residency).
        return make_call(pl.Buffered(1))(*args)
    except Exception:
        # Fallback if this Mosaic build does not honor pipeline_mode on pallas_call
        # BlockSpecs: identical semantics, default double-buffered weights.
        return make_call(None)(*args)


# ---------------- pure-JAX f32 reference (the PyTorch spec) ----------------
def _ref_mha(q_in, kv_in, mask, wq, bq, wk, bk, wv, bv, wo, bo, num_heads, d_k):
    Q = q_in @ wq + bq
    K = kv_in @ wk + bk
    V = kv_in @ wv + bv
    B, Sq, D = Q.shape
    Skv = K.shape[1]
    Qh = Q.reshape(B, Sq, num_heads, d_k).transpose(0, 2, 1, 3)
    Kh = K.reshape(B, Skv, num_heads, d_k).transpose(0, 2, 1, 3)
    Vh = V.reshape(B, Skv, num_heads, d_k).transpose(0, 2, 1, 3)
    scores = jnp.einsum("bhqd,bhkd->bhqk", Qh, Kh) / math.sqrt(d_k)
    scores = jnp.where(mask[None, None] == 0, -1e9, scores)
    probs = jax.nn.softmax(scores, axis=-1)
    out = jnp.einsum("bhqk,bhkd->bhqd", probs, Vh)
    out = out.transpose(0, 2, 1, 3).reshape(B, Sq, D)
    return out @ wo + bo


def _ref_ln(v, g, b_):
    mean = v.mean(-1, keepdims=True)
    var = ((v - mean) ** 2).mean(-1, keepdims=True)
    return (v - mean) / jnp.sqrt(var + LN_EPS) * g + b_


def decoder_layer_ref(x, enc, src_mask, tgt_mask, p, *, num_heads):
    D = x.shape[-1]
    d_k = D // num_heads
    a = _ref_mha(x, x, tgt_mask, p["sa_wq"], p["sa_bq"], p["sa_wk"], p["sa_bk"],
                 p["sa_wv"], p["sa_bv"], p["sa_wo"], p["sa_bo"], num_heads, d_k)
    x = _ref_ln(x + a, p["ln_g"][0], p["ln_b"][0])
    a = _ref_mha(x, enc, src_mask, p["ca_wq"], p["ca_bq"], p["ca_wk"], p["ca_bk"],
                 p["ca_wv"], p["ca_bv"], p["ca_wo"], p["ca_bo"], num_heads, d_k)
    x = _ref_ln(x + a, p["ln_g"][1], p["ln_b"][1])
    h = jnp.maximum(x @ p["ff_w1"] + p["ff_b1"], 0.0)
    f = h @ p["ff_w2"] + p["ff_b2"]
    return _ref_ln(x + f, p["ln_g"][2], p["ln_b"][2])


if __name__ == "__main__":
    B, S, S_ENC = 2, 8, 8
    D_MODEL, NUM_HEADS, D_FF = 32, 4, 64

    key = jax.random.PRNGKey(0)
    names = ["sa_wq", "sa_wk", "sa_wv", "sa_wo", "sa_bq", "sa_bk", "sa_bv", "sa_bo",
             "ca_wq", "ca_wk", "ca_wv", "ca_wo", "ca_bq", "ca_bk", "ca_bv", "ca_bo",
             "ff_w1", "ff_b1", "ff_w2", "ff_b2", "x", "enc"]
    keys = dict(zip(names, jax.random.split(key, len(names))))

    def rnd(k, shape, scale=0.1):
        return jax.random.normal(k, shape, dtype=jnp.float32) * scale

    params = {
        "sa_wq": rnd(keys["sa_wq"], (D_MODEL, D_MODEL)),
        "sa_wk": rnd(keys["sa_wk"], (D_MODEL, D_MODEL)),
        "sa_wv": rnd(keys["sa_wv"], (D_MODEL, D_MODEL)),
        "sa_wo": rnd(keys["sa_wo"], (D_MODEL, D_MODEL)),
        "sa_bq": rnd(keys["sa_bq"], (D_MODEL,)),
        "sa_bk": rnd(keys["sa_bk"], (D_MODEL,)),
        "sa_bv": rnd(keys["sa_bv"], (D_MODEL,)),
        "sa_bo": rnd(keys["sa_bo"], (D_MODEL,)),
        "ca_wq": rnd(keys["ca_wq"], (D_MODEL, D_MODEL)),
        "ca_wk": rnd(keys["ca_wk"], (D_MODEL, D_MODEL)),
        "ca_wv": rnd(keys["ca_wv"], (D_MODEL, D_MODEL)),
        "ca_wo": rnd(keys["ca_wo"], (D_MODEL, D_MODEL)),
        "ca_bq": rnd(keys["ca_bq"], (D_MODEL,)),
        "ca_bk": rnd(keys["ca_bk"], (D_MODEL,)),
        "ca_bv": rnd(keys["ca_bv"], (D_MODEL,)),
        "ca_bo": rnd(keys["ca_bo"], (D_MODEL,)),
        "ff_w1": rnd(keys["ff_w1"], (D_MODEL, D_FF)),
        "ff_b1": rnd(keys["ff_b1"], (D_FF,)),
        "ff_w2": rnd(keys["ff_w2"], (D_FF, D_MODEL)),
        "ff_b2": rnd(keys["ff_b2"], (D_MODEL,)),
        "ln_g": jnp.ones((3, D_MODEL), jnp.float32),
        "ln_b": jnp.zeros((3, D_MODEL), jnp.float32),
    }

    x = rnd(keys["x"], (B, S, D_MODEL), scale=1.0)
    enc = rnd(keys["enc"], (B, S_ENC, D_MODEL), scale=1.0)
    tgt_mask = jnp.tril(jnp.ones((S, S), jnp.float32))   # causal
    src_mask = jnp.ones((S, S_ENC), jnp.float32)

    out = decoder_layer(x, enc, src_mask, tgt_mask, params, num_heads=NUM_HEADS)
    out = jax.block_until_ready(out)

    ref = decoder_layer_ref(x, enc, src_mask, tgt_mask, params, num_heads=NUM_HEADS)
    assert out.shape == (B, S, D_MODEL)
    # tolerance accounts for bf16 MXU inputs, bf16 output storage and approx reciprocal
    # vs the f32 reference
    err = float(jnp.max(jnp.abs(out.astype(jnp.float32) - ref)))
    assert err < 1e-1, f"mismatch vs reference (max abs err={err})"
    print("KERNEL_OK")
</pallas_src>

<mosaic_0001>
module attributes {stable_mosaic.version = 11 : i64} {
  func.func @decoder_layer_kernel(%arg0: i32, %arg1: i32, %arg2: memref<1x8x32xbf16, #tpu.memory_space<vmem>>, %arg3: memref<1x8x32xbf16, #tpu.memory_space<vmem>>, %arg4: memref<8x8xi8, #tpu.memory_space<vmem>>, %arg5: memref<8x8xi8, #tpu.memory_space<vmem>>, %arg6: memref<32x32xbf16, #tpu.memory_space<vmem>>, %arg7: memref<1x32xf32, #tpu.memory_space<vmem>>, %arg8: memref<4x32x8xbf16, #tpu.memory_space<vmem>>, %arg9: memref<4x1x8xf32, #tpu.memory_space<vmem>>, %arg10: memref<4x32x8xbf16, #tpu.memory_space<vmem>>, %arg11: memref<4x1x8xf32, #tpu.memory_space<vmem>>, %arg12: memref<32x32xbf16, #tpu.memory_space<vmem>>, %arg13: memref<1x32xf32, #tpu.memory_space<vmem>>, %arg14: memref<32x32xbf16, #tpu.memory_space<vmem>>, %arg15: memref<1x32xf32, #tpu.memory_space<vmem>>, %arg16: memref<4x32x8xbf16, #tpu.memory_space<vmem>>, %arg17: memref<4x1x8xf32, #tpu.memory_space<vmem>>, %arg18: memref<4x32x8xbf16, #tpu.memory_space<vmem>>, %arg19: memref<4x1x8xf32, #tpu.memory_space<vmem>>, %arg20: memref<32x32xbf16, #tpu.memory_space<vmem>>, %arg21: memref<1x32xf32, #tpu.memory_space<vmem>>, %arg22: memref<32x64xbf16, #tpu.memory_space<vmem>>, %arg23: memref<1x64xf32, #tpu.memory_space<vmem>>, %arg24: memref<64x32xbf16, #tpu.memory_space<vmem>>, %arg25: memref<1x32xf32, #tpu.memory_space<vmem>>, %arg26: memref<3x1x32xf32, #tpu.memory_space<vmem>>, %arg27: memref<3x1x32xf32, #tpu.memory_space<vmem>>, %arg28: memref<1x8x32xbf16, #tpu.memory_space<vmem>>, %arg29: memref<4x8x8xbf16, #tpu.memory_space<vmem>>, %arg30: memref<4x8x8xbf16, #tpu.memory_space<vmem>>, %arg31: memref<4x8x8xbf16, #tpu.memory_space<vmem>>, %arg32: memref<4x8x8xbf16, #tpu.memory_space<vmem>>, %arg33: memref<8x32xbf16, #tpu.memory_space<vmem>>) attributes {dimension_semantics = [#tpu.dimension_semantics<parallel>, #tpu.dimension_semantics<arbitrary>], iteration_bounds = array<i64: 2, 1>, scalar_prefetch = 0 : i64, scratch_operands = 5 : i64, tpu.core_type = #tpu.core_type<tc>, window_params = [{transform_indices = @transform_0, window_bounds = array<i64: 1, 8, 32>}, {transform_indices = @transform_1, window_bounds = array<i64: 1, 8, 32>}, {transform_indices = @transform_2, window_bounds = array<i64: 8, 8>}, {transform_indices = @transform_3, window_bounds = array<i64: 8, 8>}, {pipeline_mode = #tpu.pipeline_mode<synchronous>, transform_indices = @transform_4, window_bounds = array<i64: 32, 32>}, {pipeline_mode = #tpu.pipeline_mode<synchronous>, transform_indices = @transform_5, window_bounds = array<i64: 1, 32>}, {pipeline_mode = #tpu.pipeline_mode<synchronous>, transform_indices = @transform_6, window_bounds = array<i64: 4, 32, 8>}, {pipeline_mode = #tpu.pipeline_mode<synchronous>, transform_indices = @transform_7, window_bounds = array<i64: 4, 1, 8>}, {pipeline_mode = #tpu.pipeline_mode<synchronous>, transform_indices = @transform_8, window_bounds = array<i64: 4, 32, 8>}, {pipeline_mode = #tpu.pipeline_mode<synchronous>, transform_indices = @transform_9, window_bounds = array<i64: 4, 1, 8>}, {pipeline_mode = #tpu.pipeline_mode<synchronous>, transform_indices = @transform_10, window_bounds = array<i64: 32, 32>}, {pipeline_mode = #tpu.pipeline_mode<synchronous>, transform_indices = @transform_11, window_bounds = array<i64: 1, 32>}, {pipeline_mode = #tpu.pipeline_mode<synchronous>, transform_indices = @transform_12, window_bounds = array<i64: 32, 32>}, {pipeline_mode = #tpu.pipeline_mode<synchronous>, transform_indices = @transform_13, window_bounds = array<i64: 1, 32>}, {pipeline_mode = #tpu.pipeline_mode<synchronous>, transform_indices = @transform_14, window_bounds = array<i64: 4, 32, 8>}, {pipeline_mode = #tpu.pipeline_mode<synchronous>, transform_indices = @transform_15, window_bounds = array<i64: 4, 1, 8>}, {pipeline_mode = #tpu.pipeline_mode<synchronous>, transform_indices = @transform_16, window_bounds = array<i64: 4, 32, 8>}, {pipeline_mode = #tpu.pipeline_mode<synchronous>, transform_indices = @transform_17, window_bounds = array<i64: 4, 1, 8>}, {pipeline_mode = #tpu.pipeline_mode<synchronous>, transform_indices = @transform_18, window_bounds = array<i64: 32, 32>}, {pipeline_mode = #tpu.pipeline_mode<synchronous>, transform_indices = @transform_19, window_bounds = array<i64: 1, 32>}, {pipeline_mode = #tpu.pipeline_mode<synchronous>, transform_indices = @transform_20, window_bounds = array<i64: 32, 64>}, {pipeline_mode = #tpu.pipeline_mode<synchronous>, transform_indices = @transform_21, window_bounds = array<i64: 1, 64>}, {pipeline_mode = #tpu.pipeline_mode<synchronous>, transform_indices = @transform_22, window_bounds = array<i64: 64, 32>}, {pipeline_mode = #tpu.pipeline_mode<synchronous>, transform_indices = @transform_23, window_bounds = array<i64: 1, 32>}, {pipeline_mode = #tpu.pipeline_mode<synchronous>, transform_indices = @transform_24, window_bounds = array<i64: 3, 1, 32>}, {pipeline_mode = #tpu.pipeline_mode<synchronous>, transform_indices = @transform_25, window_bounds = array<i64: 3, 1, 32>}, {transform_indices = @transform_26, window_bounds = array<i64: 1, 8, 32>}]} {
    %c0_i32 = arith.constant 0 : i32
    %0 = arith.cmpi eq, %arg1, %c0_i32 : i32
    %1 = arith.extui %0 : i1 to i32
    %c0_i32_0 = arith.constant 0 : i32
    %2 = arith.cmpi ne, %1, %c0_i32_0 : i32
    scf.if %2 {
      %c0_172 = arith.constant 0 : index
      %c0_173 = arith.constant 0 : index
      %c0_174 = arith.constant 0 : index
      %315 = vector.load %arg2[%c0_172, %c0_173, %c0_174] : memref<1x8x32xbf16, #tpu.memory_space<vmem>>, vector<1x8x32xbf16>
      %316 = vector.shape_cast %315 : vector<1x8x32xbf16> to vector<8x32xbf16>
      %c0_175 = arith.constant 0 : index
      %c0_176 = arith.constant 0 : index
      %c0_177 = arith.constant 0 : index
      %317 = vector.load %arg3[%c0_175, %c0_176, %c0_177] : memref<1x8x32xbf16, #tpu.memory_space<vmem>>, vector<1x8x32xbf16>
      %318 = vector.shape_cast %317 : vector<1x8x32xbf16> to vector<8x32xbf16>
      %c0_178 = arith.constant 0 : index
      %c0_179 = arith.constant 0 : index
      %c0_180 = arith.constant 0 : index
      %319 = vector.load %arg8[%c0_178, %c0_179, %c0_180] : memref<4x32x8xbf16, #tpu.memory_space<vmem>>, vector<1x32x8xbf16>
      %320 = vector.shape_cast %319 : vector<1x32x8xbf16> to vector<32x8xbf16>
      %cst_181 = arith.constant dense<0.000000e+00> : vector<8x8xf32>
      %321 = tpu.matmul %316, %320, %cst_181 {dimension_numbers = #tpu.dot_dimension_numbers<[1], [0], [0], [1], [0, 0, 1, 1], [], []>} : vector<8x32xbf16>, vector<32x8xbf16>, vector<8x8xf32> -> vector<8x8xf32>
      %c0_182 = arith.constant 0 : index
      %c0_183 = arith.constant 0 : index
      %c0_184 = arith.constant 0 : index
      %322 = vector.load %arg9[%c0_182, %c0_183, %c0_184] : memref<4x1x8xf32, #tpu.memory_space<vmem>>, vector<1x1x8xf32>
      %323 = vector.shape_cast %322 : vector<1x1x8xf32> to vector<1x8xf32>
      %324 = vector.broadcast %323 : vector<1x8xf32> to vector<8x8xf32>
      %325 = arith.addf %321, %324 : vector<8x8xf32>
      %326 = arith.truncf %325 : vector<8x8xf32> to vector<8x8xbf16>
      %c0_185 = arith.constant 0 : index
      %c0_186 = arith.constant 0 : index
      %c0_187 = arith.constant 0 : index
      %327 = vector.load %arg29[%c0_185, %c0_186, %c0_187] : memref<4x8x8xbf16, #tpu.memory_space<vmem>>, vector<1x8x8xbf16>
      %328 = vector.shape_cast %327 : vector<1x8x8xbf16> to vector<8x8xbf16>
      %329 = vector.shape_cast %326 : vector<8x8xbf16> to vector<1x8x8xbf16>
      tpu.vector_store %arg29[%c0_185, %c0_186, %c0_187], %329 {strides = array<i32>} : memref<4x8x8xbf16, #tpu.memory_space<vmem>>, vector<1x8x8xbf16>,
      %c0_188 = arith.constant 0 : index
      %c0_189 = arith.constant 0 : index
      %c0_190 = arith.constant 0 : index
      %330 = vector.load %arg10[%c0_188, %c0_189, %c0_190] : memref<4x32x8xbf16, #tpu.memory_space<vmem>>, vector<1x32x8xbf16>
      %331 = vector.shape_cast %330 : vector<1x32x8xbf16> to vector<32x8xbf16>
      %cst_191 = arith.constant dense<0.000000e+00> : vector<8x8xf32>
      %332 = tpu.matmul %316, %331, %cst_191 {dimension_numbers = #tpu.dot_dimension_numbers<[1], [0], [0], [1], [0, 0, 1, 1], [], []>} : vector<8x32xbf16>, vector<32x8xbf16>, vector<8x8xf32> -> vector<8x8xf32>
      %c0_192 = arith.constant 0 : index
      %c0_193 = arith.constant 0 : index
      %c0_194 = arith.constant 0 : index
      %333 = vector.load %arg11[%c0_192, %c0_193, %c0_194] : memref<4x1x8xf32, #tpu.memory_space<vmem>>, vector<1x1x8xf32>
      %334 = vector.shape_cast %333 : vector<1x1x8xf32> to vector<1x8xf32>
      %335 = vector.broadcast %334 : vector<1x8xf32> to vector<8x8xf32>
      %336 = arith.addf %332, %335 : vector<8x8xf32>
      %337 = arith.truncf %336 : vector<8x8xf32> to vector<8x8xbf16>
      %c0_195 = arith.constant 0 : index
      %c0_196 = arith.constant 0 : index
      %c0_197 = arith.constant 0 : index
      %338 = vector.load %arg30[%c0_195, %c0_196, %c0_197] : memref<4x8x8xbf16, #tpu.memory_space<vmem>>, vector<1x8x8xbf16>
      %339 = vector.shape_cast %338 : vector<1x8x8xbf16> to vector<8x8xbf16>
      %340 = vector.shape_cast %337 : vector<8x8xbf16> to vector<1x8x8xbf16>
      tpu.vector_store %arg30[%c0_195, %c0_196, %c0_197], %340 {strides = array<i32>} : memref<4x8x8xbf16, #tpu.memory_space<vmem>>, vector<1x8x8xbf16>,
      %c0_198 = arith.constant 0 : index
      %c0_199 = arith.constant 0 : index
      %c0_200 = arith.constant 0 : index
      %341 = vector.load %arg16[%c0_198, %c0_199, %c0_200] : memref<4x32x8xbf16, #tpu.memory_space<vmem>>, vector<1x32x8xbf16>
      %342 = vector.shape_cast %341 : vector<1x32x8xbf16> to vector<32x8xbf16>
      %cst_201 = arith.constant dense<0.000000e+00> : vector<8x8xf32>
      %343 = tpu.matmul %318, %342, %cst_201 {dimension_numbers = #tpu.dot_dimension_numbers<[1], [0], [0], [1], [0, 0, 1, 1], [], []>} : vector<8x32xbf16>, vector<32x8xbf16>, vector<8x8xf32> -> vector<8x8xf32>
      %c0_202 = arith.constant 0 : index
      %c0_203 = arith.constant 0 : index
      %c0_204 = arith.constant 0 : index
      %344 = vector.load %arg17[%c0_202, %c0_203, %c0_204] : memref<4x1x8xf32, #tpu.memory_space<vmem>>, vector<1x1x8xf32>
      %345 = vector.shape_cast %344 : vector<1x1x8xf32> to vector<1x8xf32>
      %346 = vector.broadcast %345 : vector<1x8xf32> to vector<8x8xf32>
      %347 = arith.addf %343, %346 : vector<8x8xf32>
      %348 = arith.truncf %347 : vector<8x8xf32> to vector<8x8xbf16>
      %c0_205 = arith.constant 0 : index
      %c0_206 = arith.constant 0 : index
      %c0_207 = arith.constant 0 : index
      %349 = vector.load %arg31[%c0_205, %c0_206, %c0_207] : memref<4x8x8xbf16, #tpu.memory_space<vmem>>, vector<1x8x8xbf16>
      %350 = vector.shape_cast %349 : vector<1x8x8xbf16> to vector<8x8xbf16>
      %351 = vector.shape_cast %348 : vector<8x8xbf16> to vector<1x8x8xbf16>
      tpu.vector_store %arg31[%c0_205, %c0_206, %c0_207], %351 {strides = array<i32>} : memref<4x8x8xbf16, #tpu.memory_space<vmem>>, vector<1x8x8xbf16>,
      %c0_208 = arith.constant 0 : index
      %c0_209 = arith.constant 0 : index
      %c0_210 = arith.constant 0 : index
      %352 = vector.load %arg18[%c0_208, %c0_209, %c0_210] : memref<4x32x8xbf16, #tpu.memory_space<vmem>>, vector<1x32x8xbf16>
      %353 = vector.shape_cast %352 : vector<1x32x8xbf16> to vector<32x8xbf16>
      %cst_211 = arith.constant dense<0.000000e+00> : vector<8x8xf32>
      %354 = tpu.matmul %318, %353, %cst_211 {dimension_numbers = #tpu.dot_dimension_numbers<[1], [0], [0], [1], [0, 0, 1, 1], [], []>} : vector<8x32xbf16>, vector<32x8xbf16>, vector<8x8xf32> -> vector<8x8xf32>
      %c0_212 = arith.constant 0 : index
      %c0_213 = arith.constant 0 : index
      %c0_214 = arith.constant 0 : index
      %355 = vector.load %arg19[%c0_212, %c0_213, %c0_214] : memref<4x1x8xf32, #tpu.memory_space<vmem>>, vector<1x1x8xf32>
      %356 = vector.shape_cast %355 : vector<1x1x8xf32> to vector<1x8xf32>
      %357 = vector.broadcast %356 : vector<1x8xf32> to vector<8x8xf32>
      %358 = arith.addf %354, %357 : vector<8x8xf32>
      %359 = arith.truncf %358 : vector<8x8xf32> to vector<8x8xbf16>
      %c0_215 = arith.constant 0 : index
      %c0_216 = arith.constant 0 : index
      %c0_217 = arith.constant 0 : index
      %360 = vector.load %arg32[%c0_215, %c0_216, %c0_217] : memref<4x8x8xbf16, #tpu.memory_space<vmem>>, vector<1x8x8xbf16>
      %361 = vector.shape_cast %360 : vector<1x8x8xbf16> to vector<8x8xbf16>
      %362 = vector.shape_cast %359 : vector<8x8xbf16> to vector<1x8x8xbf16>
      tpu.vector_store %arg32[%c0_215, %c0_216, %c0_217], %362 {strides = array<i32>} : memref<4x8x8xbf16, #tpu.memory_space<vmem>>, vector<1x8x8xbf16>,
      %c1_218 = arith.constant 1 : index
      %c0_219 = arith.constant 0 : index
      %c0_220 = arith.constant 0 : index
      %363 = vector.load %arg8[%c1_218, %c0_219, %c0_220] : memref<4x32x8xbf16, #tpu.memory_space<vmem>>, vector<1x32x8xbf16>
      %364 = vector.shape_cast %363 : vector<1x32x8xbf16> to vector<32x8xbf16>
      %cst_221 = arith.constant dense<0.000000e+00> : vector<8x8xf32>
      %365 = tpu.matmul %316, %364, %cst_221 {dimension_numbers = #tpu.dot_dimension_numbers<[1], [0], [0], [1], [0, 0, 1, 1], [], []>} : vector<8x32xbf16>, vector<32x8xbf16>, vector<8x8xf32> -> vector<8x8xf32>
      %c1_222 = arith.constant 1 : index
      %c0_223 = arith.constant 0 : index
      %c0_224 = arith.constant 0 : index
      %366 = vector.load %arg9[%c1_222, %c0_223, %c0_224] : memref<4x1x8xf32, #tpu.memory_space<vmem>>, vector<1x1x8xf32>
      %367 = vector.shape_cast %366 : vector<1x1x8xf32> to vector<1x8xf32>
      %368 = vector.broadcast %367 : vector<1x8xf32> to vector<8x8xf32>
      %369 = arith.addf %365, %368 : vector<8x8xf32>
      %370 = arith.truncf %369 : vector<8x8xf32> to vector<8x8xbf16>
      %c1_225 = arith.constant 1 : index
      %c0_226 = arith.constant 0 : index
      %c0_227 = arith.constant 0 : index
      %371 = vector.load %arg29[%c1_225, %c0_226, %c0_227] : memref<4x8x8xbf16, #tpu.memory_space<vmem>>, vector<1x8x8xbf16>
      %372 = vector.shape_cast %371 : vector<1x8x8xbf16> to vector<8x8xbf16>
      %373 = vector.shape_cast %370 : vector<8x8xbf16> to vector<1x8x8xbf16>
      tpu.vector_store %arg29[%c1_225, %c0_226, %c0_227], %373 {strides = array<i32>} : memref<4x8x8xbf16, #tpu.memory_space<vmem>>, vector<1x8x8xbf16>,
      %c1_228 = arith.constant 1 : index
      %c0_229 = arith.constant 0 : index
      %c0_230 = arith.constant 0 : index
      %374 = vector.load %arg10[%c1_228, %c0_229, %c0_230] : memref<4x32x8xbf16, #tpu.memory_space<vmem>>, vector<1x32x8xbf16>
      %375 = vector.shape_cast %374 : vector<1x32x8xbf16> to vector<32x8xbf16>
      %cst_231 = arith.constant dense<0.000000e+00> : vector<8x8xf32>
      %376 = tpu.matmul %316, %375, %cst_231 {dimension_numbers = #tpu.dot_dimension_numbers<[1], [0], [0], [1], [0, 0, 1, 1], [], []>} : vector<8x32xbf16>, vector<32x8xbf16>, vector<8x8xf32> -> vector<8x8xf32>
      %c1_232 = arith.constant 1 : index
      %c0_233 = arith.constant 0 : index
      %c0_234 = arith.constant 0 : index
      %377 = vector.load %arg11[%c1_232, %c0_233, %c0_234] : memref<4x1x8xf32, #tpu.memory_space<vmem>>, vector<1x1x8xf32>
      %378 = vector.shape_cast %377 : vector<1x1x8xf32> to vector<1x8xf32>
      %379 = vector.broadcast %378 : vector<1x8xf32> to vector<8x8xf32>
      %380 = arith.addf %376, %379 : vector<8x8xf32>
      %381 = arith.truncf %380 : vector<8x8xf32> to vector<8x8xbf16>
      %c1_235 = arith.constant 1 : index
      %c0_236 = arith.constant 0 : index
      %c0_237 = arith.constant 0 : index
      %382 = vector.load %arg30[%c1_235, %c0_236, %c0_237] : memref<4x8x8xbf16, #tpu.memory_space<vmem>>, vector<1x8x8xbf16>
      %383 = vector.shape_cast %382 : vector<1x8x8xbf16> to vector<8x8xbf16>
      %384 = vector.shape_cast %381 : vector<8x8xbf16> to vector<1x8x8xbf16>
      tpu.vector_store %arg30[%c1_235, %c0_236, %c0_237], %384 {strides = array<i32>} : memref<4x8x8xbf16, #tpu.memory_space<vmem>>, vector<1x8x8xbf16>,
      %c1_238 = arith.constant 1 : index
      %c0_239 = arith.constant 0 : index
      %c0_240 = arith.constant 0 : index
      %385 = vector.load %arg16[%c1_238, %c0_239, %c0_240] : memref<4x32x8xbf16, #tpu.memory_space<vmem>>, vector<1x32x8xbf16>
      %386 = vector.shape_cast %385 : vector<1x32x8xbf16> to vector<32x8xbf16>
      %cst_241 = arith.constant dense<0.000000e+00> : vector<8x8xf32>
      %387 = tpu.matmul %318, %386, %cst_241 {dimension_numbers = #tpu.dot_dimension_numbers<[1], [0], [0], [1], [0, 0, 1, 1], [], []>} : vector<8x32xbf16>, vector<32x8xbf16>, vector<8x8xf32> -> vector<8x8xf32>
      %c1_242 = arith.constant 1 : index
      %c0_243 = arith.constant 0 : index
      %c0_244 = arith.constant 0 : index
      %388 = vector.load %arg17[%c1_242, %c0_243, %c0_244] : memref<4x1x8xf32, #tpu.memory_space<vmem>>, vector<1x1x8xf32>
      %389 = vector.shape_cast %388 : vector<1x1x8xf32> to vector<1x8xf32>
      %390 = vector.broadcast %389 : vector<1x8xf32> to vector<8x8xf32>
      %391 = arith.addf %387, %390 : vector<8x8xf32>
      %392 = arith.truncf %391 : vector<8x8xf32> to vector<8x8xbf16>
      %c1_245 = arith.constant 1 : index
      %c0_246 = arith.constant 0 : index
      %c0_247 = arith.constant 0 : index
      %393 = vector.load %arg31[%c1_245, %c0_246, %c0_247] : memref<4x8x8xbf16, #tpu.memory_space<vmem>>, vector<1x8x8xbf16>
      %394 = vector.shape_cast %393 : vector<1x8x8xbf16> to vector<8x8xbf16>
      %395 = vector.shape_cast %392 : vector<8x8xbf16> to vector<1x8x8xbf16>
      tpu.vector_store %arg31[%c1_245, %c0_246, %c0_247], %395 {strides = array<i32>} : memref<4x8x8xbf16, #tpu.memory_space<vmem>>, vector<1x8x8xbf16>,
      %c1_248 = arith.constant 1 : index
      %c0_249 = arith.constant 0 : index
      %c0_250 = arith.constant 0 : index
      %396 = vector.load %arg18[%c1_248, %c0_249, %c0_250] : memref<4x32x8xbf16, #tpu.memory_space<vmem>>, vector<1x32x8xbf16>
      %397 = vector.shape_cast %396 : vector<1x32x8xbf16> to vector<32x8xbf16>
      %cst_251 = arith.constant dense<0.000000e+00> : vector<8x8xf32>
      %398 = tpu.matmul %318, %397, %cst_251 {dimension_numbers = #tpu.dot_dimension_numbers<[1], [0], [0], [1], [0, 0, 1, 1], [], []>} : vector<8x32xbf16>, vector<32x8xbf16>, vector<8x8xf32> -> vector<8x8xf32>
      %c1_252 = arith.constant 1 : index
      %c0_253 = arith.constant 0 : index
      %c0_254 = arith.constant 0 : index
      %399 = vector.load %arg19[%c1_252, %c0_253, %c0_254] : memref<4x1x8xf32, #tpu.memory_space<vmem>>, vector<1x1x8xf32>
      %400 = vector.shape_cast %399 : vector<1x1x8xf32> to vector<1x8xf32>
      %401 = vector.broadcast %400 : vector<1x8xf32> to vector<8x8xf32>
      %402 = arith.addf %398, %401 : vector<8x8xf32>
      %403 = arith.truncf %402 : vector<8x8xf32> to vector<8x8xbf16>
      %c1_255 = arith.constant 1 : index
      %c0_256 = arith.constant 0 : index
      %c0_257 = arith.constant 0 : index
      %404 = vector.load %arg32[%c1_255, %c0_256, %c0_257] : memref<4x8x8xbf16, #tpu.memory_space<vmem>>, vector<1x8x8xbf16>
      %405 = vector.shape_cast %404 : vector<1x8x8xbf16> to vector<8x8xbf16>
      %406 = vector.shape_cast %403 : vector<8x8xbf16> to vector<1x8x8xbf16>
      tpu.vector_store %arg32[%c1_255, %c0_256, %c0_257], %406 {strides = array<i32>} : memref<4x8x8xbf16, #tpu.memory_space<vmem>>, vector<1x8x8xbf16>,
      %c2_258 = arith.constant 2 : index
      %c0_259 = arith.constant 0 : index
      %c0_260 = arith.constant 0 : index
      %407 = vector.load %arg8[%c2_258, %c0_259, %c0_260] : memref<4x32x8xbf16, #tpu.memory_space<vmem>>, vector<1x32x8xbf16>
      %408 = vector.shape_cast %407 : vector<1x32x8xbf16> to vector<32x8xbf16>
      %cst_261 = arith.constant dense<0.000000e+00> : vector<8x8xf32>
      %409 = tpu.matmul %316, %408, %cst_261 {dimension_numbers = #tpu.dot_dimension_numbers<[1], [0], [0], [1], [0, 0, 1, 1], [], []>} : vector<8x32xbf16>, vector<32x8xbf16>, vector<8x8xf32> -> vector<8x8xf32>
      %c2_262 = arith.constant 2 : index
      %c0_263 = arith.constant 0 : index
      %c0_264 = arith.constant 0 : index
      %410 = vector.load %arg9[%c2_262, %c0_263, %c0_264] : memref<4x1x8xf32, #tpu.memory_space<vmem>>, vector<1x1x8xf32>
      %411 = vector.shape_cast %410 : vector<1x1x8xf32> to vector<1x8xf32>
      %412 = vector.broadcast %411 : vector<1x8xf32> to vector<8x8xf32>
      %413 = arith.addf %409, %412 : vector<8x8xf32>
      %414 = arith.truncf %413 : vector<8x8xf32> to vector<8x8xbf16>
      %c2_265 = arith.constant 2 : index
      %c0_266 = arith.constant 0 : index
      %c0_267 = arith.constant 0 : index
      %415 = vector.load %arg29[%c2_265, %c0_266, %c0_267] : memref<4x8x8xbf16, #tpu.memory_space<vmem>>, vector<1x8x8xbf16>
      %416 = vector.shape_cast %415 : vector<1x8x8xbf16> to vector<8x8xbf16>
      %417 = vector.shape_cast %414 : vector<8x8xbf16> to vector<1x8x8xbf16>
      tpu.vector_store %arg29[%c2_265, %c0_266, %c0_267], %417 {strides = array<i32>} : memref<4x8x8xbf16, #tpu.memory_space<vmem>>, vector<1x8x8xbf16>,
      %c2_268 = arith.constant 2 : index
      %c0_269 = arith.constant 0 : index
      %c0_270 = arith.constant 0 : index
      %418 = vector.load %arg10[%c2_268, %c0_269, %c0_270] : memref<4x32x8xbf16, #tpu.memory_space<vmem>>, vector<1x32x8xbf16>
      %419 = vector.shape_cast %418 : vector<1x32x8xbf16> to vector<32x8xbf16>
      %cst_271 = arith.constant dense<0.000000e+00> : vector<8x8xf32>
      %420 = tpu.matmul %316, %419, %cst_271 {dimension_numbers = #tpu.dot_dimension_numbers<[1], [0], [0], [1], [0, 0, 1, 1], [], []>} : vector<8x32xbf16>, vector<32x8xbf16>, vector<8x8xf32> -> vector<8x8xf32>
      %c2_272 = arith.constant 2 : index
      %c0_273 = arith.constant 0 : index
      %c0_274 = arith.constant 0 : index
      %421 = vector.load %arg11[%c2_272, %c0_273, %c0_274] : memref<4x1x8xf32, #tpu.memory_space<vmem>>, vector<1x1x8xf32>
      %422 = vector.shape_cast %421 : vector<1x1x8xf32> to vector<1x8xf32>
      %423 = vector.broadcast %422 : vector<1x8xf32> to vector<8x8xf32>
      %424 = arith.addf %420, %423 : vector<8x8xf32>
      %425 = arith.truncf %424 : vector<8x8xf32> to vector<8x8xbf16>
      %c2_275 = arith.constant 2 : index
      %c0_276 = arith.constant 0 : index
      %c0_277 = arith.constant 0 : index
      %426 = vector.load %arg30[%c2_275, %c0_276, %c0_277] : memref<4x8x8xbf16, #tpu.memory_space<vmem>>, vector<1x8x8xbf16>
      %427 = vector.shape_cast %426 : vector<1x8x8xbf16> to vector<8x8xbf16>
      %428 = vector.shape_cast %425 : vector<8x8xbf16> to vector<1x8x8xbf16>
      tpu.vector_store %arg30[%c2_275, %c0_276, %c0_277], %428 {strides = array<i32>} : memref<4x8x8xbf16, #tpu.memory_space<vmem>>, vector<1x8x8xbf16>,
      %c2_278 = arith.constant 2 : index
      %c0_279 = arith.constant 0 : index
      %c0_280 = arith.constant 0 : index
      %429 = vector.load %arg16[%c2_278, %c0_279, %c0_280] : memref<4x32x8xbf16, #tpu.memory_space<vmem>>, vector<1x32x8xbf16>
      %430 = vector.shape_cast %429 : vector<1x32x8xbf16> to vector<32x8xbf16>
      %cst_281 = arith.constant dense<0.000000e+00> : vector<8x8xf32>
      %431 = tpu.matmul %318, %430, %cst_281 {dimension_numbers = #tpu.dot_dimension_numbers<[1], [0], [0], [1], [0, 0, 1, 1], [], []>} : vector<8x32xbf16>, vector<32x8xbf16>, vector<8x8xf32> -> vector<8x8xf32>
      %c2_282 = arith.constant 2 : index
      %c0_283 = arith.constant 0 : index
      %c0_284 = arith.constant 0 : index
      %432 = vector.load %arg17[%c2_282, %c0_283, %c0_284] : memref<4x1x8xf32, #tpu.memory_space<vmem>>, vector<1x1x8xf32>
      %433 = vector.shape_cast %432 : vector<1x1x8xf32> to vector<1x8xf32>
      %434 = vector.broadcast %433 : vector<1x8xf32> to vector<8x8xf32>
      %435 = arith.addf %431, %434 : vector<8x8xf32>
      %436 = arith.truncf %435 : vector<8x8xf32> to vector<8x8xbf16>
      %c2_285 = arith.constant 2 : index
      %c0_286 = arith.constant 0 : index
      %c0_287 = arith.constant 0 : index
      %437 = vector.load %arg31[%c2_285, %c0_286, %c0_287] : memref<4x8x8xbf16, #tpu.memory_space<vmem>>, vector<1x8x8xbf16>
      %438 = vector.shape_cast %437 : vector<1x8x8xbf16> to vector<8x8xbf16>
      %439 = vector.shape_cast %436 : vector<8x8xbf16> to vector<1x8x8xbf16>
      tpu.vector_store %arg31[%c2_285, %c0_286, %c0_287], %439 {strides = array<i32>} : memref<4x8x8xbf16, #tpu.memory_space<vmem>>, vector<1x8x8xbf16>,
      %c2_288 = arith.constant 2 : index
      %c0_289 = arith.constant 0 : index
      %c0_290 = arith.constant 0 : index
      %440 = vector.load %arg18[%c2_288, %c0_289, %c0_290] : memref<4x32x8xbf16, #tpu.memory_space<vmem>>, vector<1x32x8xbf16>
      %441 = vector.shape_cast %440 : vector<1x32x8xbf16> to vector<32x8xbf16>
      %cst_291 = arith.constant dense<0.000000e+00> : vector<8x8xf32>
      %442 = tpu.matmul %318, %441, %cst_291 {dimension_numbers = #tpu.dot_dimension_numbers<[1], [0], [0], [1], [0, 0, 1, 1], [], []>} : vector<8x32xbf16>, vector<32x8xbf16>, vector<8x8xf32> -> vector<8x8xf32>
      %c2_292 = arith.constant 2 : index
      %c0_293 = arith.constant 0 : index
      %c0_294 = arith.constant 0 : index
      %443 = vector.load %arg19[%c2_292, %c0_293, %c0_294] : memref<4x1x8xf32, #tpu.memory_space<vmem>>, vector<1x1x8xf32>
      %444 = vector.shape_cast %443 : vector<1x1x8xf32> to vector<1x8xf32>
      %445 = vector.broadcast %444 : vector<1x8xf32> to vector<8x8xf32>
      %446 = arith.addf %442, %445 : vector<8x8xf32>
      %447 = arith.truncf %446 : vector<8x8xf32> to vector<8x8xbf16>
      %c2_295 = arith.constant 2 : index
      %c0_296 = arith.constant 0 : index
      %c0_297 = arith.constant 0 : index
      %448 = vector.load %arg32[%c2_295, %c0_296, %c0_297] : memref<4x8x8xbf16, #tpu.memory_space<vmem>>, vector<1x8x8xbf16>
      %449 = vector.shape_cast %448 : vector<1x8x8xbf16> to vector<8x8xbf16>
      %450 = vector.shape_cast %447 : vector<8x8xbf16> to vector<1x8x8xbf16>
      tpu.vector_store %arg32[%c2_295, %c0_296, %c0_297], %450 {strides = array<i32>} : memref<4x8x8xbf16, #tpu.memory_space<vmem>>, vector<1x8x8xbf16>,
      %c3_298 = arith.constant 3 : index
      %c0_299 = arith.constant 0 : index
      %c0_300 = arith.constant 0 : index
      %451 = vector.load %arg8[%c3_298, %c0_299, %c0_300] : memref<4x32x8xbf16, #tpu.memory_space<vmem>>, vector<1x32x8xbf16>
      %452 = vector.shape_cast %451 : vector<1x32x8xbf16> to vector<32x8xbf16>
      %cst_301 = arith.constant dense<0.000000e+00> : vector<8x8xf32>
      %453 = tpu.matmul %316, %452, %cst_301 {dimension_numbers = #tpu.dot_dimension_numbers<[1], [0], [0], [1], [0, 0, 1, 1], [], []>} : vector<8x32xbf16>, vector<32x8xbf16>, vector<8x8xf32> -> vector<8x8xf32>
      %c3_302 = arith.constant 3 : index
      %c0_303 = arith.constant 0 : index
      %c0_304 = arith.constant 0 : index
      %454 = vector.load %arg9[%c3_302, %c0_303, %c0_304] : memref<4x1x8xf32, #tpu.memory_space<vmem>>, vector<1x1x8xf32>
      %455 = vector.shape_cast %454 : vector<1x1x8xf32> to vector<1x8xf32>
      %456 = vector.broadcast %455 : vector<1x8xf32> to vector<8x8xf32>
      %457 = arith.addf %453, %456 : vector<8x8xf32>
      %458 = arith.truncf %457 : vector<8x8xf32> to vector<8x8xbf16>
      %c3_305 = arith.constant 3 : index
      %c0_306 = arith.constant 0 : index
      %c0_307 = arith.constant 0 : index
      %459 = vector.load %arg29[%c3_305, %c0_306, %c0_307] : memref<4x8x8xbf16, #tpu.memory_space<vmem>>, vector<1x8x8xbf16>
      %460 = vector.shape_cast %459 : vector<1x8x8xbf16> to vector<8x8xbf16>
      %461 = vector.shape_cast %458 : vector<8x8xbf16> to vector<1x8x8xbf16>
      tpu.vector_store %arg29[%c3_305, %c0_306, %c0_307], %461 {strides = array<i32>} : memref<4x8x8xbf16, #tpu.memory_space<vmem>>, vector<1x8x8xbf16>,
      %c3_308 = arith.constant 3 : index
      %c0_309 = arith.constant 0 : index
      %c0_310 = arith.constant 0 : index
      %462 = vector.load %arg10[%c3_308, %c0_309, %c0_310] : memref<4x32x8xbf16, #tpu.memory_space<vmem>>, vector<1x32x8xbf16>
      %463 = vector.shape_cast %462 : vector<1x32x8xbf16> to vector<32x8xbf16>
      %cst_311 = arith.constant dense<0.000000e+00> : vector<8x8xf32>
      %464 = tpu.matmul %316, %463, %cst_311 {dimension_numbers = #tpu.dot_dimension_numbers<[1], [0], [0], [1], [0, 0, 1, 1], [], []>} : vector<8x32xbf16>, vector<32x8xbf16>, vector<8x8xf32> -> vector<8x8xf32>
      %c3_312 = arith.constant 3 : index
      %c0_313 = arith.constant 0 : index
      %c0_314 = arith.constant 0 : index
      %465 = vector.load %arg11[%c3_312, %c0_313, %c0_314] : memref<4x1x8xf32, #tpu.memory_space<vmem>>, vector<1x1x8xf32>
      %466 = vector.shape_cast %465 : vector<1x1x8xf32> to vector<1x8xf32>
      %467 = vector.broadcast %466 : vector<1x8xf32> to vector<8x8xf32>
      %468 = arith.addf %464, %467 : vector<8x8xf32>
      %469 = arith.truncf %468 : vector<8x8xf32> to vector<8x8xbf16>
      %c3_315 = arith.constant 3 : index
      %c0_316 = arith.constant 0 : index
      %c0_317 = arith.constant 0 : index
      %470 = vector.load %arg30[%c3_315, %c0_316, %c0_317] : memref<4x8x8xbf16, #tpu.memory_space<vmem>>, vector<1x8x8xbf16>
      %471 = vector.shape_cast %470 : vector<1x8x8xbf16> to vector<8x8xbf16>
      %472 = vector.shape_cast %469 : vector<8x8xbf16> to vector<1x8x8xbf16>
      tpu.vector_store %arg30[%c3_315, %c0_316, %c0_317], %472 {strides = array<i32>} : memref<4x8x8xbf16, #tpu.memory_space<vmem>>, vector<1x8x8xbf16>,
      %c3_318 = arith.constant 3 : index
      %c0_319 = arith.constant 0 : index
      %c0_320 = arith.constant 0 : index
      %473 = vector.load %arg16[%c3_318, %c0_319, %c0_320] : memref<4x32x8xbf16, #tpu.memory_space<vmem>>, vector<1x32x8xbf16>
      %474 = vector.shape_cast %473 : vector<1x32x8xbf16> to vector<32x8xbf16>
      %cst_321 = arith.constant dense<0.000000e+00> : vector<8x8xf32>
      %475 = tpu.matmul %318, %474, %cst_321 {dimension_numbers = #tpu.dot_dimension_numbers<[1], [0], [0], [1], [0, 0, 1, 1], [], []>} : vector<8x32xbf16>, vector<32x8xbf16>, vector<8x8xf32> -> vector<8x8xf32>
      %c3_322 = arith.constant 3 : index
      %c0_323 = arith.constant 0 : index
      %c0_324 = arith.constant 0 : index
      %476 = vector.load %arg17[%c3_322, %c0_323, %c0_324] : memref<4x1x8xf32, #tpu.memory_space<vmem>>, vector<1x1x8xf32>
      %477 = vector.shape_cast %476 : vector<1x1x8xf32> to vector<1x8xf32>
      %478 = vector.broadcast %477 : vector<1x8xf32> to vector<8x8xf32>
      %479 = arith.addf %475, %478 : vector<8x8xf32>
      %480 = arith.truncf %479 : vector<8x8xf32> to vector<8x8xbf16>
      %c3_325 = arith.constant 3 : index
      %c0_326 = arith.constant 0 : index
      %c0_327 = arith.constant 0 : index
      %481 = vector.load %arg31[%c3_325, %c0_326, %c0_327] : memref<4x8x8xbf16, #tpu.memory_space<vmem>>, vector<1x8x8xbf16>
      %482 = vector.shape_cast %481 : vector<1x8x8xbf16> to vector<8x8xbf16>
      %483 = vector.shape_cast %480 : vector<8x8xbf16> to vector<1x8x8xbf16>
      tpu.vector_store %arg31[%c3_325, %c0_326, %c0_327], %483 {strides = array<i32>} : memref<4x8x8xbf16, #tpu.memory_space<vmem>>, vector<1x8x8xbf16>,
      %c3_328 = arith.constant 3 : index
      %c0_329 = arith.constant 0 : index
      %c0_330 = arith.constant 0 : index
      %484 = vector.load %arg18[%c3_328, %c0_329, %c0_330] : memref<4x32x8xbf16, #tpu.memory_space<vmem>>, vector<1x32x8xbf16>
      %485 = vector.shape_cast %484 : vector<1x32x8xbf16> to vector<32x8xbf16>
      %cst_331 = arith.constant dense<0.000000e+00> : vector<8x8xf32>
      %486 = tpu.matmul %318, %485, %cst_331 {dimension_numbers = #tpu.dot_dimension_numbers<[1], [0], [0], [1], [0, 0, 1, 1], [], []>} : vector<8x32xbf16>, vector<32x8xbf16>, vector<8x8xf32> -> vector<8x8xf32>
      %c3_332 = arith.constant 3 : index
      %c0_333 = arith.constant 0 : index
      %c0_334 = arith.constant 0 : index
      %487 = vector.load %arg19[%c3_332, %c0_333, %c0_334] : memref<4x1x8xf32, #tpu.memory_space<vmem>>, vector<1x1x8xf32>
      %488 = vector.shape_cast %487 : vector<1x1x8xf32> to vector<1x8xf32>
      %489 = vector.broadcast %488 : vector<1x8xf32> to vector<8x8xf32>
      %490 = arith.addf %486, %489 : vector<8x8xf32>
      %491 = arith.truncf %490 : vector<8x8xf32> to vector<8x8xbf16>
      %c3_335 = arith.constant 3 : index
      %c0_336 = arith.constant 0 : index
      %c0_337 = arith.constant 0 : index
      %492 = vector.load %arg32[%c3_335, %c0_336, %c0_337] : memref<4x8x8xbf16, #tpu.memory_space<vmem>>, vector<1x8x8xbf16>
      %493 = vector.shape_cast %492 : vector<1x8x8xbf16> to vector<8x8xbf16>
      %494 = vector.shape_cast %491 : vector<8x8xbf16> to vector<1x8x8xbf16>
      tpu.vector_store %arg32[%c3_335, %c0_336, %c0_337], %494 {strides = array<i32>} : memref<4x8x8xbf16, #tpu.memory_space<vmem>>, vector<1x8x8xbf16>,
    } else {
    }
    %c8_i32 = arith.constant 8 : i32
    %3 = arith.muli %arg1, %c8_i32 : i32
    %4 = tpu.assume_multiple %3, 8 : i32
    %c0 = arith.constant 0 : index
    %5 = arith.index_cast %4 : i32 to index
    %c0_1 = arith.constant 0 : index
    %6 = vector.load %arg2[%c0, %5, %c0_1] : memref<1x8x32xbf16, #tpu.memory_space<vmem>>, vector<1x8x32xbf16>
    %7 = vector.shape_cast %6 : vector<1x8x32xbf16> to vector<8x32xbf16>
    %c0_2 = arith.constant 0 : index
    %c0_3 = arith.constant 0 : index
    %8 = vector.load %arg4[%c0_2, %c0_3] : memref<8x8xi8, #tpu.memory_space<vmem>>, vector<8x8xi8>
    %9 = arith.sitofp %8 : vector<8x8xi8> to vector<8x8xf32>
    %cst = arith.constant 0.000000e+00 : f32
    %10 = vector.broadcast %cst : f32 to vector<8x8xf32>
    %11 = arith.cmpf oeq, %9, %10 : vector<8x8xf32>
    %cst_4 = arith.constant -1.000000e+09 : f32
    %cst_5 = arith.constant 0.000000e+00 : f32
    %12 = vector.broadcast %cst_4 : f32 to vector<8x8xf32>
    %13 = vector.broadcast %cst_5 : f32 to vector<8x8xf32>
    %14 = arith.select %11, %12, %13 : vector<8x8xi1>, vector<8x8xf32>
    %c0_6 = arith.constant 0 : index
    %c0_7 = arith.constant 0 : index
    %15 = vector.load %arg5[%c0_6, %c0_7] : memref<8x8xi8, #tpu.memory_space<vmem>>, vector<8x8xi8>
    %16 = arith.sitofp %15 : vector<8x8xi8> to vector<8x8xf32>
    %cst_8 = arith.constant 0.000000e+00 : f32
    %17 = vector.broadcast %cst_8 : f32 to vector<8x8xf32>
    %18 = arith.cmpf oeq, %16, %17 : vector<8x8xf32>
    %cst_9 = arith.constant -1.000000e+09 : f32
    %cst_10 = arith.constant 0.000000e+00 : f32
    %19 = vector.broadcast %cst_9 : f32 to vector<8x8xf32>
    %20 = vector.broadcast %cst_10 : f32 to vector<8x8xf32>
    %21 = arith.select %18, %19, %20 : vector<8x8xi1>, vector<8x8xf32>
    %c0_11 = arith.constant 0 : index
    %c0_12 = arith.constant 0 : index
    %22 = vector.load %arg6[%c0_11, %c0_12] : memref<32x32xbf16, #tpu.memory_space<vmem>>, vector<32x32xbf16>
    %cst_13 = arith.constant dense<0.000000e+00> : vector<8x32xf32>
    %23 = tpu.matmul %7, %22, %cst_13 {dimension_numbers = #tpu.dot_dimension_numbers<[1], [0], [0], [1], [0, 0, 1, 1], [], []>} : vector<8x32xbf16>, vector<32x32xbf16>, vector<8x32xf32> -> vector<8x32xf32>
    %c0_14 = arith.constant 0 : index
    %c0_15 = arith.constant 0 : index
    %24 = vector.load %arg7[%c0_14, %c0_15] : memref<1x32xf32, #tpu.memory_space<vmem>>, vector<1x32xf32>
    %25 = vector.broadcast %24 : vector<1x32xf32> to vector<8x32xf32>
    %26 = arith.addf %23, %25 : vector<8x32xf32>
    %27 = arith.truncf %26 : vector<8x32xf32> to vector<8x32xbf16>
    %28 = vector.extract_strided_slice %27 {offsets = [0, 0], sizes = [8, 8], strides = [1, 1]} : vector<8x32xbf16> to vector<8x8xbf16>
    %c0_16 = arith.constant 0 : index
    %c0_17 = arith.constant 0 : index
    %c0_18 = arith.constant 0 : index
    %29 = vector.load %arg29[%c0_16, %c0_17, %c0_18] : memref<4x8x8xbf16, #tpu.memory_space<vmem>>, vector<1x8x8xbf16>
    %30 = vector.shape_cast %29 : vector<1x8x8xbf16> to vector<8x8xbf16>
    %cst_19 = arith.constant dense<0.000000e+00> : vector<8x8xf32>
    %31 = tpu.matmul %28, %30, %cst_19 {dimension_numbers = #tpu.dot_dimension_numbers<[1], [1], [0], [0], [0, 0, 1, 0], [], []>} : vector<8x8xbf16>, vector<8x8xbf16>, vector<8x8xf32> -> vector<8x8xf32>
    %32 = arith.addf %31, %14 : vector<8x8xf32>
    %cst_20 = arith.constant dense<0xFF800000> : vector<8xf32>
    %33 = vector.multi_reduction <maximumf>, %32, %cst_20 [1] : vector<8x8xf32> to vector<8xf32>
    %34 = vector.shape_cast %33 : vector<8xf32> to vector<8x1xf32>
    %35 = vector.broadcast %34 : vector<8x1xf32> to vector<8x8xf32>
    %36 = arith.subf %32, %35 : vector<8x8xf32>
    %37 = math.exp %36 : vector<8x8xf32>
    %cst_21 = arith.constant dense<0.000000e+00> : vector<8xf32>
    %38 = vector.multi_reduction <add>, %37, %cst_21 [1] : vector<8x8xf32> to vector<8xf32>
    %39 = vector.shape_cast %38 : vector<8xf32> to vector<8x1xf32>
    %40 = tpu.reciprocal %39 {approx = true} : vector<8x1xf32> -> vector<8x1xf32>
    %41 = vector.broadcast %40 : vector<8x1xf32> to vector<8x8xf32>
    %42 = arith.mulf %37, %41 : vector<8x8xf32>
    %43 = arith.truncf %42 : vector<8x8xf32> to vector<8x8xbf16>
    %c0_22 = arith.constant 0 : index
    %c0_23 = arith.constant 0 : index
    %c0_24 = arith.constant 0 : index
    %44 = vector.load %arg30[%c0_22, %c0_23, %c0_24] : memref<4x8x8xbf16, #tpu.memory_space<vmem>>, vector<1x8x8xbf16>
    %45 = vector.shape_cast %44 : vector<1x8x8xbf16> to vector<8x8xbf16>
    %cst_25 = arith.constant dense<0.000000e+00> : vector<8x8xf32>
    %46 = tpu.matmul %43, %45, %cst_25 {dimension_numbers = #tpu.dot_dimension_numbers<[1], [0], [0], [1], [0, 0, 1, 1], [], []>} : vector<8x8xbf16>, vector<8x8xbf16>, vector<8x8xf32> -> vector<8x8xf32>
    %47 = arith.truncf %46 : vector<8x8xf32> to vector<8x8xbf16>
    %c0_26 = arith.constant 0 : index
    %c0_27 = arith.constant 0 : index
    %48 = vector.load %arg33[%c0_26, %c0_27] : memref<8x32xbf16, #tpu.memory_space<vmem>>, vector<8x8xbf16>
    tpu.vector_store %arg33[%c0_26, %c0_27], %47 {strides = array<i32>} : memref<8x32xbf16, #tpu.memory_space<vmem>>, vector<8x8xbf16>,
    %49 = vector.extract_strided_slice %27 {offsets = [0, 8], sizes = [8, 8], strides = [1, 1]} : vector<8x32xbf16> to vector<8x8xbf16>
    %c1 = arith.constant 1 : index
    %c0_28 = arith.constant 0 : index
    %c0_29 = arith.constant 0 : index
    %50 = vector.load %arg29[%c1, %c0_28, %c0_29] : memref<4x8x8xbf16, #tpu.memory_space<vmem>>, vector<1x8x8xbf16>
    %51 = vector.shape_cast %50 : vector<1x8x8xbf16> to vector<8x8xbf16>
    %cst_30 = arith.constant dense<0.000000e+00> : vector<8x8xf32>
    %52 = tpu.matmul %49, %51, %cst_30 {dimension_numbers = #tpu.dot_dimension_numbers<[1], [1], [0], [0], [0, 0, 1, 0], [], []>} : vector<8x8xbf16>, vector<8x8xbf16>, vector<8x8xf32> -> vector<8x8xf32>
    %53 = arith.addf %52, %14 : vector<8x8xf32>
    %cst_31 = arith.constant dense<0xFF800000> : vector<8xf32>
    %54 = vector.multi_reduction <maximumf>, %53, %cst_31 [1] : vector<8x8xf32> to vector<8xf32>
    %55 = vector.shape_cast %54 : vector<8xf32> to vector<8x1xf32>
    %56 = vector.broadcast %55 : vector<8x1xf32> to vector<8x8xf32>
    %57 = arith.subf %53, %56 : vector<8x8xf32>
    %58 = math.exp %57 : vector<8x8xf32>
    %cst_32 = arith.constant dense<0.000000e+00> : vector<8xf32>
    %59 = vector.multi_reduction <add>, %58, %cst_32 [1] : vector<8x8xf32> to vector<8xf32>
    %60 = vector.shape_cast %59 : vector<8xf32> to vector<8x1xf32>
    %61 = tpu.reciprocal %60 {approx = true} : vector<8x1xf32> -> vector<8x1xf32>
    %62 = vector.broadcast %61 : vector<8x1xf32> to vector<8x8xf32>
    %63 = arith.mulf %58, %62 : vector<8x8xf32>
    %64 = arith.truncf %63 : vector<8x8xf32> to vector<8x8xbf16>
    %c1_33 = arith.constant 1 : index
    %c0_34 = arith.constant 0 : index
    %c0_35 = arith.constant 0 : index
    %65 = vector.load %arg30[%c1_33, %c0_34, %c0_35] : memref<4x8x8xbf16, #tpu.memory_space<vmem>>, vector<1x8x8xbf16>
    %66 = vector.shape_cast %65 : vector<1x8x8xbf16> to vector<8x8xbf16>
    %cst_36 = arith.constant dense<0.000000e+00> : vector<8x8xf32>
    %67 = tpu.matmul %64, %66, %cst_36 {dimension_numbers = #tpu.dot_dimension_numbers<[1], [0], [0], [1], [0, 0, 1, 1], [], []>} : vector<8x8xbf16>, vector<8x8xbf16>, vector<8x8xf32> -> vector<8x8xf32>
    %68 = arith.truncf %67 : vector<8x8xf32> to vector<8x8xbf16>
    %c0_37 = arith.constant 0 : index
    %c8 = arith.constant 8 : index
    %69 = vector.load %arg33[%c0_37, %c8] : memref<8x32xbf16, #tpu.memory_space<vmem>>, vector<8x8xbf16>
    tpu.vector_store %arg33[%c0_37, %c8], %68 {strides = array<i32>} : memref<8x32xbf16, #tpu.memory_space<vmem>>, vector<8x8xbf16>,
    %70 = vector.extract_strided_slice %27 {offsets = [0, 16], sizes = [8, 8], strides = [1, 1]} : vector<8x32xbf16> to vector<8x8xbf16>
    %c2 = arith.constant 2 : index
    %c0_38 = arith.constant 0 : index
    %c0_39 = arith.constant 0 : index
    %71 = vector.load %arg29[%c2, %c0_38, %c0_39] : memref<4x8x8xbf16, #tpu.memory_space<vmem>>, vector<1x8x8xbf16>
    %72 = vector.shape_cast %71 : vector<1x8x8xbf16> to vector<8x8xbf16>
    %cst_40 = arith.constant dense<0.000000e+00> : vector<8x8xf32>
    %73 = tpu.matmul %70, %72, %cst_40 {dimension_numbers = #tpu.dot_dimension_numbers<[1], [1], [0], [0], [0, 0, 1, 0], [], []>} : vector<8x8xbf16>, vector<8x8xbf16>, vector<8x8xf32> -> vector<8x8xf32>
    %74 = arith.addf %73, %14 : vector<8x8xf32>
    %cst_41 = arith.constant dense<0xFF800000> : vector<8xf32>
    %75 = vector.multi_reduction <maximumf>, %74, %cst_41 [1] : vector<8x8xf32> to vector<8xf32>
    %76 = vector.shape_cast %75 : vector<8xf32> to vector<8x1xf32>
    %77 = vector.broadcast %76 : vector<8x1xf32> to vector<8x8xf32>
    %78 = arith.subf %74, %77 : vector<8x8xf32>
    %79 = math.exp %78 : vector<8x8xf32>
    %cst_42 = arith.constant dense<0.000000e+00> : vector<8xf32>
    %80 = vector.multi_reduction <add>, %79, %cst_42 [1] : vector<8x8xf32> to vector<8xf32>
    %81 = vector.shape_cast %80 : vector<8xf32> to vector<8x1xf32>
    %82 = tpu.reciprocal %81 {approx = true} : vector<8x1xf32> -> vector<8x1xf32>
    %83 = vector.broadcast %82 : vector<8x1xf32> to vector<8x8xf32>
    %84 = arith.mulf %79, %83 : vector<8x8xf32>
    %85 = arith.truncf %84 : vector<8x8xf32> to vector<8x8xbf16>
    %c2_43 = arith.constant 2 : index
    %c0_44 = arith.constant 0 : index
    %c0_45 = arith.constant 0 : index
    %86 = vector.load %arg30[%c2_43, %c0_44, %c0_45] : memref<4x8x8xbf16, #tpu.memory_space<vmem>>, vector<1x8x8xbf16>
    %87 = vector.shape_cast %86 : vector<1x8x8xbf16> to vector<8x8xbf16>
    %cst_46 = arith.constant dense<0.000000e+00> : vector<8x8xf32>
    %88 = tpu.matmul %85, %87, %cst_46 {dimension_numbers = #tpu.dot_dimension_numbers<[1], [0], [0], [1], [0, 0, 1, 1], [], []>} : vector<8x8xbf16>, vector<8x8xbf16>, vector<8x8xf32> -> vector<8x8xf32>
    %89 = arith.truncf %88 : vector<8x8xf32> to vector<8x8xbf16>
    %c0_47 = arith.constant 0 : index
    %c16 = arith.constant 16 : index
    %90 = vector.load %arg33[%c0_47, %c16] : memref<8x32xbf16, #tpu.memory_space<vmem>>, vector<8x8xbf16>
    tpu.vector_store %arg33[%c0_47, %c16], %89 {strides = array<i32>} : memref<8x32xbf16, #tpu.memory_space<vmem>>, vector<8x8xbf16>,
    %91 = vector.extract_strided_slice %27 {offsets = [0, 24], sizes = [8, 8], strides = [1, 1]} : vector<8x32xbf16> to vector<8x8xbf16>
    %c3 = arith.constant 3 : index
    %c0_48 = arith.constant 0 : index
    %c0_49 = arith.constant 0 : index
    %92 = vector.load %arg29[%c3, %c0_48, %c0_49] : memref<4x8x8xbf16, #tpu.memory_space<vmem>>, vector<1x8x8xbf16>
    %93 = vector.shape_cast %92 : vector<1x8x8xbf16> to vector<8x8xbf16>
    %cst_50 = arith.constant dense<0.000000e+00> : vector<8x8xf32>
    %94 = tpu.matmul %91, %93, %cst_50 {dimension_numbers = #tpu.dot_dimension_numbers<[1], [1], [0], [0], [0, 0, 1, 0], [], []>} : vector<8x8xbf16>, vector<8x8xbf16>, vector<8x8xf32> -> vector<8x8xf32>
    %95 = arith.addf %94, %14 : vector<8x8xf32>
    %cst_51 = arith.constant dense<0xFF800000> : vector<8xf32>
    %96 = vector.multi_reduction <maximumf>, %95, %cst_51 [1] : vector<8x8xf32> to vector<8xf32>
    %97 = vector.shape_cast %96 : vector<8xf32> to vector<8x1xf32>
    %98 = vector.broadcast %97 : vector<8x1xf32> to vector<8x8xf32>
    %99 = arith.subf %95, %98 : vector<8x8xf32>
    %100 = math.exp %99 : vector<8x8xf32>
    %cst_52 = arith.constant dense<0.000000e+00> : vector<8xf32>
    %101 = vector.multi_reduction <add>, %100, %cst_52 [1] : vector<8x8xf32> to vector<8xf32>
    %102 = vector.shape_cast %101 : vector<8xf32> to vector<8x1xf32>
    %103 = tpu.reciprocal %102 {approx = true} : vector<8x1xf32> -> vector<8x1xf32>
    %104 = vector.broadcast %103 : vector<8x1xf32> to vector<8x8xf32>
    %105 = arith.mulf %100, %104 : vector<8x8xf32>
    %106 = arith.truncf %105 : vector<8x8xf32> to vector<8x8xbf16>
    %c3_53 = arith.constant 3 : index
    %c0_54 = arith.constant 0 : index
    %c0_55 = arith.constant 0 : index
    %107 = vector.load %arg30[%c3_53, %c0_54, %c0_55] : memref<4x8x8xbf16, #tpu.memory_space<vmem>>, vector<1x8x8xbf16>
    %108 = vector.shape_cast %107 : vector<1x8x8xbf16> to vector<8x8xbf16>
    %cst_56 = arith.constant dense<0.000000e+00> : vector<8x8xf32>
    %109 = tpu.matmul %106, %108, %cst_56 {dimension_numbers = #tpu.dot_dimension_numbers<[1], [0], [0], [1], [0, 0, 1, 1], [], []>} : vector<8x8xbf16>, vector<8x8xbf16>, vector<8x8xf32> -> vector<8x8xf32>
    %110 = arith.truncf %109 : vector<8x8xf32> to vector<8x8xbf16>
    %c0_57 = arith.constant 0 : index
    %c24 = arith.constant 24 : index
    %111 = vector.load %arg33[%c0_57, %c24] : memref<8x32xbf16, #tpu.memory_space<vmem>>, vector<8x8xbf16>
    tpu.vector_store %arg33[%c0_57, %c24], %110 {strides = array<i32>} : memref<8x32xbf16, #tpu.memory_space<vmem>>, vector<8x8xbf16>,
    %c0_58 = arith.constant 0 : index
    %c0_59 = arith.constant 0 : index
    %112 = vector.load %arg33[%c0_58, %c0_59] : memref<8x32xbf16, #tpu.memory_space<vmem>>, vector<8x32xbf16>
    %c0_60 = arith.constant 0 : index
    %c0_61 = arith.constant 0 : index
    %113 = vector.load %arg12[%c0_60, %c0_61] : memref<32x32xbf16, #tpu.memory_space<vmem>>, vector<32x32xbf16>
    %cst_62 = arith.constant dense<0.000000e+00> : vector<8x32xf32>
    %114 = tpu.matmul %112, %113, %cst_62 {dimension_numbers = #tpu.dot_dimension_numbers<[1], [0], [0], [1], [0, 0, 1, 1], [], []>} : vector<8x32xbf16>, vector<32x32xbf16>, vector<8x32xf32> -> vector<8x32xf32>
    %c0_63 = arith.constant 0 : index
    %c0_64 = arith.constant 0 : index
    %115 = vector.load %arg13[%c0_63, %c0_64] : memref<1x32xf32, #tpu.memory_space<vmem>>, vector<1x32xf32>
    %116 = vector.broadcast %115 : vector<1x32xf32> to vector<8x32xf32>
    %117 = arith.addf %114, %116 : vector<8x32xf32>
    %118 = arith.extf %7 : vector<8x32xbf16> to vector<8x32xf32>
    %119 = arith.addf %118, %117 : vector<8x32xf32>
    %c0_65 = arith.constant 0 : index
    %c0_66 = arith.constant 0 : index
    %c0_67 = arith.constant 0 : index
    %120 = vector.load %arg26[%c0_65, %c0_66, %c0_67] : memref<3x1x32xf32, #tpu.memory_space<vmem>>, vector<1x1x32xf32>
    %121 = vector.shape_cast %120 : vector<1x1x32xf32> to vector<1x32xf32>
    %c0_68 = arith.constant 0 : index
    %c0_69 = arith.constant 0 : index
    %c0_70 = arith.constant 0 : index
    %122 = vector.load %arg27[%c0_68, %c0_69, %c0_70] : memref<3x1x32xf32, #tpu.memory_space<vmem>>, vector<1x1x32xf32>
    %123 = vector.shape_cast %122 : vector<1x1x32xf32> to vector<1x32xf32>
    %cst_71 = arith.constant dense<0.000000e+00> : vector<8xf32>
    %124 = vector.multi_reduction <add>, %119, %cst_71 [1] : vector<8x32xf32> to vector<8xf32>
    %125 = vector.shape_cast %124 : vector<8xf32> to vector<8x1xf32>
    %cst_72 = arith.constant 3.200000e+01 : f32
    %126 = vector.broadcast %cst_72 : f32 to vector<8x1xf32>
    %127 = arith.divf %125, %126 : vector<8x1xf32>
    %128 = vector.broadcast %127 : vector<8x1xf32> to vector<8x32xf32>
    %129 = arith.subf %119, %128 : vector<8x32xf32>
    %130 = arith.mulf %129, %129 : vector<8x32xf32>
    %cst_73 = arith.constant dense<0.000000e+00> : vector<8xf32>
    %131 = vector.multi_reduction <add>, %130, %cst_73 [1] : vector<8x32xf32> to vector<8xf32>
    %132 = vector.shape_cast %131 : vector<8xf32> to vector<8x1xf32>
    %cst_74 = arith.constant 3.200000e+01 : f32
    %133 = vector.broadcast %cst_74 : f32 to vector<8x1xf32>
    %134 = arith.divf %132, %133 : vector<8x1xf32>
    %135 = vector.broadcast %127 : vector<8x1xf32> to vector<8x32xf32>
    %136 = arith.subf %119, %135 : vector<8x32xf32>
    %cst_75 = arith.constant 9.99999974E-6 : f32
    %137 = vector.broadcast %cst_75 : f32 to vector<8x1xf32>
    %138 = arith.addf %134, %137 : vector<8x1xf32>
    %139 = math.rsqrt %138 : vector<8x1xf32>
    %140 = vector.broadcast %139 : vector<8x1xf32> to vector<8x32xf32>
    %141 = arith.mulf %136, %140 : vector<8x32xf32>
    %142 = vector.broadcast %121 : vector<1x32xf32> to vector<8x32xf32>
    %143 = arith.mulf %141, %142 : vector<8x32xf32>
    %144 = vector.broadcast %123 : vector<1x32xf32> to vector<8x32xf32>
    %145 = arith.addf %143, %144 : vector<8x32xf32>
    %146 = arith.truncf %145 : vector<8x32xf32> to vector<8x32xbf16>
    %c0_76 = arith.constant 0 : index
    %c0_77 = arith.constant 0 : index
    %147 = vector.load %arg14[%c0_76, %c0_77] : memref<32x32xbf16, #tpu.memory_space<vmem>>, vector<32x32xbf16>
    %cst_78 = arith.constant dense<0.000000e+00> : vector<8x32xf32>
    %148 = tpu.matmul %146, %147, %cst_78 {dimension_numbers = #tpu.dot_dimension_numbers<[1], [0], [0], [1], [0, 0, 1, 1], [], []>} : vector<8x32xbf16>, vector<32x32xbf16>, vector<8x32xf32> -> vector<8x32xf32>
    %c0_79 = arith.constant 0 : index
    %c0_80 = arith.constant 0 : index
    %149 = vector.load %arg15[%c0_79, %c0_80] : memref<1x32xf32, #tpu.memory_space<vmem>>, vector<1x32xf32>
    %150 = vector.broadcast %149 : vector<1x32xf32> to vector<8x32xf32>
    %151 = arith.addf %148, %150 : vector<8x32xf32>
    %152 = arith.truncf %151 : vector<8x32xf32> to vector<8x32xbf16>
    %153 = vector.extract_strided_slice %152 {offsets = [0, 0], sizes = [8, 8], strides = [1, 1]} : vector<8x32xbf16> to vector<8x8xbf16>
    %c0_81 = arith.constant 0 : index
    %c0_82 = arith.constant 0 : index
    %c0_83 = arith.constant 0 : index
    %154 = vector.load %arg31[%c0_81, %c0_82, %c0_83] : memref<4x8x8xbf16, #tpu.memory_space<vmem>>, vector<1x8x8xbf16>
    %155 = vector.shape_cast %154 : vector<1x8x8xbf16> to vector<8x8xbf16>
    %cst_84 = arith.constant dense<0.000000e+00> : vector<8x8xf32>
    %156 = tpu.matmul %153, %155, %cst_84 {dimension_numbers = #tpu.dot_dimension_numbers<[1], [1], [0], [0], [0, 0, 1, 0], [], []>} : vector<8x8xbf16>, vector<8x8xbf16>, vector<8x8xf32> -> vector<8x8xf32>
    %157 = arith.addf %156, %21 : vector<8x8xf32>
    %cst_85 = arith.constant dense<0xFF800000> : vector<8xf32>
    %158 = vector.multi_reduction <maximumf>, %157, %cst_85 [1] : vector<8x8xf32> to vector<8xf32>
    %159 = vector.shape_cast %158 : vector<8xf32> to vector<8x1xf32>
    %160 = vector.broadcast %159 : vector<8x1xf32> to vector<8x8xf32>
    %161 = arith.subf %157, %160 : vector<8x8xf32>
    %162 = math.exp %161 : vector<8x8xf32>
    %cst_86 = arith.constant dense<0.000000e+00> : vector<8xf32>
    %163 = vector.multi_reduction <add>, %162, %cst_86 [1] : vector<8x8xf32> to vector<8xf32>
    %164 = vector.shape_cast %163 : vector<8xf32> to vector<8x1xf32>
    %165 = tpu.reciprocal %164 {approx = true} : vector<8x1xf32> -> vector<8x1xf32>
    %166 = vector.broadcast %165 : vector<8x1xf32> to vector<8x8xf32>
    %167 = arith.mulf %162, %166 : vector<8x8xf32>
    %168 = arith.truncf %167 : vector<8x8xf32> to vector<8x8xbf16>
    %c0_87 = arith.constant 0 : index
    %c0_88 = arith.constant 0 : index
    %c0_89 = arith.constant 0 : index
    %169 = vector.load %arg32[%c0_87, %c0_88, %c0_89] : memref<4x8x8xbf16, #tpu.memory_space<vmem>>, vector<1x8x8xbf16>
    %170 = vector.shape_cast %169 : vector<1x8x8xbf16> to vector<8x8xbf16>
    %cst_90 = arith.constant dense<0.000000e+00> : vector<8x8xf32>
    %171 = tpu.matmul %168, %170, %cst_90 {dimension_numbers = #tpu.dot_dimension_numbers<[1], [0], [0], [1], [0, 0, 1, 1], [], []>} : vector<8x8xbf16>, vector<8x8xbf16>, vector<8x8xf32> -> vector<8x8xf32>
    %172 = arith.truncf %171 : vector<8x8xf32> to vector<8x8xbf16>
    %c0_91 = arith.constant 0 : index
    %c0_92 = arith.constant 0 : index
    %173 = vector.load %arg33[%c0_91, %c0_92] : memref<8x32xbf16, #tpu.memory_space<vmem>>, vector<8x8xbf16>
    tpu.vector_store %arg33[%c0_91, %c0_92], %172 {strides = array<i32>} : memref<8x32xbf16, #tpu.memory_space<vmem>>, vector<8x8xbf16>,
    %174 = vector.extract_strided_slice %152 {offsets = [0, 8], sizes = [8, 8], strides = [1, 1]} : vector<8x32xbf16> to vector<8x8xbf16>
    %c1_93 = arith.constant 1 : index
    %c0_94 = arith.constant 0 : index
    %c0_95 = arith.constant 0 : index
    %175 = vector.load %arg31[%c1_93, %c0_94, %c0_95] : memref<4x8x8xbf16, #tpu.memory_space<vmem>>, vector<1x8x8xbf16>
    %176 = vector.shape_cast %175 : vector<1x8x8xbf16> to vector<8x8xbf16>
    %cst_96 = arith.constant dense<0.000000e+00> : vector<8x8xf32>
    %177 = tpu.matmul %174, %176, %cst_96 {dimension_numbers = #tpu.dot_dimension_numbers<[1], [1], [0], [0], [0, 0, 1, 0], [], []>} : vector<8x8xbf16>, vector<8x8xbf16>, vector<8x8xf32> -> vector<8x8xf32>
    %178 = arith.addf %177, %21 : vector<8x8xf32>
    %cst_97 = arith.constant dense<0xFF800000> : vector<8xf32>
    %179 = vector.multi_reduction <maximumf>, %178, %cst_97 [1] : vector<8x8xf32> to vector<8xf32>
    %180 = vector.shape_cast %179 : vector<8xf32> to vector<8x1xf32>
    %181 = vector.broadcast %180 : vector<8x1xf32> to vector<8x8xf32>
    %182 = arith.subf %178, %181 : vector<8x8xf32>
    %183 = math.exp %182 : vector<8x8xf32>
    %cst_98 = arith.constant dense<0.000000e+00> : vector<8xf32>
    %184 = vector.multi_reduction <add>, %183, %cst_98 [1] : vector<8x8xf32> to vector<8xf32>
    %185 = vector.shape_cast %184 : vector<8xf32> to vector<8x1xf32>
    %186 = tpu.reciprocal %185 {approx = true} : vector<8x1xf32> -> vector<8x1xf32>
    %187 = vector.broadcast %186 : vector<8x1xf32> to vector<8x8xf32>
    %188 = arith.mulf %183, %187 : vector<8x8xf32>
    %189 = arith.truncf %188 : vector<8x8xf32> to vector<8x8xbf16>
    %c1_99 = arith.constant 1 : index
    %c0_100 = arith.constant 0 : index
    %c0_101 = arith.constant 0 : index
    %190 = vector.load %arg32[%c1_99, %c0_100, %c0_101] : memref<4x8x8xbf16, #tpu.memory_space<vmem>>, vector<1x8x8xbf16>
    %191 = vector.shape_cast %190 : vector<1x8x8xbf16> to vector<8x8xbf16>
    %cst_102 = arith.constant dense<0.000000e+00> : vector<8x8xf32>
    %192 = tpu.matmul %189, %191, %cst_102 {dimension_numbers = #tpu.dot_dimension_numbers<[1], [0], [0], [1], [0, 0, 1, 1], [], []>} : vector<8x8xbf16>, vector<8x8xbf16>, vector<8x8xf32> -> vector<8x8xf32>
    %193 = arith.truncf %192 : vector<8x8xf32> to vector<8x8xbf16>
    %c0_103 = arith.constant 0 : index
    %c8_104 = arith.constant 8 : index
    %194 = vector.load %arg33[%c0_103, %c8_104] : memref<8x32xbf16, #tpu.memory_space<vmem>>, vector<8x8xbf16>
    tpu.vector_store %arg33[%c0_103, %c8_104], %193 {strides = array<i32>} : memref<8x32xbf16, #tpu.memory_space<vmem>>, vector<8x8xbf16>,
    %195 = vector.extract_strided_slice %152 {offsets = [0, 16], sizes = [8, 8], strides = [1, 1]} : vector<8x32xbf16> to vector<8x8xbf16>
    %c2_105 = arith.constant 2 : index
    %c0_106 = arith.constant 0 : index
    %c0_107 = arith.constant 0 : index
    %196 = vector.load %arg31[%c2_105, %c0_106, %c0_107] : memref<4x8x8xbf16, #tpu.memory_space<vmem>>, vector<1x8x8xbf16>
    %197 = vector.shape_cast %196 : vector<1x8x8xbf16> to vector<8x8xbf16>
    %cst_108 = arith.constant dense<0.000000e+00> : vector<8x8xf32>
    %198 = tpu.matmul %195, %197, %cst_108 {dimension_numbers = #tpu.dot_dimension_numbers<[1], [1], [0], [0], [0, 0, 1, 0], [], []>} : vector<8x8xbf16>, vector<8x8xbf16>, vector<8x8xf32> -> vector<8x8xf32>
    %199 = arith.addf %198, %21 : vector<8x8xf32>
    %cst_109 = arith.constant dense<0xFF800000> : vector<8xf32>
    %200 = vector.multi_reduction <maximumf>, %199, %cst_109 [1] : vector<8x8xf32> to vector<8xf32>
    %201 = vector.shape_cast %200 : vector<8xf32> to vector<8x1xf32>
    %202 = vector.broadcast %201 : vector<8x1xf32> to vector<8x8xf32>
    %203 = arith.subf %199, %202 : vector<8x8xf32>
    %204 = math.exp %203 : vector<8x8xf32>
    %cst_110 = arith.constant dense<0.000000e+00> : vector<8xf32>
    %205 = vector.multi_reduction <add>, %204, %cst_110 [1] : vector<8x8xf32> to vector<8xf32>
    %206 = vector.shape_cast %205 : vector<8xf32> to vector<8x1xf32>
    %207 = tpu.reciprocal %206 {approx = true} : vector<8x1xf32> -> vector<8x1xf32>
    %208 = vector.broadcast %207 : vector<8x1xf32> to vector<8x8xf32>
    %209 = arith.mulf %204, %208 : vector<8x8xf32>
    %210 = arith.truncf %209 : vector<8x8xf32> to vector<8x8xbf16>
    %c2_111 = arith.constant 2 : index
    %c0_112 = arith.constant 0 : index
    %c0_113 = arith.constant 0 : index
    %211 = vector.load %arg32[%c2_111, %c0_112, %c0_113] : memref<4x8x8xbf16, #tpu.memory_space<vmem>>, vector<1x8x8xbf16>
    %212 = vector.shape_cast %211 : vector<1x8x8xbf16> to vector<8x8xbf16>
    %cst_114 = arith.constant dense<0.000000e+00> : vector<8x8xf32>
    %213 = tpu.matmul %210, %212, %cst_114 {dimension_numbers = #tpu.dot_dimension_numbers<[1], [0], [0], [1], [0, 0, 1, 1], [], []>} : vector<8x8xbf16>, vector<8x8xbf16>, vector<8x8xf32> -> vector<8x8xf32>
    %214 = arith.truncf %213 : vector<8x8xf32> to vector<8x8xbf16>
    %c0_115 = arith.constant 0 : index
    %c16_116 = arith.constant 16 : index
    %215 = vector.load %arg33[%c0_115, %c16_116] : memref<8x32xbf16, #tpu.memory_space<vmem>>, vector<8x8xbf16>
    tpu.vector_store %arg33[%c0_115, %c16_116], %214 {strides = array<i32>} : memref<8x32xbf16, #tpu.memory_space<vmem>>, vector<8x8xbf16>,
    %216 = vector.extract_strided_slice %152 {offsets = [0, 24], sizes = [8, 8], strides = [1, 1]} : vector<8x32xbf16> to vector<8x8xbf16>
    %c3_117 = arith.constant 3 : index
    %c0_118 = arith.constant 0 : index
    %c0_119 = arith.constant 0 : index
    %217 = vector.load %arg31[%c3_117, %c0_118, %c0_119] : memref<4x8x8xbf16, #tpu.memory_space<vmem>>, vector<1x8x8xbf16>
    %218 = vector.shape_cast %217 : vector<1x8x8xbf16> to vector<8x8xbf16>
    %cst_120 = arith.constant dense<0.000000e+00> : vector<8x8xf32>
    %219 = tpu.matmul %216, %218, %cst_120 {dimension_numbers = #tpu.dot_dimension_numbers<[1], [1], [0], [0], [0, 0, 1, 0], [], []>} : vector<8x8xbf16>, vector<8x8xbf16>, vector<8x8xf32> -> vector<8x8xf32>
    %220 = arith.addf %219, %21 : vector<8x8xf32>
    %cst_121 = arith.constant dense<0xFF800000> : vector<8xf32>
    %221 = vector.multi_reduction <maximumf>, %220, %cst_121 [1] : vector<8x8xf32> to vector<8xf32>
    %222 = vector.shape_cast %221 : vector<8xf32> to vector<8x1xf32>
    %223 = vector.broadcast %222 : vector<8x1xf32> to vector<8x8xf32>
    %224 = arith.subf %220, %223 : vector<8x8xf32>
    %225 = math.exp %224 : vector<8x8xf32>
    %cst_122 = arith.constant dense<0.000000e+00> : vector<8xf32>
    %226 = vector.multi_reduction <add>, %225, %cst_122 [1] : vector<8x8xf32> to vector<8xf32>
    %227 = vector.shape_cast %226 : vector<8xf32> to vector<8x1xf32>
    %228 = tpu.reciprocal %227 {approx = true} : vector<8x1xf32> -> vector<8x1xf32>
    %229 = vector.broadcast %228 : vector<8x1xf32> to vector<8x8xf32>
    %230 = arith.mulf %225, %229 : vector<8x8xf32>
    %231 = arith.truncf %230 : vector<8x8xf32> to vector<8x8xbf16>
    %c3_123 = arith.constant 3 : index
    %c0_124 = arith.constant 0 : index
    %c0_125 = arith.constant 0 : index
    %232 = vector.load %arg32[%c3_123, %c0_124, %c0_125] : memref<4x8x8xbf16, #tpu.memory_space<vmem>>, vector<1x8x8xbf16>
    %233 = vector.shape_cast %232 : vector<1x8x8xbf16> to vector<8x8xbf16>
    %cst_126 = arith.constant dense<0.000000e+00> : vector<8x8xf32>
    %234 = tpu.matmul %231, %233, %cst_126 {dimension_numbers = #tpu.dot_dimension_numbers<[1], [0], [0], [1], [0, 0, 1, 1], [], []>} : vector<8x8xbf16>, vector<8x8xbf16>, vector<8x8xf32> -> vector<8x8xf32>
    %235 = arith.truncf %234 : vector<8x8xf32> to vector<8x8xbf16>
    %c0_127 = arith.constant 0 : index
    %c24_128 = arith.constant 24 : index
    %236 = vector.load %arg33[%c0_127, %c24_128] : memref<8x32xbf16, #tpu.memory_space<vmem>>, vector<8x8xbf16>
    tpu.vector_store %arg33[%c0_127, %c24_128], %235 {strides = array<i32>} : memref<8x32xbf16, #tpu.memory_space<vmem>>, vector<8x8xbf16>,
    %c0_129 = arith.constant 0 : index
    %c0_130 = arith.constant 0 : index
    %237 = vector.load %arg33[%c0_129, %c0_130] : memref<8x32xbf16, #tpu.memory_space<vmem>>, vector<8x32xbf16>
    %c0_131 = arith.constant 0 : index
    %c0_132 = arith.constant 0 : index
    %238 = vector.load %arg20[%c0_131, %c0_132] : memref<32x32xbf16, #tpu.memory_space<vmem>>, vector<32x32xbf16>
    %cst_133 = arith.constant dense<0.000000e+00> : vector<8x32xf32>
    %239 = tpu.matmul %237, %238, %cst_133 {dimension_numbers = #tpu.dot_dimension_numbers<[1], [0], [0], [1], [0, 0, 1, 1], [], []>} : vector<8x32xbf16>, vector<32x32xbf16>, vector<8x32xf32> -> vector<8x32xf32>
    %c0_134 = arith.constant 0 : index
    %c0_135 = arith.constant 0 : index
    %240 = vector.load %arg21[%c0_134, %c0_135] : memref<1x32xf32, #tpu.memory_space<vmem>>, vector<1x32xf32>
    %241 = vector.broadcast %240 : vector<1x32xf32> to vector<8x32xf32>
    %242 = arith.addf %239, %241 : vector<8x32xf32>
    %243 = arith.addf %145, %242 : vector<8x32xf32>
    %c1_136 = arith.constant 1 : index
    %c0_137 = arith.constant 0 : index
    %c0_138 = arith.constant 0 : index
    %244 = vector.load %arg26[%c1_136, %c0_137, %c0_138] : memref<3x1x32xf32, #tpu.memory_space<vmem>>, vector<1x1x32xf32>
    %245 = vector.shape_cast %244 : vector<1x1x32xf32> to vector<1x32xf32>
    %c1_139 = arith.constant 1 : index
    %c0_140 = arith.constant 0 : index
    %c0_141 = arith.constant 0 : index
    %246 = vector.load %arg27[%c1_139, %c0_140, %c0_141] : memref<3x1x32xf32, #tpu.memory_space<vmem>>, vector<1x1x32xf32>
    %247 = vector.shape_cast %246 : vector<1x1x32xf32> to vector<1x32xf32>
    %cst_142 = arith.constant dense<0.000000e+00> : vector<8xf32>
    %248 = vector.multi_reduction <add>, %243, %cst_142 [1] : vector<8x32xf32> to vector<8xf32>
    %249 = vector.shape_cast %248 : vector<8xf32> to vector<8x1xf32>
    %cst_143 = arith.constant 3.200000e+01 : f32
    %250 = vector.broadcast %cst_143 : f32 to vector<8x1xf32>
    %251 = arith.divf %249, %250 : vector<8x1xf32>
    %252 = vector.broadcast %251 : vector<8x1xf32> to vector<8x32xf32>
    %253 = arith.subf %243, %252 : vector<8x32xf32>
    %254 = arith.mulf %253, %253 : vector<8x32xf32>
    %cst_144 = arith.constant dense<0.000000e+00> : vector<8xf32>
    %255 = vector.multi_reduction <add>, %254, %cst_144 [1] : vector<8x32xf32> to vector<8xf32>
    %256 = vector.shape_cast %255 : vector<8xf32> to vector<8x1xf32>
    %cst_145 = arith.constant 3.200000e+01 : f32
    %257 = vector.broadcast %cst_145 : f32 to vector<8x1xf32>
    %258 = arith.divf %256, %257 : vector<8x1xf32>
    %259 = vector.broadcast %251 : vector<8x1xf32> to vector<8x32xf32>
    %260 = arith.subf %243, %259 : vector<8x32xf32>
    %cst_146 = arith.constant 9.99999974E-6 : f32
    %261 = vector.broadcast %cst_146 : f32 to vector<8x1xf32>
    %262 = arith.addf %258, %261 : vector<8x1xf32>
    %263 = math.rsqrt %262 : vector<8x1xf32>
    %264 = vector.broadcast %263 : vector<8x1xf32> to vector<8x32xf32>
    %265 = arith.mulf %260, %264 : vector<8x32xf32>
    %266 = vector.broadcast %245 : vector<1x32xf32> to vector<8x32xf32>
    %267 = arith.mulf %265, %266 : vector<8x32xf32>
    %268 = vector.broadcast %247 : vector<1x32xf32> to vector<8x32xf32>
    %269 = arith.addf %267, %268 : vector<8x32xf32>
    %270 = arith.truncf %269 : vector<8x32xf32> to vector<8x32xbf16>
    %c0_147 = arith.constant 0 : index
    %c0_148 = arith.constant 0 : index
    %271 = vector.load %arg22[%c0_147, %c0_148] : memref<32x64xbf16, #tpu.memory_space<vmem>>, vector<32x64xbf16>
    %cst_149 = arith.constant dense<0.000000e+00> : vector<8x64xf32>
    %272 = tpu.matmul %270, %271, %cst_149 {dimension_numbers = #tpu.dot_dimension_numbers<[1], [0], [0], [1], [0, 0, 1, 1], [], []>} : vector<8x32xbf16>, vector<32x64xbf16>, vector<8x64xf32> -> vector<8x64xf32>
    %c0_150 = arith.constant 0 : index
    %c0_151 = arith.constant 0 : index
    %273 = vector.load %arg23[%c0_150, %c0_151] : memref<1x64xf32, #tpu.memory_space<vmem>>, vector<1x64xf32>
    %274 = vector.broadcast %273 : vector<1x64xf32> to vector<8x64xf32>
    %275 = arith.addf %272, %274 : vector<8x64xf32>
    %cst_152 = arith.constant 0.000000e+00 : f32
    %276 = vector.broadcast %cst_152 : f32 to vector<8x64xf32>
    %277 = arith.maximumf %275, %276 : vector<8x64xf32>
    %278 = arith.truncf %277 : vector<8x64xf32> to vector<8x64xbf16>
    %c0_153 = arith.constant 0 : index
    %c0_154 = arith.constant 0 : index
    %279 = vector.load %arg24[%c0_153, %c0_154] : memref<64x32xbf16, #tpu.memory_space<vmem>>, vector<64x32xbf16>
    %cst_155 = arith.constant dense<0.000000e+00> : vector<8x32xf32>
    %280 = tpu.matmul %278, %279, %cst_155 {dimension_numbers = #tpu.dot_dimension_numbers<[1], [0], [0], [1], [0, 0, 1, 1], [], []>} : vector<8x64xbf16>, vector<64x32xbf16>, vector<8x32xf32> -> vector<8x32xf32>
    %c0_156 = arith.constant 0 : index
    %c0_157 = arith.constant 0 : index
    %281 = vector.load %arg25[%c0_156, %c0_157] : memref<1x32xf32, #tpu.memory_space<vmem>>, vector<1x32xf32>
    %282 = vector.broadcast %281 : vector<1x32xf32> to vector<8x32xf32>
    %283 = arith.addf %280, %282 : vector<8x32xf32>
    %284 = arith.addf %269, %283 : vector<8x32xf32>
    %c2_158 = arith.constant 2 : index
    %c0_159 = arith.constant 0 : index
    %c0_160 = arith.constant 0 : index
    %285 = vector.load %arg26[%c2_158, %c0_159, %c0_160] : memref<3x1x32xf32, #tpu.memory_space<vmem>>, vector<1x1x32xf32>
    %286 = vector.shape_cast %285 : vector<1x1x32xf32> to vector<1x32xf32>
    %c2_161 = arith.constant 2 : index
    %c0_162 = arith.constant 0 : index
    %c0_163 = arith.constant 0 : index
    %287 = vector.load %arg27[%c2_161, %c0_162, %c0_163] : memref<3x1x32xf32, #tpu.memory_space<vmem>>, vector<1x1x32xf32>
    %288 = vector.shape_cast %287 : vector<1x1x32xf32> to vector<1x32xf32>
    %cst_164 = arith.constant dense<0.000000e+00> : vector<8xf32>
    %289 = vector.multi_reduction <add>, %284, %cst_164 [1] : vector<8x32xf32> to vector<8xf32>
    %290 = vector.shape_cast %289 : vector<8xf32> to vector<8x1xf32>
    %cst_165 = arith.constant 3.200000e+01 : f32
    %291 = vector.broadcast %cst_165 : f32 to vector<8x1xf32>
    %292 = arith.divf %290, %291 : vector<8x1xf32>
    %293 = vector.broadcast %292 : vector<8x1xf32> to vector<8x32xf32>
    %294 = arith.subf %284, %293 : vector<8x32xf32>
    %295 = arith.mulf %294, %294 : vector<8x32xf32>
    %cst_166 = arith.constant dense<0.000000e+00> : vector<8xf32>
    %296 = vector.multi_reduction <add>, %295, %cst_166 [1] : vector<8x32xf32> to vector<8xf32>
    %297 = vector.shape_cast %296 : vector<8xf32> to vector<8x1xf32>
    %cst_167 = arith.constant 3.200000e+01 : f32
    %298 = vector.broadcast %cst_167 : f32 to vector<8x1xf32>
    %299 = arith.divf %297, %298 : vector<8x1xf32>
    %300 = vector.broadcast %292 : vector<8x1xf32> to vector<8x32xf32>
    %301 = arith.subf %284, %300 : vector<8x32xf32>
    %cst_168 = arith.constant 9.99999974E-6 : f32
    %302 = vector.broadcast %cst_168 : f32 to vector<8x1xf32>
    %303 = arith.addf %299, %302 : vector<8x1xf32>
    %304 = math.rsqrt %303 : vector<8x1xf32>
    %305 = vector.broadcast %304 : vector<8x1xf32> to vector<8x32xf32>
    %306 = arith.mulf %301, %305 : vector<8x32xf32>
    %307 = vector.broadcast %286 : vector<1x32xf32> to vector<8x32xf32>
    %308 = arith.mulf %306, %307 : vector<8x32xf32>
    %309 = vector.broadcast %288 : vector<1x32xf32> to vector<8x32xf32>
    %310 = arith.addf %308, %309 : vector<8x32xf32>
    %311 = arith.truncf %310 : vector<8x32xf32> to vector<8x32xbf16>
    %c0_169 = arith.constant 0 : index
    %c0_170 = arith.constant 0 : index
    %c0_171 = arith.constant 0 : index
    %312 = vector.load %arg28[%c0_169, %c0_170, %c0_171] : memref<1x8x32xbf16, #tpu.memory_space<vmem>>, vector<1x8x32xbf16>
    %313 = vector.shape_cast %312 : vector<1x8x32xbf16> to vector<8x32xbf16>
    %314 = vector.shape_cast %311 : vector<8x32xbf16> to vector<1x8x32xbf16>
    tpu.vector_store %arg28[%c0_169, %c0_170, %c0_171], %314 {strides = array<i32>} : memref<1x8x32xbf16, #tpu.memory_space<vmem>>, vector<1x8x32xbf16>,
    return
  }
  func.func @transform_0(%arg0: i32, %arg1: i32) -> (i32, i32, i32) {
    %c0_i32 = arith.constant 0 : i32
    %c0_i32_0 = arith.constant 0 : i32
    %c0_i32_1 = arith.constant 0 : i32
    return %arg0, %c0_i32, %c0_i32_0 : i32, i32, i32
  }
  func.func @transform_1(%arg0: i32, %arg1: i32) -> (i32, i32, i32) {
    %c0_i32 = arith.constant 0 : i32
    %c0_i32_0 = arith.constant 0 : i32
    %c0_i32_1 = arith.constant 0 : i32
    return %arg0, %c0_i32, %c0_i32_0 : i32, i32, i32
  }
  func.func @transform_2(%arg0: i32, %arg1: i32) -> (i32, i32) {
    %c0_i32 = arith.constant 0 : i32
    %c0_i32_0 = arith.constant 0 : i32
    return %arg1, %c0_i32 : i32, i32
  }
  func.func @transform_3(%arg0: i32, %arg1: i32) -> (i32, i32) {
    %c0_i32 = arith.constant 0 : i32
    %c0_i32_0 = arith.constant 0 : i32
    return %arg1, %c0_i32 : i32, i32
  }
  func.func @transform_4(%arg0: i32, %arg1: i32) -> (i32, i32) {
    %c0_i32 = arith.constant 0 : i32
    %c0_i32_0 = arith.constant 0 : i32
    %c0_i32_1 = arith.constant 0 : i32
    return %c0_i32, %c0_i32_0 : i32, i32
  }
  func.func @transform_5(%arg0: i32, %arg1: i32) -> (i32, i32) {
    %c0_i32 = arith.constant 0 : i32
    %c0_i32_0 = arith.constant 0 : i32
    %c0_i32_1 = arith.constant 0 : i32
    return %c0_i32, %c0_i32_0 : i32, i32
  }
  func.func @transform_6(%arg0: i32, %arg1: i32) -> (i32, i32, i32) {
    %c0_i32 = arith.constant 0 : i32
    %c0_i32_0 = arith.constant 0 : i32
    %c0_i32_1 = arith.constant 0 : i32
    %c0_i32_2 = arith.constant 0 : i32
    return %c0_i32, %c0_i32_0, %c0_i32_1 : i32, i32, i32
  }
  func.func @transform_7(%arg0: i32, %arg1: i32) -> (i32, i32, i32) {
    %c0_i32 = arith.constant 0 : i32
    %c0_i32_0 = arith.constant 0 : i32
    %c0_i32_1 = arith.constant 0 : i32
    %c0_i32_2 = arith.constant 0 : i32
    return %c0_i32, %c0_i32_0, %c0_i32_1 : i32, i32, i32
  }
  func.func @transform_8(%arg0: i32, %arg1: i32) -> (i32, i32, i32) {
    %c0_i32 = arith.constant 0 : i32
    %c0_i32_0 = arith.constant 0 : i32
    %c0_i32_1 = arith.constant 0 : i32
    %c0_i32_2 = arith.constant 0 : i32
    return %c0_i32, %c0_i32_0, %c0_i32_1 : i32, i32, i32
  }
  func.func @transform_9(%arg0: i32, %arg1: i32) -> (i32, i32, i32) {
    %c0_i32 = arith.constant 0 : i32
    %c0_i32_0 = arith.constant 0 : i32
    %c0_i32_1 = arith.constant 0 : i32
    %c0_i32_2 = arith.constant 0 : i32
    return %c0_i32, %c0_i32_0, %c0_i32_1 : i32, i32, i32
  }
  func.func @transform_10(%arg0: i32, %arg1: i32) -> (i32, i32) {
    %c0_i32 = arith.constant 0 : i32
    %c0_i32_0 = arith.constant 0 : i32
    %c0_i32_1 = arith.constant 0 : i32
    return %c0_i32, %c0_i32_0 : i32, i32
  }
  func.func @transform_11(%arg0: i32, %arg1: i32) -> (i32, i32) {
    %c0_i32 = arith.constant 0 : i32
    %c0_i32_0 = arith.constant 0 : i32
    %c0_i32_1 = arith.constant 0 : i32
    return %c0_i32, %c0_i32_0 : i32, i32
  }
  func.func @transform_12(%arg0: i32, %arg1: i32) -> (i32, i32) {
    %c0_i32 = arith.constant 0 : i32
    %c0_i32_0 = arith.constant 0 : i32
    %c0_i32_1 = arith.constant 0 : i32
    return %c0_i32, %c0_i32_0 : i32, i32
  }
  func.func @transform_13(%arg0: i32, %arg1: i32) -> (i32, i32) {
    %c0_i32 = arith.constant 0 : i32
    %c0_i32_0 = arith.constant 0 : i32
    %c0_i32_1 = arith.constant 0 : i32
    return %c0_i32, %c0_i32_0 : i32, i32
  }
  func.func @transform_14(%arg0: i32, %arg1: i32) -> (i32, i32, i32) {
    %c0_i32 = arith.constant 0 : i32
    %c0_i32_0 = arith.constant 0 : i32
    %c0_i32_1 = arith.constant 0 : i32
    %c0_i32_2 = arith.constant 0 : i32
    return %c0_i32, %c0_i32_0, %c0_i32_1 : i32, i32, i32
  }
  func.func @transform_15(%arg0: i32, %arg1: i32) -> (i32, i32, i32) {
    %c0_i32 = arith.constant 0 : i32
    %c0_i32_0 = arith.constant 0 : i32
    %c0_i32_1 = arith.constant 0 : i32
    %c0_i32_2 = arith.constant 0 : i32
    return %c0_i32, %c0_i32_0, %c0_i32_1 : i32, i32, i32
  }
  func.func @transform_16(%arg0: i32, %arg1: i32) -> (i32, i32, i32) {
    %c0_i32 = arith.constant 0 : i32
    %c0_i32_0 = arith.constant 0 : i32
    %c0_i32_1 = arith.constant 0 : i32
    %c0_i32_2 = arith.constant 0 : i32
    return %c0_i32, %c0_i32_0, %c0_i32_1 : i32, i32, i32
  }
  func.func @transform_17(%arg0: i32, %arg1: i32) -> (i32, i32, i32) {
    %c0_i32 = arith.constant 0 : i32
    %c0_i32_0 = arith.constant 0 : i32
    %c0_i32_1 = arith.constant 0 : i32
    %c0_i32_2 = arith.constant 0 : i32
    return %c0_i32, %c0_i32_0, %c0_i32_1 : i32, i32, i32
  }
  func.func @transform_18(%arg0: i32, %arg1: i32) -> (i32, i32) {
    %c0_i32 = arith.constant 0 : i32
    %c0_i32_0 = arith.constant 0 : i32
    %c0_i32_1 = arith.constant 0 : i32
    return %c0_i32, %c0_i32_0 : i32, i32
  }
  func.func @transform_19(%arg0: i32, %arg1: i32) -> (i32, i32) {
    %c0_i32 = arith.constant 0 : i32
    %c0_i32_0 = arith.constant 0 : i32
    %c0_i32_1 = arith.constant 0 : i32
    return %c0_i32, %c0_i32_0 : i32, i32
  }
  func.func @transform_20(%arg0: i32, %arg1: i32) -> (i32, i32) {
    %c0_i32 = arith.constant 0 : i32
    %c0_i32_0 = arith.constant 0 : i32
    %c0_i32_1 = arith.constant 0 : i32
    return %c0_i32, %c0_i32_0 : i32, i32
  }
  func.func @transform_21(%arg0: i32, %arg1: i32) -> (i32, i32) {
    %c0_i32 = arith.constant 0 : i32
    %c0_i32_0 = arith.constant 0 : i32
    %c0_i32_1 = arith.constant 0 : i32
    return %c0_i32, %c0_i32_0 : i32, i32
  }
  func.func @transform_22(%arg0: i32, %arg1: i32) -> (i32, i32) {
    %c0_i32 = arith.constant 0 : i32
    %c0_i32_0 = arith.constant 0 : i32
    %c0_i32_1 = arith.constant 0 : i32
    return %c0_i32, %c0_i32_0 : i32, i32
  }
  func.func @transform_23(%arg0: i32, %arg1: i32) -> (i32, i32) {
    %c0_i32 = arith.constant 0 : i32
    %c0_i32_0 = arith.constant 0 : i32
    %c0_i32_1 = arith.constant 0 : i32
    return %c0_i32, %c0_i32_0 : i32, i32
  }
  func.func @transform_24(%arg0: i32, %arg1: i32) -> (i32, i32, i32) {
    %c0_i32 = arith.constant 0 : i32
    %c0_i32_0 = arith.constant 0 : i32
    %c0_i32_1 = arith.constant 0 : i32
    %c0_i32_2 = arith.constant 0 : i32
    return %c0_i32, %c0_i32_0, %c0_i32_1 : i32, i32, i32
  }
  func.func @transform_25(%arg0: i32, %arg1: i32) -> (i32, i32, i32) {
    %c0_i32 = arith.constant 0 : i32
    %c0_i32_0 = arith.constant 0 : i32
    %c0_i32_1 = arith.constant 0 : i32
    %c0_i32_2 = arith.constant 0 : i32
    return %c0_i32, %c0_i32_0, %c0_i32_1 : i32, i32, i32
  }
  func.func @transform_26(%arg0: i32, %arg1: i32) -> (i32, i32, i32) {
    %c0_i32 = arith.constant 0 : i32
    %c0_i32_0 = arith.constant 0 : i32
    return %arg0, %arg1, %c0_i32 : i32, i32, i32
  }
}

module attributes {stable_mosaic.version = 11 : i64} {
  func.func @decoder_layer_kernel(%arg0: i32, %arg1: i32, %arg2: memref<1x8x32xbf16, #tpu.memory_space<vmem>>, %arg3: memref<1x8x32xbf16, #tpu.memory_space<vmem>>, %arg4: memref<8x8xi8, #tpu.memory_space<vmem>>, %arg5: memref<8x8xi8, #tpu.memory_space<vmem>>, %arg6: memref<32x32xbf16, #tpu.memory_space<vmem>>, %arg7: memref<1x32xf32, #tpu.memory_space<vmem>>, %arg8: memref<4x32x8xbf16, #tpu.memory_space<vmem>>, %arg9: memref<4x1x8xf32, #tpu.memory_space<vmem>>, %arg10: memref<4x32x8xbf16, #tpu.memory_space<vmem>>, %arg11: memref<4x1x8xf32, #tpu.memory_space<vmem>>, %arg12: memref<32x32xbf16, #tpu.memory_space<vmem>>, %arg13: memref<1x32xf32, #tpu.memory_space<vmem>>, %arg14: memref<32x32xbf16, #tpu.memory_space<vmem>>, %arg15: memref<1x32xf32, #tpu.memory_space<vmem>>, %arg16: memref<4x32x8xbf16, #tpu.memory_space<vmem>>, %arg17: memref<4x1x8xf32, #tpu.memory_space<vmem>>, %arg18: memref<4x32x8xbf16, #tpu.memory_space<vmem>>, %arg19: memref<4x1x8xf32, #tpu.memory_space<vmem>>, %arg20: memref<32x32xbf16, #tpu.memory_space<vmem>>, %arg21: memref<1x32xf32, #tpu.memory_space<vmem>>, %arg22: memref<32x64xbf16, #tpu.memory_space<vmem>>, %arg23: memref<1x64xf32, #tpu.memory_space<vmem>>, %arg24: memref<64x32xbf16, #tpu.memory_space<vmem>>, %arg25: memref<1x32xf32, #tpu.memory_space<vmem>>, %arg26: memref<3x1x32xf32, #tpu.memory_space<vmem>>, %arg27: memref<3x1x32xf32, #tpu.memory_space<vmem>>, %arg28: memref<1x8x32xbf16, #tpu.memory_space<vmem>>, %arg29: memref<4x8x8xbf16, #tpu.memory_space<vmem>>, %arg30: memref<4x8x8xbf16, #tpu.memory_space<vmem>>, %arg31: memref<4x8x8xbf16, #tpu.memory_space<vmem>>, %arg32: memref<4x8x8xbf16, #tpu.memory_space<vmem>>, %arg33: memref<8x32xbf16, #tpu.memory_space<vmem>>) attributes {dimension_semantics = [#tpu.dimension_semantics<parallel>, #tpu.dimension_semantics<arbitrary>], iteration_bounds = array<i64: 2, 1>, scalar_prefetch = 0 : i64, scratch_operands = 5 : i64, tpu.core_type = #tpu.core_type<tc>, window_params = [{transform_indices = @transform_0, window_bounds = array<i64: 1, 8, 32>}, {transform_indices = @transform_1, window_bounds = array<i64: 1, 8, 32>}, {transform_indices = @transform_2, window_bounds = array<i64: 8, 8>}, {transform_indices = @transform_3, window_bounds = array<i64: 8, 8>}, {pipeline_mode = #tpu.pipeline_mode<synchronous>, transform_indices = @transform_4, window_bounds = array<i64: 32, 32>}, {pipeline_mode = #tpu.pipeline_mode<synchronous>, transform_indices = @transform_5, window_bounds = array<i64: 1, 32>}, {pipeline_mode = #tpu.pipeline_mode<synchronous>, transform_indices = @transform_6, window_bounds = array<i64: 4, 32, 8>}, {pipeline_mode = #tpu.pipeline_mode<synchronous>, transform_indices = @transform_7, window_bounds = array<i64: 4, 1, 8>}, {pipeline_mode = #tpu.pipeline_mode<synchronous>, transform_indices = @transform_8, window_bounds = array<i64: 4, 32, 8>}, {pipeline_mode = #tpu.pipeline_mode<synchronous>, transform_indices = @transform_9, window_bounds = array<i64: 4, 1, 8>}, {pipeline_mode = #tpu.pipeline_mode<synchronous>, transform_indices = @transform_10, window_bounds = array<i64: 32, 32>}, {pipeline_mode = #tpu.pipeline_mode<synchronous>, transform_indices = @transform_11, window_bounds = array<i64: 1, 32>}, {pipeline_mode = #tpu.pipeline_mode<synchronous>, transform_indices = @transform_12, window_bounds = array<i64: 32, 32>}, {pipeline_mode = #tpu.pipeline_mode<synchronous>, transform_indices = @transform_13, window_bounds = array<i64: 1, 32>}, {pipeline_mode = #tpu.pipeline_mode<synchronous>, transform_indices = @transform_14, window_bounds = array<i64: 4, 32, 8>}, {pipeline_mode = #tpu.pipeline_mode<synchronous>, transform_indices = @transform_15, window_bounds = array<i64: 4, 1, 8>}, {pipeline_mode = #tpu.pipeline_mode<synchronous>, transform_indices = @transform_16, window_bounds = array<i64: 4, 32, 8>}, {pipeline_mode = #tpu.pipeline_mode<synchronous>, transform_indices = @transform_17, window_bounds = array<i64: 4, 1, 8>}, {pipeline_mode = #tpu.pipeline_mode<synchronous>, transform_indices = @transform_18, window_bounds = array<i64: 32, 32>}, {pipeline_mode = #tpu.pipeline_mode<synchronous>, transform_indices = @transform_19, window_bounds = array<i64: 1, 32>}, {pipeline_mode = #tpu.pipeline_mode<synchronous>, transform_indices = @transform_20, window_bounds = array<i64: 32, 64>}, {pipeline_mode = #tpu.pipeline_mode<synchronous>, transform_indices = @transform_21, window_bounds = array<i64: 1, 64>}, {pipeline_mode = #tpu.pipeline_mode<synchronous>, transform_indices = @transform_22, window_bounds = array<i64: 64, 32>}, {pipeline_mode = #tpu.pipeline_mode<synchronous>, transform_indices = @transform_23, window_bounds = array<i64: 1, 32>}, {pipeline_mode = #tpu.pipeline_mode<synchronous>, transform_indices = @transform_24, window_bounds = array<i64: 3, 1, 32>}, {pipeline_mode = #tpu.pipeline_mode<synchronous>, transform_indices = @transform_25, window_bounds = array<i64: 3, 1, 32>}, {transform_indices = @transform_26, window_bounds = array<i64: 1, 8, 32>}]} {
    %c0_i32 = arith.constant 0 : i32
    %0 = arith.cmpi eq, %arg1, %c0_i32 : i32
    %1 = arith.extui %0 : i1 to i32
    %c0_i32_0 = arith.constant 0 : i32
    %2 = arith.cmpi ne, %1, %c0_i32_0 : i32
    scf.if %2 {
      %c0_172 = arith.constant 0 : index
      %c0_173 = arith.constant 0 : index
      %c0_174 = arith.constant 0 : index
      %315 = vector.load %arg2[%c0_172, %c0_173, %c0_174] : memref<1x8x32xbf16, #tpu.memory_space<vmem>>, vector<1x8x32xbf16>
      %316 = vector.shape_cast %315 : vector<1x8x32xbf16> to vector<8x32xbf16>
      %c0_175 = arith.constant 0 : index
      %c0_176 = arith.constant 0 : index
      %c0_177 = arith.constant 0 : index
      %317 = vector.load %arg3[%c0_175, %c0_176, %c0_177] : memref<1x8x32xbf16, #tpu.memory_space<vmem>>, vector<1x8x32xbf16>
      %318 = vector.shape_cast %317 : vector<1x8x32xbf16> to vector<8x32xbf16>
      %c0_178 = arith.constant 0 : index
      %c0_179 = arith.constant 0 : index
      %c0_180 = arith.constant 0 : index
      %319 = vector.load %arg8[%c0_178, %c0_179, %c0_180] : memref<4x32x8xbf16, #tpu.memory_space<vmem>>, vector<1x32x8xbf16>
      %320 = vector.shape_cast %319 : vector<1x32x8xbf16> to vector<32x8xbf16>
      %cst_181 = arith.constant dense<0.000000e+00> : vector<8x8xf32>
      %321 = tpu.matmul %316, %320, %cst_181 {dimension_numbers = #tpu.dot_dimension_numbers<[1], [0], [0], [1], [0, 0, 1, 1], [], []>} : vector<8x32xbf16>, vector<32x8xbf16>, vector<8x8xf32> -> vector<8x8xf32>
      %c0_182 = arith.constant 0 : index
      %c0_183 = arith.constant 0 : index
      %c0_184 = arith.constant 0 : index
      %322 = vector.load %arg9[%c0_182, %c0_183, %c0_184] : memref<4x1x8xf32, #tpu.memory_space<vmem>>, vector<1x1x8xf32>
      %323 = vector.shape_cast %322 : vector<1x1x8xf32> to vector<1x8xf32>
      %324 = vector.broadcast %323 : vector<1x8xf32> to vector<8x8xf32>
      %325 = arith.addf %321, %324 : vector<8x8xf32>
      %326 = arith.truncf %325 : vector<8x8xf32> to vector<8x8xbf16>
      %c0_185 = arith.constant 0 : index
      %c0_186 = arith.constant 0 : index
      %c0_187 = arith.constant 0 : index
      %327 = vector.load %arg29[%c0_185, %c0_186, %c0_187] : memref<4x8x8xbf16, #tpu.memory_space<vmem>>, vector<1x8x8xbf16>
      %328 = vector.shape_cast %327 : vector<1x8x8xbf16> to vector<8x8xbf16>
      %329 = vector.shape_cast %326 : vector<8x8xbf16> to vector<1x8x8xbf16>
      tpu.vector_store %arg29[%c0_185, %c0_186, %c0_187], %329 {strides = array<i32>} : memref<4x8x8xbf16, #tpu.memory_space<vmem>>, vector<1x8x8xbf16>,
      %c0_188 = arith.constant 0 : index
      %c0_189 = arith.constant 0 : index
      %c0_190 = arith.constant 0 : index
      %330 = vector.load %arg10[%c0_188, %c0_189, %c0_190] : memref<4x32x8xbf16, #tpu.memory_space<vmem>>, vector<1x32x8xbf16>
      %331 = vector.shape_cast %330 : vector<1x32x8xbf16> to vector<32x8xbf16>
      %cst_191 = arith.constant dense<0.000000e+00> : vector<8x8xf32>
      %332 = tpu.matmul %316, %331, %cst_191 {dimension_numbers = #tpu.dot_dimension_numbers<[1], [0], [0], [1], [0, 0, 1, 1], [], []>} : vector<8x32xbf16>, vector<32x8xbf16>, vector<8x8xf32> -> vector<8x8xf32>
      %c0_192 = arith.constant 0 : index
      %c0_193 = arith.constant 0 : index
      %c0_194 = arith.constant 0 : index
      %333 = vector.load %arg11[%c0_192, %c0_193, %c0_194] : memref<4x1x8xf32, #tpu.memory_space<vmem>>, vector<1x1x8xf32>
      %334 = vector.shape_cast %333 : vector<1x1x8xf32> to vector<1x8xf32>
      %335 = vector.broadcast %334 : vector<1x8xf32> to vector<8x8xf32>
      %336 = arith.addf %332, %335 : vector<8x8xf32>
      %337 = arith.truncf %336 : vector<8x8xf32> to vector<8x8xbf16>
      %c0_195 = arith.constant 0 : index
      %c0_196 = arith.constant 0 : index
      %c0_197 = arith.constant 0 : index
      %338 = vector.load %arg30[%c0_195, %c0_196, %c0_197] : memref<4x8x8xbf16, #tpu.memory_space<vmem>>, vector<1x8x8xbf16>
      %339 = vector.shape_cast %338 : vector<1x8x8xbf16> to vector<8x8xbf16>
      %340 = vector.shape_cast %337 : vector<8x8xbf16> to vector<1x8x8xbf16>
      tpu.vector_store %arg30[%c0_195, %c0_196, %c0_197], %340 {strides = array<i32>} : memref<4x8x8xbf16, #tpu.memory_space<vmem>>, vector<1x8x8xbf16>,
      %c0_198 = arith.constant 0 : index
      %c0_199 = arith.constant 0 : index
      %c0_200 = arith.constant 0 : index
      %341 = vector.load %arg16[%c0_198, %c0_199, %c0_200] : memref<4x32x8xbf16, #tpu.memory_space<vmem>>, vector<1x32x8xbf16>
      %342 = vector.shape_cast %341 : vector<1x32x8xbf16> to vector<32x8xbf16>
      %cst_201 = arith.constant dense<0.000000e+00> : vector<8x8xf32>
      %343 = tpu.matmul %318, %342, %cst_201 {dimension_numbers = #tpu.dot_dimension_numbers<[1], [0], [0], [1], [0, 0, 1, 1], [], []>} : vector<8x32xbf16>, vector<32x8xbf16>, vector<8x8xf32> -> vector<8x8xf32>
      %c0_202 = arith.constant 0 : index
      %c0_203 = arith.constant 0 : index
      %c0_204 = arith.constant 0 : index
      %344 = vector.load %arg17[%c0_202, %c0_203, %c0_204] : memref<4x1x8xf32, #tpu.memory_space<vmem>>, vector<1x1x8xf32>
      %345 = vector.shape_cast %344 : vector<1x1x8xf32> to vector<1x8xf32>
      %346 = vector.broadcast %345 : vector<1x8xf32> to vector<8x8xf32>
      %347 = arith.addf %343, %346 : vector<8x8xf32>
      %348 = arith.truncf %347 : vector<8x8xf32> to vector<8x8xbf16>
      %c0_205 = arith.constant 0 : index
      %c0_206 = arith.constant 0 : index
      %c0_207 = arith.constant 0 : index
      %349 = vector.load %arg31[%c0_205, %c0_206, %c0_207] : memref<4x8x8xbf16, #tpu.memory_space<vmem>>, vector<1x8x8xbf16>
      %350 = vector.shape_cast %349 : vector<1x8x8xbf16> to vector<8x8xbf16>
      %351 = vector.shape_cast %348 : vector<8x8xbf16> to vector<1x8x8xbf16>
      tpu.vector_store %arg31[%c0_205, %c0_206, %c0_207], %351 {strides = array<i32>} : memref<4x8x8xbf16, #tpu.memory_space<vmem>>, vector<1x8x8xbf16>,
      %c0_208 = arith.constant 0 : index
      %c0_209 = arith.constant 0 : index
      %c0_210 = arith.constant 0 : index
      %352 = vector.load %arg18[%c0_208, %c0_209, %c0_210] : memref<4x32x8xbf16, #tpu.memory_space<vmem>>, vector<1x32x8xbf16>
      %353 = vector.shape_cast %352 : vector<1x32x8xbf16> to vector<32x8xbf16>
      %cst_211 = arith.constant dense<0.000000e+00> : vector<8x8xf32>
      %354 = tpu.matmul %318, %353, %cst_211 {dimension_numbers = #tpu.dot_dimension_numbers<[1], [0], [0], [1], [0, 0, 1, 1], [], []>} : vector<8x32xbf16>, vector<32x8xbf16>, vector<8x8xf32> -> vector<8x8xf32>
      %c0_212 = arith.constant 0 : index
      %c0_213 = arith.constant 0 : index
      %c0_214 = arith.constant 0 : index
      %355 = vector.load %arg19[%c0_212, %c0_213, %c0_214] : memref<4x1x8xf32, #tpu.memory_space<vmem>>, vector<1x1x8xf32>
      %356 = vector.shape_cast %355 : vector<1x1x8xf32> to vector<1x8xf32>
      %357 = vector.broadcast %356 : vector<1x8xf32> to vector<8x8xf32>
      %358 = arith.addf %354, %357 : vector<8x8xf32>
      %359 = arith.truncf %358 : vector<8x8xf32> to vector<8x8xbf16>
      %c0_215 = arith.constant 0 : index
      %c0_216 = arith.constant 0 : index
      %c0_217 = arith.constant 0 : index
      %360 = vector.load %arg32[%c0_215, %c0_216, %c0_217] : memref<4x8x8xbf16, #tpu.memory_space<vmem>>, vector<1x8x8xbf16>
      %361 = vector.shape_cast %360 : vector<1x8x8xbf16> to vector<8x8xbf16>
      %362 = vector.shape_cast %359 : vector<8x8xbf16> to vector<1x8x8xbf16>
      tpu.vector_store %arg32[%c0_215, %c0_216, %c0_217], %362 {strides = array<i32>} : memref<4x8x8xbf16, #tpu.memory_space<vmem>>, vector<1x8x8xbf16>,
      %c1_218 = arith.constant 1 : index
      %c0_219 = arith.constant 0 : index
      %c0_220 = arith.constant 0 : index
      %363 = vector.load %arg8[%c1_218, %c0_219, %c0_220] : memref<4x32x8xbf16, #tpu.memory_space<vmem>>, vector<1x32x8xbf16>
      %364 = vector.shape_cast %363 : vector<1x32x8xbf16> to vector<32x8xbf16>
      %cst_221 = arith.constant dense<0.000000e+00> : vector<8x8xf32>
      %365 = tpu.matmul %316, %364, %cst_221 {dimension_numbers = #tpu.dot_dimension_numbers<[1], [0], [0], [1], [0, 0, 1, 1], [], []>} : vector<8x32xbf16>, vector<32x8xbf16>, vector<8x8xf32> -> vector<8x8xf32>
      %c1_222 = arith.constant 1 : index
      %c0_223 = arith.constant 0 : index
      %c0_224 = arith.constant 0 : index
      %366 = vector.load %arg9[%c1_222, %c0_223, %c0_224] : memref<4x1x8xf32, #tpu.memory_space<vmem>>, vector<1x1x8xf32>
      %367 = vector.shape_cast %366 : vector<1x1x8xf32> to vector<1x8xf32>
      %368 = vector.broadcast %367 : vector<1x8xf32> to vector<8x8xf32>
      %369 = arith.addf %365, %368 : vector<8x8xf32>
      %370 = arith.truncf %369 : vector<8x8xf32> to vector<8x8xbf16>
      %c1_225 = arith.constant 1 : index
      %c0_226 = arith.constant 0 : index
      %c0_227 = arith.constant 0 : index
      %371 = vector.load %arg29[%c1_225, %c0_226, %c0_227] : memref<4x8x8xbf16, #tpu.memory_space<vmem>>, vector<1x8x8xbf16>
      %372 = vector.shape_cast %371 : vector<1x8x8xbf16> to vector<8x8xbf16>
      %373 = vector.shape_cast %370 : vector<8x8xbf16> to vector<1x8x8xbf16>
      tpu.vector_store %arg29[%c1_225, %c0_226, %c0_227], %373 {strides = array<i32>} : memref<4x8x8xbf16, #tpu.memory_space<vmem>>, vector<1x8x8xbf16>,
      %c1_228 = arith.constant 1 : index
      %c0_229 = arith.constant 0 : index
      %c0_230 = arith.constant 0 : index
      %374 = vector.load %arg10[%c1_228, %c0_229, %c0_230] : memref<4x32x8xbf16, #tpu.memory_space<vmem>>, vector<1x32x8xbf16>
      %375 = vector.shape_cast %374 : vector<1x32x8xbf16> to vector<32x8xbf16>
      %cst_231 = arith.constant dense<0.000000e+00> : vector<8x8xf32>
      %376 = tpu.matmul %316, %375, %cst_231 {dimension_numbers = #tpu.dot_dimension_numbers<[1], [0], [0], [1], [0, 0, 1, 1], [], []>} : vector<8x32xbf16>, vector<32x8xbf16>, vector<8x8xf32> -> vector<8x8xf32>
      %c1_232 = arith.constant 1 : index
      %c0_233 = arith.constant 0 : index
      %c0_234 = arith.constant 0 : index
      %377 = vector.load %arg11[%c1_232, %c0_233, %c0_234] : memref<4x1x8xf32, #tpu.memory_space<vmem>>, vector<1x1x8xf32>
      %378 = vector.shape_cast %377 : vector<1x1x8xf32> to vector<1x8xf32>
      %379 = vector.broadcast %378 : vector<1x8xf32> to vector<8x8xf32>
      %380 = arith.addf %376, %379 : vector<8x8xf32>
      %381 = arith.truncf %380 : vector<8x8xf32> to vector<8x8xbf16>
      %c1_235 = arith.constant 1 : index
      %c0_236 = arith.constant 0 : index
      %c0_237 = arith.constant 0 : index
      %382 = vector.load %arg30[%c1_235, %c0_236, %c0_237] : memref<4x8x8xbf16, #tpu.memory_space<vmem>>, vector<1x8x8xbf16>
      %383 = vector.shape_cast %382 : vector<1x8x8xbf16> to vector<8x8xbf16>
      %384 = vector.shape_cast %381 : vector<8x8xbf16> to vector<1x8x8xbf16>
      tpu.vector_store %arg30[%c1_235, %c0_236, %c0_237], %384 {strides = array<i32>} : memref<4x8x8xbf16, #tpu.memory_space<vmem>>, vector<1x8x8xbf16>,
      %c1_238 = arith.constant 1 : index
      %c0_239 = arith.constant 0 : index
      %c0_240 = arith.constant 0 : index
      %385 = vector.load %arg16[%c1_238, %c0_239, %c0_240] : memref<4x32x8xbf16, #tpu.memory_space<vmem>>, vector<1x32x8xbf16>
      %386 = vector.shape_cast %385 : vector<1x32x8xbf16> to vector<32x8xbf16>
      %cst_241 = arith.constant dense<0.000000e+00> : vector<8x8xf32>
      %387 = tpu.matmul %318, %386, %cst_241 {dimension_numbers = #tpu.dot_dimension_numbers<[1], [0], [0], [1], [0, 0, 1, 1], [], []>} : vector<8x32xbf16>, vector<32x8xbf16>, vector<8x8xf32> -> vector<8x8xf32>
      %c1_242 = arith.constant 1 : index
      %c0_243 = arith.constant 0 : index
      %c0_244 = arith.constant 0 : index
      %388 = vector.load %arg17[%c1_242, %c0_243, %c0_244] : memref<4x1x8xf32, #tpu.memory_space<vmem>>, vector<1x1x8xf32>
      %389 = vector.shape_cast %388 : vector<1x1x8xf32> to vector<1x8xf32>
      %390 = vector.broadcast %389 : vector<1x8xf32> to vector<8x8xf32>
      %391 = arith.addf %387, %390 : vector<8x8xf32>
      %392 = arith.truncf %391 : vector<8x8xf32> to vector<8x8xbf16>
      %c1_245 = arith.constant 1 : index
      %c0_246 = arith.constant 0 : index
      %c0_247 = arith.constant 0 : index
      %393 = vector.load %arg31[%c1_245, %c0_246, %c0_247] : memref<4x8x8xbf16, #tpu.memory_space<vmem>>, vector<1x8x8xbf16>
      %394 = vector.shape_cast %393 : vector<1x8x8xbf16> to vector<8x8xbf16>
      %395 = vector.shape_cast %392 : vector<8x8xbf16> to vector<1x8x8xbf16>
      tpu.vector_store %arg31[%c1_245, %c0_246, %c0_247], %395 {strides = array<i32>} : memref<4x8x8xbf16, #tpu.memory_space<vmem>>, vector<1x8x8xbf16>,
      %c1_248 = arith.constant 1 : index
      %c0_249 = arith.constant 0 : index
      %c0_250 = arith.constant 0 : index
      %396 = vector.load %arg18[%c1_248, %c0_249, %c0_250] : memref<4x32x8xbf16, #tpu.memory_space<vmem>>, vector<1x32x8xbf16>
      %397 = vector.shape_cast %396 : vector<1x32x8xbf16> to vector<32x8xbf16>
      %cst_251 = arith.constant dense<0.000000e+00> : vector<8x8xf32>
      %398 = tpu.matmul %318, %397, %cst_251 {dimension_numbers = #tpu.dot_dimension_numbers<[1], [0], [0], [1], [0, 0, 1, 1], [], []>} : vector<8x32xbf16>, vector<32x8xbf16>, vector<8x8xf32> -> vector<8x8xf32>
      %c1_252 = arith.constant 1 : index
      %c0_253 = arith.constant 0 : index
      %c0_254 = arith.constant 0 : index
      %399 = vector.load %arg19[%c1_252, %c0_253, %c0_254] : memref<4x1x8xf32, #tpu.memory_space<vmem>>, vector<1x1x8xf32>
      %400 = vector.shape_cast %399 : vector<1x1x8xf32> to vector<1x8xf32>
      %401 = vector.broadcast %400 : vector<1x8xf32> to vector<8x8xf32>
      %402 = arith.addf %398, %401 : vector<8x8xf32>
      %403 = arith.truncf %402 : vector<8x8xf32> to vector<8x8xbf16>
      %c1_255 = arith.constant 1 : index
      %c0_256 = arith.constant 0 : index
      %c0_257 = arith.constant 0 : index
      %404 = vector.load %arg32[%c1_255, %c0_256, %c0_257] : memref<4x8x8xbf16, #tpu.memory_space<vmem>>, vector<1x8x8xbf16>
      %405 = vector.shape_cast %404 : vector<1x8x8xbf16> to vector<8x8xbf16>
      %406 = vector.shape_cast %403 : vector<8x8xbf16> to vector<1x8x8xbf16>
      tpu.vector_store %arg32[%c1_255, %c0_256, %c0_257], %406 {strides = array<i32>} : memref<4x8x8xbf16, #tpu.memory_space<vmem>>, vector<1x8x8xbf16>,
      %c2_258 = arith.constant 2 : index
      %c0_259 = arith.constant 0 : index
      %c0_260 = arith.constant 0 : index
      %407 = vector.load %arg8[%c2_258, %c0_259, %c0_260] : memref<4x32x8xbf16, #tpu.memory_space<vmem>>, vector<1x32x8xbf16>
      %408 = vector.shape_cast %407 : vector<1x32x8xbf16> to vector<32x8xbf16>
      %cst_261 = arith.constant dense<0.000000e+00> : vector<8x8xf32>
      %409 = tpu.matmul %316, %408, %cst_261 {dimension_numbers = #tpu.dot_dimension_numbers<[1], [0], [0], [1], [0, 0, 1, 1], [], []>} : vector<8x32xbf16>, vector<32x8xbf16>, vector<8x8xf32> -> vector<8x8xf32>
      %c2_262 = arith.constant 2 : index
      %c0_263 = arith.constant 0 : index
      %c0_264 = arith.constant 0 : index
      %410 = vector.load %arg9[%c2_262, %c0_263, %c0_264] : memref<4x1x8xf32, #tpu.memory_space<vmem>>, vector<1x1x8xf32>
      %411 = vector.shape_cast %410 : vector<1x1x8xf32> to vector<1x8xf32>
      %412 = vector.broadcast %411 : vector<1x8xf32> to vector<8x8xf32>
      %413 = arith.addf %409, %412 : vector<8x8xf32>
      %414 = arith.truncf %413 : vector<8x8xf32> to vector<8x8xbf16>
      %c2_265 = arith.constant 2 : index
      %c0_266 = arith.constant 0 : index
      %c0_267 = arith.constant 0 : index
      %415 = vector.load %arg29[%c2_265, %c0_266, %c0_267] : memref<4x8x8xbf16, #tpu.memory_space<vmem>>, vector<1x8x8xbf16>
      %416 = vector.shape_cast %415 : vector<1x8x8xbf16> to vector<8x8xbf16>
      %417 = vector.shape_cast %414 : vector<8x8xbf16> to vector<1x8x8xbf16>
      tpu.vector_store %arg29[%c2_265, %c0_266, %c0_267], %417 {strides = array<i32>} : memref<4x8x8xbf16, #tpu.memory_space<vmem>>, vector<1x8x8xbf16>,
      %c2_268 = arith.constant 2 : index
      %c0_269 = arith.constant 0 : index
      %c0_270 = arith.constant 0 : index
      %418 = vector.load %arg10[%c2_268, %c0_269, %c0_270] : memref<4x32x8xbf16, #tpu.memory_space<vmem>>, vector<1x32x8xbf16>
      %419 = vector.shape_cast %418 : vector<1x32x8xbf16> to vector<32x8xbf16>
      %cst_271 = arith.constant dense<0.000000e+00> : vector<8x8xf32>
      %420 = tpu.matmul %316, %419, %cst_271 {dimension_numbers = #tpu.dot_dimension_numbers<[1], [0], [0], [1], [0, 0, 1, 1], [], []>} : vector<8x32xbf16>, vector<32x8xbf16>, vector<8x8xf32> -> vector<8x8xf32>
      %c2_272 = arith.constant 2 : index
      %c0_273 = arith.constant 0 : index
      %c0_274 = arith.constant 0 : index
      %421 = vector.load %arg11[%c2_272, %c0_273, %c0_274] : memref<4x1x8xf32, #tpu.memory_space<vmem>>, vector<1x1x8xf32>
      %422 = vector.shape_cast %421 : vector<1x1x8xf32> to vector<1x8xf32>
      %423 = vector.broadcast %422 : vector<1x8xf32> to vector<8x8xf32>
      %424 = arith.addf %420, %423 : vector<8x8xf32>
      %425 = arith.truncf %424 : vector<8x8xf32> to vector<8x8xbf16>
      %c2_275 = arith.constant 2 : index
      %c0_276 = arith.constant 0 : index
      %c0_277 = arith.constant 0 : index
      %426 = vector.load %arg30[%c2_275, %c0_276, %c0_277] : memref<4x8x8xbf16, #tpu.memory_space<vmem>>, vector<1x8x8xbf16>
      %427 = vector.shape_cast %426 : vector<1x8x8xbf16> to vector<8x8xbf16>
      %428 = vector.shape_cast %425 : vector<8x8xbf16> to vector<1x8x8xbf16>
      tpu.vector_store %arg30[%c2_275, %c0_276, %c0_277], %428 {strides = array<i32>} : memref<4x8x8xbf16, #tpu.memory_space<vmem>>, vector<1x8x8xbf16>,
      %c2_278 = arith.constant 2 : index
      %c0_279 = arith.constant 0 : index
      %c0_280 = arith.constant 0 : index
      %429 = vector.load %arg16[%c2_278, %c0_279, %c0_280] : memref<4x32x8xbf16, #tpu.memory_space<vmem>>, vector<1x32x8xbf16>
      %430 = vector.shape_cast %429 : vector<1x32x8xbf16> to vector<32x8xbf16>
      %cst_281 = arith.constant dense<0.000000e+00> : vector<8x8xf32>
      %431 = tpu.matmul %318, %430, %cst_281 {dimension_numbers = #tpu.dot_dimension_numbers<[1], [0], [0], [1], [0, 0, 1, 1], [], []>} : vector<8x32xbf16>, vector<32x8xbf16>, vector<8x8xf32> -> vector<8x8xf32>
      %c2_282 = arith.constant 2 : index
      %c0_283 = arith.constant 0 : index
      %c0_284 = arith.constant 0 : index
      %432 = vector.load %arg17[%c2_282, %c0_283, %c0_284] : memref<4x1x8xf32, #tpu.memory_space<vmem>>, vector<1x1x8xf32>
      %433 = vector.shape_cast %432 : vector<1x1x8xf32> to vector<1x8xf32>
      %434 = vector.broadcast %433 : vector<1x8xf32> to vector<8x8xf32>
      %435 = arith.addf %431, %434 : vector<8x8xf32>
      %436 = arith.truncf %435 : vector<8x8xf32> to vector<8x8xbf16>
      %c2_285 = arith.constant 2 : index
      %c0_286 = arith.constant 0 : index
      %c0_287 = arith.constant 0 : index
      %437 = vector.load %arg31[%c2_285, %c0_286, %c0_287] : memref<4x8x8xbf16, #tpu.memory_space<vmem>>, vector<1x8x8xbf16>
      %438 = vector.shape_cast %437 : vector<1x8x8xbf16> to vector<8x8xbf16>
      %439 = vector.shape_cast %436 : vector<8x8xbf16> to vector<1x8x8xbf16>
      tpu.vector_store %arg31[%c2_285, %c0_286, %c0_287], %439 {strides = array<i32>} : memref<4x8x8xbf16, #tpu.memory_space<vmem>>, vector<1x8x8xbf16>,
      %c2_288 = arith.constant 2 : index
      %c0_289 = arith.constant 0 : index
      %c0_290 = arith.constant 0 : index
      %440 = vector.load %arg18[%c2_288, %c0_289, %c0_290] : memref<4x32x8xbf16, #tpu.memory_space<vmem>>, vector<1x32x8xbf16>
      %441 = vector.shape_cast %440 : vector<1x32x8xbf16> to vector<32x8xbf16>
      %cst_291 = arith.constant dense<0.000000e+00> : vector<8x8xf32>
      %442 = tpu.matmul %318, %441, %cst_291 {dimension_numbers = #tpu.dot_dimension_numbers<[1], [0], [0], [1], [0, 0, 1, 1], [], []>} : vector<8x32xbf16>, vector<32x8xbf16>, vector<8x8xf32> -> vector<8x8xf32>
      %c2_292 = arith.constant 2 : index
      %c0_293 = arith.constant 0 : index
      %c0_294 = arith.constant 0 : index
      %443 = vector.load %arg19[%c2_292, %c0_293, %c0_294] : memref<4x1x8xf32, #tpu.memory_space<vmem>>, vector<1x1x8xf32>
      %444 = vector.shape_cast %443 : vector<1x1x8xf32> to vector<1x8xf32>
      %445 = vector.broadcast %444 : vector<1x8xf32> to vector<8x8xf32>
      %446 = arith.addf %442, %445 : vector<8x8xf32>
      %447 = arith.truncf %446 : vector<8x8xf32> to vector<8x8xbf16>
      %c2_295 = arith.constant 2 : index
      %c0_296 = arith.constant 0 : index
      %c0_297 = arith.constant 0 : index
      %448 = vector.load %arg32[%c2_295, %c0_296, %c0_297] : memref<4x8x8xbf16, #tpu.memory_space<vmem>>, vector<1x8x8xbf16>
      %449 = vector.shape_cast %448 : vector<1x8x8xbf16> to vector<8x8xbf16>
      %450 = vector.shape_cast %447 : vector<8x8xbf16> to vector<1x8x8xbf16>
      tpu.vector_store %arg32[%c2_295, %c0_296, %c0_297], %450 {strides = array<i32>} : memref<4x8x8xbf16, #tpu.memory_space<vmem>>, vector<1x8x8xbf16>,
      %c3_298 = arith.constant 3 : index
      %c0_299 = arith.constant 0 : index
      %c0_300 = arith.constant 0 : index
      %451 = vector.load %arg8[%c3_298, %c0_299, %c0_300] : memref<4x32x8xbf16, #tpu.memory_space<vmem>>, vector<1x32x8xbf16>
      %452 = vector.shape_cast %451 : vector<1x32x8xbf16> to vector<32x8xbf16>
      %cst_301 = arith.constant dense<0.000000e+00> : vector<8x8xf32>
      %453 = tpu.matmul %316, %452, %cst_301 {dimension_numbers = #tpu.dot_dimension_numbers<[1], [0], [0], [1], [0, 0, 1, 1], [], []>} : vector<8x32xbf16>, vector<32x8xbf16>, vector<8x8xf32> -> vector<8x8xf32>
      %c3_302 = arith.constant 3 : index
      %c0_303 = arith.constant 0 : index
      %c0_304 = arith.constant 0 : index
      %454 = vector.load %arg9[%c3_302, %c0_303, %c0_304] : memref<4x1x8xf32, #tpu.memory_space<vmem>>, vector<1x1x8xf32>
      %455 = vector.shape_cast %454 : vector<1x1x8xf32> to vector<1x8xf32>
      %456 = vector.broadcast %455 : vector<1x8xf32> to vector<8x8xf32>
      %457 = arith.addf %453, %456 : vector<8x8xf32>
      %458 = arith.truncf %457 : vector<8x8xf32> to vector<8x8xbf16>
      %c3_305 = arith.constant 3 : index
      %c0_306 = arith.constant 0 : index
      %c0_307 = arith.constant 0 : index
      %459 = vector.load %arg29[%c3_305, %c0_306, %c0_307] : memref<4x8x8xbf16, #tpu.memory_space<vmem>>, vector<1x8x8xbf16>
      %460 = vector.shape_cast %459 : vector<1x8x8xbf16> to vector<8x8xbf16>
      %461 = vector.shape_cast %458 : vector<8x8xbf16> to vector<1x8x8xbf16>
      tpu.vector_store %arg29[%c3_305, %c0_306, %c0_307], %461 {strides = array<i32>} : memref<4x8x8xbf16, #tpu.memory_space<vmem>>, vector<1x8x8xbf16>,
      %c3_308 = arith.constant 3 : index
      %c0_309 = arith.constant 0 : index
      %c0_310 = arith.constant 0 : index
      %462 = vector.load %arg10[%c3_308, %c0_309, %c0_310] : memref<4x32x8xbf16, #tpu.memory_space<vmem>>, vector<1x32x8xbf16>
      %463 = vector.shape_cast %462 : vector<1x32x8xbf16> to vector<32x8xbf16>
      %cst_311 = arith.constant dense<0.000000e+00> : vector<8x8xf32>
      %464 = tpu.matmul %316, %463, %cst_311 {dimension_numbers = #tpu.dot_dimension_numbers<[1], [0], [0], [1], [0, 0, 1, 1], [], []>} : vector<8x32xbf16>, vector<32x8xbf16>, vector<8x8xf32> -> vector<8x8xf32>
      %c3_312 = arith.constant 3 : index
      %c0_313 = arith.constant 0 : index
      %c0_314 = arith.constant 0 : index
      %465 = vector.load %arg11[%c3_312, %c0_313, %c0_314] : memref<4x1x8xf32, #tpu.memory_space<vmem>>, vector<1x1x8xf32>
      %466 = vector.shape_cast %465 : vector<1x1x8xf32> to vector<1x8xf32>
      %467 = vector.broadcast %466 : vector<1x8xf32> to vector<8x8xf32>
      %468 = arith.addf %464, %467 : vector<8x8xf32>
      %469 = arith.truncf %468 : vector<8x8xf32> to vector<8x8xbf16>
      %c3_315 = arith.constant 3 : index
      %c0_316 = arith.constant 0 : index
      %c0_317 = arith.constant 0 : index
      %470 = vector.load %arg30[%c3_315, %c0_316, %c0_317] : memref<4x8x8xbf16, #tpu.memory_space<vmem>>, vector<1x8x8xbf16>
      %471 = vector.shape_cast %470 : vector<1x8x8xbf16> to vector<8x8xbf16>
      %472 = vector.shape_cast %469 : vector<8x8xbf16> to vector<1x8x8xbf16>
      tpu.vector_store %arg30[%c3_315, %c0_316, %c0_317], %472 {strides = array<i32>} : memref<4x8x8xbf16, #tpu.memory_space<vmem>>, vector<1x8x8xbf16>,
      %c3_318 = arith.constant 3 : index
      %c0_319 = arith.constant 0 : index
      %c0_320 = arith.constant 0 : index
      %473 = vector.load %arg16[%c3_318, %c0_319, %c0_320] : memref<4x32x8xbf16, #tpu.memory_space<vmem>>, vector<1x32x8xbf16>
      %474 = vector.shape_cast %473 : vector<1x32x8xbf16> to vector<32x8xbf16>
      %cst_321 = arith.constant dense<0.000000e+00> : vector<8x8xf32>
      %475 = tpu.matmul %318, %474, %cst_321 {dimension_numbers = #tpu.dot_dimension_numbers<[1], [0], [0], [1], [0, 0, 1, 1], [], []>} : vector<8x32xbf16>, vector<32x8xbf16>, vector<8x8xf32> -> vector<8x8xf32>
      %c3_322 = arith.constant 3 : index
      %c0_323 = arith.constant 0 : index
      %c0_324 = arith.constant 0 : index
      %476 = vector.load %arg17[%c3_322, %c0_323, %c0_324] : memref<4x1x8xf32, #tpu.memory_space<vmem>>, vector<1x1x8xf32>
      %477 = vector.shape_cast %476 : vector<1x1x8xf32> to vector<1x8xf32>
      %478 = vector.broadcast %477 : vector<1x8xf32> to vector<8x8xf32>
      %479 = arith.addf %475, %478 : vector<8x8xf32>
      %480 = arith.truncf %479 : vector<8x8xf32> to vector<8x8xbf16>
      %c3_325 = arith.constant 3 : index
      %c0_326 = arith.constant 0 : index
      %c0_327 = arith.constant 0 : index
      %481 = vector.load %arg31[%c3_325, %c0_326, %c0_327] : memref<4x8x8xbf16, #tpu.memory_space<vmem>>, vector<1x8x8xbf16>
      %482 = vector.shape_cast %481 : vector<1x8x8xbf16> to vector<8x8xbf16>
      %483 = vector.shape_cast %480 : vector<8x8xbf16> to vector<1x8x8xbf16>
      tpu.vector_store %arg31[%c3_325, %c0_326, %c0_327], %483 {strides = array<i32>} : memref<4x8x8xbf16, #tpu.memory_space<vmem>>, vector<1x8x8xbf16>,
      %c3_328 = arith.constant 3 : index
      %c0_329 = arith.constant 0 : index
      %c0_330 = arith.constant 0 : index
      %484 = vector.load %arg18[%c3_328, %c0_329, %c0_330] : memref<4x32x8xbf16, #tpu.memory_space<vmem>>, vector<1x32x8xbf16>
      %485 = vector.shape_cast %484 : vector<1x32x8xbf16> to vector<32x8xbf16>
      %cst_331 = arith.constant dense<0.000000e+00> : vector<8x8xf32>
      %486 = tpu.matmul %318, %485, %cst_331 {dimension_numbers = #tpu.dot_dimension_numbers<[1], [0], [0], [1], [0, 0, 1, 1], [], []>} : vector<8x32xbf16>, vector<32x8xbf16>, vector<8x8xf32> -> vector<8x8xf32>
      %c3_332 = arith.constant 3 : index
      %c0_333 = arith.constant 0 : index
      %c0_334 = arith.constant 0 : index
      %487 = vector.load %arg19[%c3_332, %c0_333, %c0_334] : memref<4x1x8xf32, #tpu.memory_space<vmem>>, vector<1x1x8xf32>
      %488 = vector.shape_cast %487 : vector<1x1x8xf32> to vector<1x8xf32>
      %489 = vector.broadcast %488 : vector<1x8xf32> to vector<8x8xf32>
      %490 = arith.addf %486, %489 : vector<8x8xf32>
      %491 = arith.truncf %490 : vector<8x8xf32> to vector<8x8xbf16>
      %c3_335 = arith.constant 3 : index
      %c0_336 = arith.constant 0 : index
      %c0_337 = arith.constant 0 : index
      %492 = vector.load %arg32[%c3_335, %c0_336, %c0_337] : memref<4x8x8xbf16, #tpu.memory_space<vmem>>, vector<1x8x8xbf16>
      %493 = vector.shape_cast %492 : vector<1x8x8xbf16> to vector<8x8xbf16>
      %494 = vector.shape_cast %491 : vector<8x8xbf16> to vector<1x8x8xbf16>
      tpu.vector_store %arg32[%c3_335, %c0_336, %c0_337], %494 {strides = array<i32>} : memref<4x8x8xbf16, #tpu.memory_space<vmem>>, vector<1x8x8xbf16>,
    } else {
    }
    %c8_i32 = arith.constant 8 : i32
    %3 = arith.muli %arg1, %c8_i32 : i32
    %4 = tpu.assume_multiple %3, 8 : i32
    %c0 = arith.constant 0 : index
    %5 = arith.index_cast %4 : i32 to index
    %c0_1 = arith.constant 0 : index
    %6 = vector.load %arg2[%c0, %5, %c0_1] : memref<1x8x32xbf16, #tpu.memory_space<vmem>>, vector<1x8x32xbf16>
    %7 = vector.shape_cast %6 : vector<1x8x32xbf16> to vector<8x32xbf16>
    %c0_2 = arith.constant 0 : index
    %c0_3 = arith.constant 0 : index
    %8 = vector.load %arg4[%c0_2, %c0_3] : memref<8x8xi8, #tpu.memory_space<vmem>>, vector<8x8xi8>
    %9 = arith.sitofp %8 : vector<8x8xi8> to vector<8x8xf32>
    %cst = arith.constant 0.000000e+00 : f32
    %10 = vector.broadcast %cst : f32 to vector<8x8xf32>
    %11 = arith.cmpf oeq, %9, %10 : vector<8x8xf32>
    %cst_4 = arith.constant -1.000000e+09 : f32
    %cst_5 = arith.constant 0.000000e+00 : f32
    %12 = vector.broadcast %cst_4 : f32 to vector<8x8xf32>
    %13 = vector.broadcast %cst_5 : f32 to vector<8x8xf32>
    %14 = arith.select %11, %12, %13 : vector<8x8xi1>, vector<8x8xf32>
    %c0_6 = arith.constant 0 : index
    %c0_7 = arith.constant 0 : index
    %15 = vector.load %arg5[%c0_6, %c0_7] : memref<8x8xi8, #tpu.memory_space<vmem>>, vector<8x8xi8>
    %16 = arith.sitofp %15 : vector<8x8xi8> to vector<8x8xf32>
    %cst_8 = arith.constant 0.000000e+00 : f32
    %17 = vector.broadcast %cst_8 : f32 to vector<8x8xf32>
    %18 = arith.cmpf oeq, %16, %17 : vector<8x8xf32>
    %cst_9 = arith.constant -1.000000e+09 : f32
    %cst_10 = arith.constant 0.000000e+00 : f32
    %19 = vector.broadcast %cst_9 : f32 to vector<8x8xf32>
    %20 = vector.broadcast %cst_10 : f32 to vector<8x8xf32>
    %21 = arith.select %18, %19, %20 : vector<8x8xi1>, vector<8x8xf32>
    %c0_11 = arith.constant 0 : index
    %c0_12 = arith.constant 0 : index
    %22 = vector.load %arg6[%c0_11, %c0_12] : memref<32x32xbf16, #tpu.memory_space<vmem>>, vector<32x32xbf16>
    %cst_13 = arith.constant dense<0.000000e+00> : vector<8x32xf32>
    %23 = tpu.matmul %7, %22, %cst_13 {dimension_numbers = #tpu.dot_dimension_numbers<[1], [0], [0], [1], [0, 0, 1, 1], [], []>} : vector<8x32xbf16>, vector<32x32xbf16>, vector<8x32xf32> -> vector<8x32xf32>
    %c0_14 = arith.constant 0 : index
    %c0_15 = arith.constant 0 : index
    %24 = vector.load %arg7[%c0_14, %c0_15] : memref<1x32xf32, #tpu.memory_space<vmem>>, vector<1x32xf32>
    %25 = vector.broadcast %24 : vector<1x32xf32> to vector<8x32xf32>
    %26 = arith.addf %23, %25 : vector<8x32xf32>
    %27 = arith.truncf %26 : vector<8x32xf32> to vector<8x32xbf16>
    %28 = vector.extract_strided_slice %27 {offsets = [0, 0], sizes = [8, 8], strides = [1, 1]} : vector<8x32xbf16> to vector<8x8xbf16>
    %c0_16 = arith.constant 0 : index
    %c0_17 = arith.constant 0 : index
    %c0_18 = arith.constant 0 : index
    %29 = vector.load %arg29[%c0_16, %c0_17, %c0_18] : memref<4x8x8xbf16, #tpu.memory_space<vmem>>, vector<1x8x8xbf16>
    %30 = vector.shape_cast %29 : vector<1x8x8xbf16> to vector<8x8xbf16>
    %cst_19 = arith.constant dense<0.000000e+00> : vector<8x8xf32>
    %31 = tpu.matmul %28, %30, %cst_19 {dimension_numbers = #tpu.dot_dimension_numbers<[1], [1], [0], [0], [0, 0, 1, 0], [], []>} : vector<8x8xbf16>, vector<8x8xbf16>, vector<8x8xf32> -> vector<8x8xf32>
    %32 = arith.addf %31, %14 : vector<8x8xf32>
    %cst_20 = arith.constant dense<0xFF800000> : vector<8xf32>
    %33 = vector.multi_reduction <maximumf>, %32, %cst_20 [1] : vector<8x8xf32> to vector<8xf32>
    %34 = vector.shape_cast %33 : vector<8xf32> to vector<8x1xf32>
    %35 = vector.broadcast %34 : vector<8x1xf32> to vector<8x8xf32>
    %36 = arith.subf %32, %35 : vector<8x8xf32>
    %37 = math.exp %36 : vector<8x8xf32>
    %cst_21 = arith.constant dense<0.000000e+00> : vector<8xf32>
    %38 = vector.multi_reduction <add>, %37, %cst_21 [1] : vector<8x8xf32> to vector<8xf32>
    %39 = vector.shape_cast %38 : vector<8xf32> to vector<8x1xf32>
    %40 = tpu.reciprocal %39 {approx = true} : vector<8x1xf32> -> vector<8x1xf32>
    %41 = vector.broadcast %40 : vector<8x1xf32> to vector<8x8xf32>
    %42 = arith.mulf %37, %41 : vector<8x8xf32>
    %43 = arith.truncf %42 : vector<8x8xf32> to vector<8x8xbf16>
    %c0_22 = arith.constant 0 : index
    %c0_23 = arith.constant 0 : index
    %c0_24 = arith.constant 0 : index
    %44 = vector.load %arg30[%c0_22, %c0_23, %c0_24] : memref<4x8x8xbf16, #tpu.memory_space<vmem>>, vector<1x8x8xbf16>
    %45 = vector.shape_cast %44 : vector<1x8x8xbf16> to vector<8x8xbf16>
    %cst_25 = arith.constant dense<0.000000e+00> : vector<8x8xf32>
    %46 = tpu.matmul %43, %45, %cst_25 {dimension_numbers = #tpu.dot_dimension_numbers<[1], [0], [0], [1], [0, 0, 1, 1], [], []>} : vector<8x8xbf16>, vector<8x8xbf16>, vector<8x8xf32> -> vector<8x8xf32>
    %47 = arith.truncf %46 : vector<8x8xf32> to vector<8x8xbf16>
    %c0_26 = arith.constant 0 : index
    %c0_27 = arith.constant 0 : index
    %48 = vector.load %arg33[%c0_26, %c0_27] : memref<8x32xbf16, #tpu.memory_space<vmem>>, vector<8x8xbf16>
    tpu.vector_store %arg33[%c0_26, %c0_27], %47 {strides = array<i32>} : memref<8x32xbf16, #tpu.memory_space<vmem>>, vector<8x8xbf16>,
    %49 = vector.extract_strided_slice %27 {offsets = [0, 8], sizes = [8, 8], strides = [1, 1]} : vector<8x32xbf16> to vector<8x8xbf16>
    %c1 = arith.constant 1 : index
    %c0_28 = arith.constant 0 : index
    %c0_29 = arith.constant 0 : index
    %50 = vector.load %arg29[%c1, %c0_28, %c0_29] : memref<4x8x8xbf16, #tpu.memory_space<vmem>>, vector<1x8x8xbf16>
    %51 = vector.shape_cast %50 : vector<1x8x8xbf16> to vector<8x8xbf16>
    %cst_30 = arith.constant dense<0.000000e+00> : vector<8x8xf32>
    %52 = tpu.matmul %49, %51, %cst_30 {dimension_numbers = #tpu.dot_dimension_numbers<[1], [1], [0], [0], [0, 0, 1, 0], [], []>} : vector<8x8xbf16>, vector<8x8xbf16>, vector<8x8xf32> -> vector<8x8xf32>
    %53 = arith.addf %52, %14 : vector<8x8xf32>
    %cst_31 = arith.constant dense<0xFF800000> : vector<8xf32>
    %54 = vector.multi_reduction <maximumf>, %53, %cst_31 [1] : vector<8x8xf32> to vector<8xf32>
    %55 = vector.shape_cast %54 : vector<8xf32> to vector<8x1xf32>
    %56 = vector.broadcast %55 : vector<8x1xf32> to vector<8x8xf32>
    %57 = arith.subf %53, %56 : vector<8x8xf32>
    %58 = math.exp %57 : vector<8x8xf32>
    %cst_32 = arith.constant dense<0.000000e+00> : vector<8xf32>
    %59 = vector.multi_reduction <add>, %58, %cst_32 [1] : vector<8x8xf32> to vector<8xf32>
    %60 = vector.shape_cast %59 : vector<8xf32> to vector<8x1xf32>
    %61 = tpu.reciprocal %60 {approx = true} : vector<8x1xf32> -> vector<8x1xf32>
    %62 = vector.broadcast %61 : vector<8x1xf32> to vector<8x8xf32>
    %63 = arith.mulf %58, %62 : vector<8x8xf32>
    %64 = arith.truncf %63 : vector<8x8xf32> to vector<8x8xbf16>
    %c1_33 = arith.constant 1 : index
    %c0_34 = arith.constant 0 : index
    %c0_35 = arith.constant 0 : index
    %65 = vector.load %arg30[%c1_33, %c0_34, %c0_35] : memref<4x8x8xbf16, #tpu.memory_space<vmem>>, vector<1x8x8xbf16>
    %66 = vector.shape_cast %65 : vector<1x8x8xbf16> to vector<8x8xbf16>
    %cst_36 = arith.constant dense<0.000000e+00> : vector<8x8xf32>
    %67 = tpu.matmul %64, %66, %cst_36 {dimension_numbers = #tpu.dot_dimension_numbers<[1], [0], [0], [1], [0, 0, 1, 1], [], []>} : vector<8x8xbf16>, vector<8x8xbf16>, vector<8x8xf32> -> vector<8x8xf32>
    %68 = arith.truncf %67 : vector<8x8xf32> to vector<8x8xbf16>
    %c0_37 = arith.constant 0 : index
    %c8 = arith.constant 8 : index
    %69 = vector.load %arg33[%c0_37, %c8] : memref<8x32xbf16, #tpu.memory_space<vmem>>, vector<8x8xbf16>
    tpu.vector_store %arg33[%c0_37, %c8], %68 {strides = array<i32>} : memref<8x32xbf16, #tpu.memory_space<vmem>>, vector<8x8xbf16>,
    %70 = vector.extract_strided_slice %27 {offsets = [0, 16], sizes = [8, 8], strides = [1, 1]} : vector<8x32xbf16> to vector<8x8xbf16>
    %c2 = arith.constant 2 : index
    %c0_38 = arith.constant 0 : index
    %c0_39 = arith.constant 0 : index
    %71 = vector.load %arg29[%c2, %c0_38, %c0_39] : memref<4x8x8xbf16, #tpu.memory_space<vmem>>, vector<1x8x8xbf16>
    %72 = vector.shape_cast %71 : vector<1x8x8xbf16> to vector<8x8xbf16>
    %cst_40 = arith.constant dense<0.000000e+00> : vector<8x8xf32>
    %73 = tpu.matmul %70, %72, %cst_40 {dimension_numbers = #tpu.dot_dimension_numbers<[1], [1], [0], [0], [0, 0, 1, 0], [], []>} : vector<8x8xbf16>, vector<8x8xbf16>, vector<8x8xf32> -> vector<8x8xf32>
    %74 = arith.addf %73, %14 : vector<8x8xf32>
    %cst_41 = arith.constant dense<0xFF800000> : vector<8xf32>
    %75 = vector.multi_reduction <maximumf>, %74, %cst_41 [1] : vector<8x8xf32> to vector<8xf32>
    %76 = vector.shape_cast %75 : vector<8xf32> to vector<8x1xf32>
    %77 = vector.broadcast %76 : vector<8x1xf32> to vector<8x8xf32>
    %78 = arith.subf %74, %77 : vector<8x8xf32>
    %79 = math.exp %78 : vector<8x8xf32>
    %cst_42 = arith.constant dense<0.000000e+00> : vector<8xf32>
    %80 = vector.multi_reduction <add>, %79, %cst_42 [1] : vector<8x8xf32> to vector<8xf32>
    %81 = vector.shape_cast %80 : vector<8xf32> to vector<8x1xf32>
    %82 = tpu.reciprocal %81 {approx = true} : vector<8x1xf32> -> vector<8x1xf32>
    %83 = vector.broadcast %82 : vector<8x1xf32> to vector<8x8xf32>
    %84 = arith.mulf %79, %83 : vector<8x8xf32>
    %85 = arith.truncf %84 : vector<8x8xf32> to vector<8x8xbf16>
    %c2_43 = arith.constant 2 : index
    %c0_44 = arith.constant 0 : index
    %c0_45 = arith.constant 0 : index
    %86 = vector.load %arg30[%c2_43, %c0_44, %c0_45] : memref<4x8x8xbf16, #tpu.memory_space<vmem>>, vector<1x8x8xbf16>
    %87 = vector.shape_cast %86 : vector<1x8x8xbf16> to vector<8x8xbf16>
    %cst_46 = arith.constant dense<0.000000e+00> : vector<8x8xf32>
    %88 = tpu.matmul %85, %87, %cst_46 {dimension_numbers = #tpu.dot_dimension_numbers<[1], [0], [0], [1], [0, 0, 1, 1], [], []>} : vector<8x8xbf16>, vector<8x8xbf16>, vector<8x8xf32> -> vector<8x8xf32>
    %89 = arith.truncf %88 : vector<8x8xf32> to vector<8x8xbf16>
    %c0_47 = arith.constant 0 : index
    %c16 = arith.constant 16 : index
    %90 = vector.load %arg33[%c0_47, %c16] : memref<8x32xbf16, #tpu.memory_space<vmem>>, vector<8x8xbf16>
    tpu.vector_store %arg33[%c0_47, %c16], %89 {strides = array<i32>} : memref<8x32xbf16, #tpu.memory_space<vmem>>, vector<8x8xbf16>,
    %91 = vector.extract_strided_slice %27 {offsets = [0, 24], sizes = [8, 8], strides = [1, 1]} : vector<8x32xbf16> to vector<8x8xbf16>
    %c3 = arith.constant 3 : index
    %c0_48 = arith.constant 0 : index
    %c0_49 = arith.constant 0 : index
    %92 = vector.load %arg29[%c3, %c0_48, %c0_49] : memref<4x8x8xbf16, #tpu.memory_space<vmem>>, vector<1x8x8xbf16>
    %93 = vector.shape_cast %92 : vector<1x8x8xbf16> to vector<8x8xbf16>
    %cst_50 = arith.constant dense<0.000000e+00> : vector<8x8xf32>
    %94 = tpu.matmul %91, %93, %cst_50 {dimension_numbers = #tpu.dot_dimension_numbers<[1], [1], [0], [0], [0, 0, 1, 0], [], []>} : vector<8x8xbf16>, vector<8x8xbf16>, vector<8x8xf32> -> vector<8x8xf32>
    %95 = arith.addf %94, %14 : vector<8x8xf32>
    %cst_51 = arith.constant dense<0xFF800000> : vector<8xf32>
    %96 = vector.multi_reduction <maximumf>, %95, %cst_51 [1] : vector<8x8xf32> to vector<8xf32>
    %97 = vector.shape_cast %96 : vector<8xf32> to vector<8x1xf32>
    %98 = vector.broadcast %97 : vector<8x1xf32> to vector<8x8xf32>
    %99 = arith.subf %95, %98 : vector<8x8xf32>
    %100 = math.exp %99 : vector<8x8xf32>
    %cst_52 = arith.constant dense<0.000000e+00> : vector<8xf32>
    %101 = vector.multi_reduction <add>, %100, %cst_52 [1] : vector<8x8xf32> to vector<8xf32>
    %102 = vector.shape_cast %101 : vector<8xf32> to vector<8x1xf32>
    %103 = tpu.reciprocal %102 {approx = true} : vector<8x1xf32> -> vector<8x1xf32>
    %104 = vector.broadcast %103 : vector<8x1xf32> to vector<8x8xf32>
    %105 = arith.mulf %100, %104 : vector<8x8xf32>
    %106 = arith.truncf %105 : vector<8x8xf32> to vector<8x8xbf16>
    %c3_53 = arith.constant 3 : index
    %c0_54 = arith.constant 0 : index
    %c0_55 = arith.constant 0 : index
    %107 = vector.load %arg30[%c3_53, %c0_54, %c0_55] : memref<4x8x8xbf16, #tpu.memory_space<vmem>>, vector<1x8x8xbf16>
    %108 = vector.shape_cast %107 : vector<1x8x8xbf16> to vector<8x8xbf16>
    %cst_56 = arith.constant dense<0.000000e+00> : vector<8x8xf32>
    %109 = tpu.matmul %106, %108, %cst_56 {dimension_numbers = #tpu.dot_dimension_numbers<[1], [0], [0], [1], [0, 0, 1, 1], [], []>} : vector<8x8xbf16>, vector<8x8xbf16>, vector<8x8xf32> -> vector<8x8xf32>
    %110 = arith.truncf %109 : vector<8x8xf32> to vector<8x8xbf16>
    %c0_57 = arith.constant 0 : index
    %c24 = arith.constant 24 : index
    %111 = vector.load %arg33[%c0_57, %c24] : memref<8x32xbf16, #tpu.memory_space<vmem>>, vector<8x8xbf16>
    tpu.vector_store %arg33[%c0_57, %c24], %110 {strides = array<i32>} : memref<8x32xbf16, #tpu.memory_space<vmem>>, vector<8x8xbf16>,
    %c0_58 = arith.constant 0 : index
    %c0_59 = arith.constant 0 : index
    %112 = vector.load %arg33[%c0_58, %c0_59] : memref<8x32xbf16, #tpu.memory_space<vmem>>, vector<8x32xbf16>
    %c0_60 = arith.constant 0 : index
    %c0_61 = arith.constant 0 : index
    %113 = vector.load %arg12[%c0_60, %c0_61] : memref<32x32xbf16, #tpu.memory_space<vmem>>, vector<32x32xbf16>
    %cst_62 = arith.constant dense<0.000000e+00> : vector<8x32xf32>
    %114 = tpu.matmul %112, %113, %cst_62 {dimension_numbers = #tpu.dot_dimension_numbers<[1], [0], [0], [1], [0, 0, 1, 1], [], []>} : vector<8x32xbf16>, vector<32x32xbf16>, vector<8x32xf32> -> vector<8x32xf32>
    %c0_63 = arith.constant 0 : index
    %c0_64 = arith.constant 0 : index
    %115 = vector.load %arg13[%c0_63, %c0_64] : memref<1x32xf32, #tpu.memory_space<vmem>>, vector<1x32xf32>
    %116 = vector.broadcast %115 : vector<1x32xf32> to vector<8x32xf32>
    %117 = arith.addf %114, %116 : vector<8x32xf32>
    %118 = arith.extf %7 : vector<8x32xbf16> to vector<8x32xf32>
    %119 = arith.addf %118, %117 : vector<8x32xf32>
    %c0_65 = arith.constant 0 : index
    %c0_66 = arith.constant 0 : index
    %c0_67 = arith.constant 0 : index
    %120 = vector.load %arg26[%c0_65, %c0_66, %c0_67] : memref<3x1x32xf32, #tpu.memory_space<vmem>>, vector<1x1x32xf32>
    %121 = vector.shape_cast %120 : vector<1x1x32xf32> to vector<1x32xf32>
    %c0_68 = arith.constant 0 : index
    %c0_69 = arith.constant 0 : index
    %c0_70 = arith.constant 0 : index
    %122 = vector.load %arg27[%c0_68, %c0_69, %c0_70] : memref<3x1x32xf32, #tpu.memory_space<vmem>>, vector<1x1x32xf32>
    %123 = vector.shape_cast %122 : vector<1x1x32xf32> to vector<1x32xf32>
    %cst_71 = arith.constant dense<0.000000e+00> : vector<8xf32>
    %124 = vector.multi_reduction <add>, %119, %cst_71 [1] : vector<8x32xf32> to vector<8xf32>
    %125 = vector.shape_cast %124 : vector<8xf32> to vector<8x1xf32>
    %cst_72 = arith.constant 3.200000e+01 : f32
    %126 = vector.broadcast %cst_72 : f32 to vector<8x1xf32>
    %127 = arith.divf %125, %126 : vector<8x1xf32>
    %128 = vector.broadcast %127 : vector<8x1xf32> to vector<8x32xf32>
    %129 = arith.subf %119, %128 : vector<8x32xf32>
    %130 = arith.mulf %129, %129 : vector<8x32xf32>
    %cst_73 = arith.constant dense<0.000000e+00> : vector<8xf32>
    %131 = vector.multi_reduction <add>, %130, %cst_73 [1] : vector<8x32xf32> to vector<8xf32>
    %132 = vector.shape_cast %131 : vector<8xf32> to vector<8x1xf32>
    %cst_74 = arith.constant 3.200000e+01 : f32
    %133 = vector.broadcast %cst_74 : f32 to vector<8x1xf32>
    %134 = arith.divf %132, %133 : vector<8x1xf32>
    %135 = vector.broadcast %127 : vector<8x1xf32> to vector<8x32xf32>
    %136 = arith.subf %119, %135 : vector<8x32xf32>
    %cst_75 = arith.constant 9.99999974E-6 : f32
    %137 = vector.broadcast %cst_75 : f32 to vector<8x1xf32>
    %138 = arith.addf %134, %137 : vector<8x1xf32>
    %139 = math.rsqrt %138 : vector<8x1xf32>
    %140 = vector.broadcast %139 : vector<8x1xf32> to vector<8x32xf32>
    %141 = arith.mulf %136, %140 : vector<8x32xf32>
    %142 = vector.broadcast %121 : vector<1x32xf32> to vector<8x32xf32>
    %143 = arith.mulf %141, %142 : vector<8x32xf32>
    %144 = vector.broadcast %123 : vector<1x32xf32> to vector<8x32xf32>
    %145 = arith.addf %143, %144 : vector<8x32xf32>
    %146 = arith.truncf %145 : vector<8x32xf32> to vector<8x32xbf16>
    %c0_76 = arith.constant 0 : index
    %c0_77 = arith.constant 0 : index
    %147 = vector.load %arg14[%c0_76, %c0_77] : memref<32x32xbf16, #tpu.memory_space<vmem>>, vector<32x32xbf16>
    %cst_78 = arith.constant dense<0.000000e+00> : vector<8x32xf32>
    %148 = tpu.matmul %146, %147, %cst_78 {dimension_numbers = #tpu.dot_dimension_numbers<[1], [0], [0], [1], [0, 0, 1, 1], [], []>} : vector<8x32xbf16>, vector<32x32xbf16>, vector<8x32xf32> -> vector<8x32xf32>
    %c0_79 = arith.constant 0 : index
    %c0_80 = arith.constant 0 : index
    %149 = vector.load %arg15[%c0_79, %c0_80] : memref<1x32xf32, #tpu.memory_space<vmem>>, vector<1x32xf32>
    %150 = vector.broadcast %149 : vector<1x32xf32> to vector<8x32xf32>
    %151 = arith.addf %148, %150 : vector<8x32xf32>
    %152 = arith.truncf %151 : vector<8x32xf32> to vector<8x32xbf16>
    %153 = vector.extract_strided_slice %152 {offsets = [0, 0], sizes = [8, 8], strides = [1, 1]} : vector<8x32xbf16> to vector<8x8xbf16>
    %c0_81 = arith.constant 0 : index
    %c0_82 = arith.constant 0 : index
    %c0_83 = arith.constant 0 : index
    %154 = vector.load %arg31[%c0_81, %c0_82, %c0_83] : memref<4x8x8xbf16, #tpu.memory_space<vmem>>, vector<1x8x8xbf16>
    %155 = vector.shape_cast %154 : vector<1x8x8xbf16> to vector<8x8xbf16>
    %cst_84 = arith.constant dense<0.000000e+00> : vector<8x8xf32>
    %156 = tpu.matmul %153, %155, %cst_84 {dimension_numbers = #tpu.dot_dimension_numbers<[1], [1], [0], [0], [0, 0, 1, 0], [], []>} : vector<8x8xbf16>, vector<8x8xbf16>, vector<8x8xf32> -> vector<8x8xf32>
    %157 = arith.addf %156, %21 : vector<8x8xf32>
    %cst_85 = arith.constant dense<0xFF800000> : vector<8xf32>
    %158 = vector.multi_reduction <maximumf>, %157, %cst_85 [1] : vector<8x8xf32> to vector<8xf32>
    %159 = vector.shape_cast %158 : vector<8xf32> to vector<8x1xf32>
    %160 = vector.broadcast %159 : vector<8x1xf32> to vector<8x8xf32>
    %161 = arith.subf %157, %160 : vector<8x8xf32>
    %162 = math.exp %161 : vector<8x8xf32>
    %cst_86 = arith.constant dense<0.000000e+00> : vector<8xf32>
    %163 = vector.multi_reduction <add>, %162, %cst_86 [1] : vector<8x8xf32> to vector<8xf32>
    %164 = vector.shape_cast %163 : vector<8xf32> to vector<8x1xf32>
    %165 = tpu.reciprocal %164 {approx = true} : vector<8x1xf32> -> vector<8x1xf32>
    %166 = vector.broadcast %165 : vector<8x1xf32> to vector<8x8xf32>
    %167 = arith.mulf %162, %166 : vector<8x8xf32>
    %168 = arith.truncf %167 : vector<8x8xf32> to vector<8x8xbf16>
    %c0_87 = arith.constant 0 : index
    %c0_88 = arith.constant 0 : index
    %c0_89 = arith.constant 0 : index
    %169 = vector.load %arg32[%c0_87, %c0_88, %c0_89] : memref<4x8x8xbf16, #tpu.memory_space<vmem>>, vector<1x8x8xbf16>
    %170 = vector.shape_cast %169 : vector<1x8x8xbf16> to vector<8x8xbf16>
    %cst_90 = arith.constant dense<0.000000e+00> : vector<8x8xf32>
    %171 = tpu.matmul %168, %170, %cst_90 {dimension_numbers = #tpu.dot_dimension_numbers<[1], [0], [0], [1], [0, 0, 1, 1], [], []>} : vector<8x8xbf16>, vector<8x8xbf16>, vector<8x8xf32> -> vector<8x8xf32>
    %172 = arith.truncf %171 : vector<8x8xf32> to vector<8x8xbf16>
    %c0_91 = arith.constant 0 : index
    %c0_92 = arith.constant 0 : index
    %173 = vector.load %arg33[%c0_91, %c0_92] : memref<8x32xbf16, #tpu.memory_space<vmem>>, vector<8x8xbf16>
    tpu.vector_store %arg33[%c0_91, %c0_92], %172 {strides = array<i32>} : memref<8x32xbf16, #tpu.memory_space<vmem>>, vector<8x8xbf16>,
    %174 = vector.extract_strided_slice %152 {offsets = [0, 8], sizes = [8, 8], strides = [1, 1]} : vector<8x32xbf16> to vector<8x8xbf16>
    %c1_93 = arith.constant 1 : index
    %c0_94 = arith.constant 0 : index
    %c0_95 = arith.constant 0 : index
    %175 = vector.load %arg31[%c1_93, %c0_94, %c0_95] : memref<4x8x8xbf16, #tpu.memory_space<vmem>>, vector<1x8x8xbf16>
    %176 = vector.shape_cast %175 : vector<1x8x8xbf16> to vector<8x8xbf16>
    %cst_96 = arith.constant dense<0.000000e+00> : vector<8x8xf32>
    %177 = tpu.matmul %174, %176, %cst_96 {dimension_numbers = #tpu.dot_dimension_numbers<[1], [1], [0], [0], [0, 0, 1, 0], [], []>} : vector<8x8xbf16>, vector<8x8xbf16>, vector<8x8xf32> -> vector<8x8xf32>
    %178 = arith.addf %177, %21 : vector<8x8xf32>
    %cst_97 = arith.constant dense<0xFF800000> : vector<8xf32>
    %179 = vector.multi_reduction <maximumf>, %178, %cst_97 [1] : vector<8x8xf32> to vector<8xf32>
    %180 = vector.shape_cast %179 : vector<8xf32> to vector<8x1xf32>
    %181 = vector.broadcast %180 : vector<8x1xf32> to vector<8x8xf32>
    %182 = arith.subf %178, %181 : vector<8x8xf32>
    %183 = math.exp %182 : vector<8x8xf32>
    %cst_98 = arith.constant dense<0.000000e+00> : vector<8xf32>
    %184 = vector.multi_reduction <add>, %183, %cst_98 [1] : vector<8x8xf32> to vector<8xf32>
    %185 = vector.shape_cast %184 : vector<8xf32> to vector<8x1xf32>
    %186 = tpu.reciprocal %185 {approx = true} : vector<8x1xf32> -> vector<8x1xf32>
    %187 = vector.broadcast %186 : vector<8x1xf32> to vector<8x8xf32>
    %188 = arith.mulf %183, %187 : vector<8x8xf32>
    %189 = arith.truncf %188 : vector<8x8xf32> to vector<8x8xbf16>
    %c1_99 = arith.constant 1 : index
    %c0_100 = arith.constant 0 : index
    %c0_101 = arith.constant 0 : index
    %190 = vector.load %arg32[%c1_99, %c0_100, %c0_101] : memref<4x8x8xbf16, #tpu.memory_space<vmem>>, vector<1x8x8xbf16>
    %191 = vector.shape_cast %190 : vector<1x8x8xbf16> to vector<8x8xbf16>
    %cst_102 = arith.constant dense<0.000000e+00> : vector<8x8xf32>
    %192 = tpu.matmul %189, %191, %cst_102 {dimension_numbers = #tpu.dot_dimension_numbers<[1], [0], [0], [1], [0, 0, 1, 1], [], []>} : vector<8x8xbf16>, vector<8x8xbf16>, vector<8x8xf32> -> vector<8x8xf32>
    %193 = arith.truncf %192 : vector<8x8xf32> to vector<8x8xbf16>
    %c0_103 = arith.constant 0 : index
    %c8_104 = arith.constant 8 : index
    %194 = vector.load %arg33[%c0_103, %c8_104] : memref<8x32xbf16, #tpu.memory_space<vmem>>, vector<8x8xbf16>
    tpu.vector_store %arg33[%c0_103, %c8_104], %193 {strides = array<i32>} : memref<8x32xbf16, #tpu.memory_space<vmem>>, vector<8x8xbf16>,
    %195 = vector.extract_strided_slice %152 {offsets = [0, 16], sizes = [8, 8], strides = [1, 1]} : vector<8x32xbf16> to vector<8x8xbf16>
    %c2_105 = arith.constant 2 : index
    %c0_106 = arith.constant 0 : index
    %c0_107 = arith.constant 0 : index
    %196 = vector.load %arg31[%c2_105, %c0_106, %c0_107] : memref<4x8x8xbf16, #tpu.memory_space<vmem>>, vector<1x8x8xbf16>
    %197 = vector.shape_cast %196 : vector<1x8x8xbf16> to vector<8x8xbf16>
    %cst_108 = arith.constant dense<0.000000e+00> : vector<8x8xf32>
    %198 = tpu.matmul %195, %197, %cst_108 {dimension_numbers = #tpu.dot_dimension_numbers<[1], [1], [0], [0], [0, 0, 1, 0], [], []>} : vector<8x8xbf16>, vector<8x8xbf16>, vector<8x8xf32> -> vector<8x8xf32>
    %199 = arith.addf %198, %21 : vector<8x8xf32>
    %cst_109 = arith.constant dense<0xFF800000> : vector<8xf32>
    %200 = vector.multi_reduction <maximumf>, %199, %cst_109 [1] : vector<8x8xf32> to vector<8xf32>
    %201 = vector.shape_cast %200 : vector<8xf32> to vector<8x1xf32>
    %202 = vector.broadcast %201 : vector<8x1xf32> to vector<8x8xf32>
    %203 = arith.subf %199, %202 : vector<8x8xf32>
    %204 = math.exp %203 : vector<8x8xf32>
    %cst_110 = arith.constant dense<0.000000e+00> : vector<8xf32>
    %205 = vector.multi_reduction <add>, %204, %cst_110 [1] : vector<8x8xf32> to vector<8xf32>
    %206 = vector.shape_cast %205 : vector<8xf32> to vector<8x1xf32>
    %207 = tpu.reciprocal %206 {approx = true} : vector<8x1xf32> -> vector<8x1xf32>
    %208 = vector.broadcast %207 : vector<8x1xf32> to vector<8x8xf32>
    %209 = arith.mulf %204, %208 : vector<8x8xf32>
    %210 = arith.truncf %209 : vector<8x8xf32> to vector<8x8xbf16>
    %c2_111 = arith.constant 2 : index
    %c0_112 = arith.constant 0 : index
    %c0_113 = arith.constant 0 : index
    %211 = vector.load %arg32[%c2_111, %c0_112, %c0_113] : memref<4x8x8xbf16, #tpu.memory_space<vmem>>, vector<1x8x8xbf16>
    %212 = vector.shape_cast %211 : vector<1x8x8xbf16> to vector<8x8xbf16>
    %cst_114 = arith.constant dense<0.000000e+00> : vector<8x8xf32>
    %213 = tpu.matmul %210, %212, %cst_114 {dimension_numbers = #tpu.dot_dimension_numbers<[1], [0], [0], [1], [0, 0, 1, 1], [], []>} : vector<8x8xbf16>, vector<8x8xbf16>, vector<8x8xf32> -> vector<8x8xf32>
    %214 = arith.truncf %213 : vector<8x8xf32> to vector<8x8xbf16>
    %c0_115 = arith.constant 0 : index
    %c16_116 = arith.constant 16 : index
    %215 = vector.load %arg33[%c0_115, %c16_116] : memref<8x32xbf16, #tpu.memory_space<vmem>>, vector<8x8xbf16>
    tpu.vector_store %arg33[%c0_115, %c16_116], %214 {strides = array<i32>} : memref<8x32xbf16, #tpu.memory_space<vmem>>, vector<8x8xbf16>,
    %216 = vector.extract_strided_slice %152 {offsets = [0, 24], sizes = [8, 8], strides = [1, 1]} : vector<8x32xbf16> to vector<8x8xbf16>
    %c3_117 = arith.constant 3 : index
    %c0_118 = arith.constant 0 : index
    %c0_119 = arith.constant 0 : index
    %217 = vector.load %arg31[%c3_117, %c0_118, %c0_119] : memref<4x8x8xbf16, #tpu.memory_space<vmem>>, vector<1x8x8xbf16>
    %218 = vector.shape_cast %217 : vector<1x8x8xbf16> to vector<8x8xbf16>
    %cst_120 = arith.constant dense<0.000000e+00> : vector<8x8xf32>
    %219 = tpu.matmul %216, %218, %cst_120 {dimension_numbers = #tpu.dot_dimension_numbers<[1], [1], [0], [0], [0, 0, 1, 0], [], []>} : vector<8x8xbf16>, vector<8x8xbf16>, vector<8x8xf32> -> vector<8x8xf32>
    %220 = arith.addf %219, %21 : vector<8x8xf32>
    %cst_121 = arith.constant dense<0xFF800000> : vector<8xf32>
    %221 = vector.multi_reduction <maximumf>, %220, %cst_121 [1] : vector<8x8xf32> to vector<8xf32>
    %222 = vector.shape_cast %221 : vector<8xf32> to vector<8x1xf32>
    %223 = vector.broadcast %222 : vector<8x1xf32> to vector<8x8xf32>
    %224 = arith.subf %220, %223 : vector<8x8xf32>
    %225 = math.exp %224 : vector<8x8xf32>
    %cst_122 = arith.constant dense<0.000000e+00> : vector<8xf32>
    %226 = vector.multi_reduction <add>, %225, %cst_122 [1] : vector<8x8xf32> to vector<8xf32>
    %227 = vector.shape_cast %226 : vector<8xf32> to vector<8x1xf32>
    %228 = tpu.reciprocal %227 {approx = true} : vector<8x1xf32> -> vector<8x1xf32>
    %229 = vector.broadcast %228 : vector<8x1xf32> to vector<8x8xf32>
    %230 = arith.mulf %225, %229 : vector<8x8xf32>
    %231 = arith.truncf %230 : vector<8x8xf32> to vector<8x8xbf16>
    %c3_123 = arith.constant 3 : index
    %c0_124 = arith.constant 0 : index
    %c0_125 = arith.constant 0 : index
    %232 = vector.load %arg32[%c3_123, %c0_124, %c0_125] : memref<4x8x8xbf16, #tpu.memory_space<vmem>>, vector<1x8x8xbf16>
    %233 = vector.shape_cast %232 : vector<1x8x8xbf16> to vector<8x8xbf16>
    %cst_126 = arith.constant dense<0.000000e+00> : vector<8x8xf32>
    %234 = tpu.matmul %231, %233, %cst_126 {dimension_numbers = #tpu.dot_dimension_numbers<[1], [0], [0], [1], [0, 0, 1, 1], [], []>} : vector<8x8xbf16>, vector<8x8xbf16>, vector<8x8xf32> -> vector<8x8xf32>
    %235 = arith.truncf %234 : vector<8x8xf32> to vector<8x8xbf16>
    %c0_127 = arith.constant 0 : index
    %c24_128 = arith.constant 24 : index
    %236 = vector.load %arg33[%c0_127, %c24_128] : memref<8x32xbf16, #tpu.memory_space<vmem>>, vector<8x8xbf16>
    tpu.vector_store %arg33[%c0_127, %c24_128], %235 {strides = array<i32>} : memref<8x32xbf16, #tpu.memory_space<vmem>>, vector<8x8xbf16>,
    %c0_129 = arith.constant 0 : index
    %c0_130 = arith.constant 0 : index
    %237 = vector.load %arg33[%c0_129, %c0_130] : memref<8x32xbf16, #tpu.memory_space<vmem>>, vector<8x32xbf16>
    %c0_131 = arith.constant 0 : index
    %c0_132 = arith.constant 0 : index
    %238 = vector.load %arg20[%c0_131, %c0_132] : memref<32x32xbf16, #tpu.memory_space<vmem>>, vector<32x32xbf16>
    %cst_133 = arith.constant dense<0.000000e+00> : vector<8x32xf32>
    %239 = tpu.matmul %237, %238, %cst_133 {dimension_numbers = #tpu.dot_dimension_numbers<[1], [0], [0], [1], [0, 0, 1, 1], [], []>} : vector<8x32xbf16>, vector<32x32xbf16>, vector<8x32xf32> -> vector<8x32xf32>
    %c0_134 = arith.constant 0 : index
    %c0_135 = arith.constant 0 : index
    %240 = vector.load %arg21[%c0_134, %c0_135] : memref<1x32xf32, #tpu.memory_space<vmem>>, vector<1x32xf32>
    %241 = vector.broadcast %240 : vector<1x32xf32> to vector<8x32xf32>
    %242 = arith.addf %239, %241 : vector<8x32xf32>
    %243 = arith.addf %145, %242 : vector<8x32xf32>
    %c1_136 = arith.constant 1 : index
    %c0_137 = arith.constant 0 : index
    %c0_138 = arith.constant 0 : index
    %244 = vector.load %arg26[%c1_136, %c0_137, %c0_138] : memref<3x1x32xf32, #tpu.memory_space<vmem>>, vector<1x1x32xf32>
    %245 = vector.shape_cast %244 : vector<1x1x32xf32> to vector<1x32xf32>
    %c1_139 = arith.constant 1 : index
    %c0_140 = arith.constant 0 : index
    %c0_141 = arith.constant 0 : index
    %246 = vector.load %arg27[%c1_139, %c0_140, %c0_141] : memref<3x1x32xf32, #tpu.memory_space<vmem>>, vector<1x1x32xf32>
    %247 = vector.shape_cast %246 : vector<1x1x32xf32> to vector<1x32xf32>
    %cst_142 = arith.constant dense<0.000000e+00> : vector<8xf32>
    %248 = vector.multi_reduction <add>, %243, %cst_142 [1] : vector<8x32xf32> to vector<8xf32>
    %249 = vector.shape_cast %248 : vector<8xf32> to vector<8x1xf32>
    %cst_143 = arith.constant 3.200000e+01 : f32
    %250 = vector.broadcast %cst_143 : f32 to vector<8x1xf32>
    %251 = arith.divf %249, %250 : vector<8x1xf32>
    %252 = vector.broadcast %251 : vector<8x1xf32> to vector<8x32xf32>
    %253 = arith.subf %243, %252 : vector<8x32xf32>
    %254 = arith.mulf %253, %253 : vector<8x32xf32>
    %cst_144 = arith.constant dense<0.000000e+00> : vector<8xf32>
    %255 = vector.multi_reduction <add>, %254, %cst_144 [1] : vector<8x32xf32> to vector<8xf32>
    %256 = vector.shape_cast %255 : vector<8xf32> to vector<8x1xf32>
    %cst_145 = arith.constant 3.200000e+01 : f32
    %257 = vector.broadcast %cst_145 : f32 to vector<8x1xf32>
    %258 = arith.divf %256, %257 : vector<8x1xf32>
    %259 = vector.broadcast %251 : vector<8x1xf32> to vector<8x32xf32>
    %260 = arith.subf %243, %259 : vector<8x32xf32>
    %cst_146 = arith.constant 9.99999974E-6 : f32
    %261 = vector.broadcast %cst_146 : f32 to vector<8x1xf32>
    %262 = arith.addf %258, %261 : vector<8x1xf32>
    %263 = math.rsqrt %262 : vector<8x1xf32>
    %264 = vector.broadcast %263 : vector<8x1xf32> to vector<8x32xf32>
    %265 = arith.mulf %260, %264 : vector<8x32xf32>
    %266 = vector.broadcast %245 : vector<1x32xf32> to vector<8x32xf32>
    %267 = arith.mulf %265, %266 : vector<8x32xf32>
    %268 = vector.broadcast %247 : vector<1x32xf32> to vector<8x32xf32>
    %269 = arith.addf %267, %268 : vector<8x32xf32>
    %270 = arith.truncf %269 : vector<8x32xf32> to vector<8x32xbf16>
    %c0_147 = arith.constant 0 : index
    %c0_148 = arith.constant 0 : index
    %271 = vector.load %arg22[%c0_147, %c0_148] : memref<32x64xbf16, #tpu.memory_space<vmem>>, vector<32x64xbf16>
    %cst_149 = arith.constant dense<0.000000e+00> : vector<8x64xf32>
    %272 = tpu.matmul %270, %271, %cst_149 {dimension_numbers = #tpu.dot_dimension_numbers<[1], [0], [0], [1], [0, 0, 1, 1], [], []>} : vector<8x32xbf16>, vector<32x64xbf16>, vector<8x64xf32> -> vector<8x64xf32>
    %c0_150 = arith.constant 0 : index
    %c0_151 = arith.constant 0 : index
    %273 = vector.load %arg23[%c0_150, %c0_151] : memref<1x64xf32, #tpu.memory_space<vmem>>, vector<1x64xf32>
    %274 = vector.broadcast %273 : vector<1x64xf32> to vector<8x64xf32>
    %275 = arith.addf %272, %274 : vector<8x64xf32>
    %cst_152 = arith.constant 0.000000e+00 : f32
    %276 = vector.broadcast %cst_152 : f32 to vector<8x64xf32>
    %277 = arith.maximumf %275, %276 : vector<8x64xf32>
    %278 = arith.truncf %277 : vector<8x64xf32> to vector<8x64xbf16>
    %c0_153 = arith.constant 0 : index
    %c0_154 = arith.constant 0 : index
    %279 = vector.load %arg24[%c0_153, %c0_154] : memref<64x32xbf16, #tpu.memory_space<vmem>>, vector<64x32xbf16>
    %cst_155 = arith.constant dense<0.000000e+00> : vector<8x32xf32>
    %280 = tpu.matmul %278, %279, %cst_155 {dimension_numbers = #tpu.dot_dimension_numbers<[1], [0], [0], [1], [0, 0, 1, 1], [], []>} : vector<8x64xbf16>, vector<64x32xbf16>, vector<8x32xf32> -> vector<8x32xf32>
    %c0_156 = arith.constant 0 : index
    %c0_157 = arith.constant 0 : index
    %281 = vector.load %arg25[%c0_156, %c0_157] : memref<1x32xf32, #tpu.memory_space<vmem>>, vector<1x32xf32>
    %282 = vector.broadcast %281 : vector<1x32xf32> to vector<8x32xf32>
    %283 = arith.addf %280, %282 : vector<8x32xf32>
    %284 = arith.addf %269, %283 : vector<8x32xf32>
    %c2_158 = arith.constant 2 : index
    %c0_159 = arith.constant 0 : index
    %c0_160 = arith.constant 0 : index
    %285 = vector.load %arg26[%c2_158, %c0_159, %c0_160] : memref<3x1x32xf32, #tpu.memory_space<vmem>>, vector<1x1x32xf32>
    %286 = vector.shape_cast %285 : vector<1x1x32xf32> to vector<1x32xf32>
    %c2_161 = arith.constant 2 : index
    %c0_162 = arith.constant 0 : index
    %c0_163 = arith.constant 0 : index
    %287 = vector.load %arg27[%c2_161, %c0_162, %c0_163] : memref<3x1x32xf32, #tpu.memory_space<vmem>>, vector<1x1x32xf32>
    %288 = vector.shape_cast %287 : vector<1x1x32xf32> to vector<1x32xf32>
    %cst_164 = arith.constant dense<0.000000e+00> : vector<8xf32>
    %289 = vector.multi_reduction <add>, %284, %cst_164 [1] : vector<8x32xf32> to vector<8xf32>
    %290 = vector.shape_cast %289 : vector<8xf32> to vector<8x1xf32>
    %cst_165 = arith.constant 3.200000e+01 : f32
    %291 = vector.broadcast %cst_165 : f32 to vector<8x1xf32>
    %292 = arith.divf %290, %291 : vector<8x1xf32>
    %293 = vector.broadcast %292 : vector<8x1xf32> to vector<8x32xf32>
    %294 = arith.subf %284, %293 : vector<8x32xf32>
    %295 = arith.mulf %294, %294 : vector<8x32xf32>
    %cst_166 = arith.constant dense<0.000000e+00> : vector<8xf32>
    %296 = vector.multi_reduction <add>, %295, %cst_166 [1] : vector<8x32xf32> to vector<8xf32>
    %297 = vector.shape_cast %296 : vector<8xf32> to vector<8x1xf32>
    %cst_167 = arith.constant 3.200000e+01 : f32
    %298 = vector.broadcast %cst_167 : f32 to vector<8x1xf32>
    %299 = arith.divf %297, %298 : vector<8x1xf32>
    %300 = vector.broadcast %292 : vector<8x1xf32> to vector<8x32xf32>
    %301 = arith.subf %284, %300 : vector<8x32xf32>
    %cst_168 = arith.constant 9.99999974E-6 : f32
    %302 = vector.broadcast %cst_168 : f32 to vector<8x1xf32>
    %303 = arith.addf %299, %302 : vector<8x1xf32>
    %304 = math.rsqrt %303 : vector<8x1xf32>
    %305 = vector.broadcast %304 : vector<8x1xf32> to vector<8x32xf32>
    %306 = arith.mulf %301, %305 : vector<8x32xf32>
    %307 = vector.broadcast %286 : vector<1x32xf32> to vector<8x32xf32>
    %308 = arith.mulf %306, %307 : vector<8x32xf32>
    %309 = vector.broadcast %288 : vector<1x32xf32> to vector<8x32xf32>
    %310 = arith.addf %308, %309 : vector<8x32xf32>
    %311 = arith.truncf %310 : vector<8x32xf32> to vector<8x32xbf16>
    %c0_169 = arith.constant 0 : index
    %c0_170 = arith.constant 0 : index
    %c0_171 = arith.constant 0 : index
    %312 = vector.load %arg28[%c0_169, %c0_170, %c0_171] : memref<1x8x32xbf16, #tpu.memory_space<vmem>>, vector<1x8x32xbf16>
    %313 = vector.shape_cast %312 : vector<1x8x32xbf16> to vector<8x32xbf16>
    %314 = vector.shape_cast %311 : vector<8x32xbf16> to vector<1x8x32xbf16>
    tpu.vector_store %arg28[%c0_169, %c0_170, %c0_171], %314 {strides = array<i32>} : memref<1x8x32xbf16, #tpu.memory_space<vmem>>, vector<1x8x32xbf16>,
    return
  }
  func.func @transform_0(%arg0: i32, %arg1: i32) -> (i32, i32, i32) {
    %c0_i32 = arith.constant 0 : i32
    %c0_i32_0 = arith.constant 0 : i32
    %c0_i32_1 = arith.constant 0 : i32
    return %arg0, %c0_i32, %c0_i32_0 : i32, i32, i32
  }
  func.func @transform_1(%arg0: i32, %arg1: i32) -> (i32, i32, i32) {
    %c0_i32 = arith.constant 0 : i32
    %c0_i32_0 = arith.constant 0 : i32
    %c0_i32_1 = arith.constant 0 : i32
    return %arg0, %c0_i32, %c0_i32_0 : i32, i32, i32
  }
  func.func @transform_2(%arg0: i32, %arg1: i32) -> (i32, i32) {
    %c0_i32 = arith.constant 0 : i32
    %c0_i32_0 = arith.constant 0 : i32
    return %arg1, %c0_i32 : i32, i32
  }
  func.func @transform_3(%arg0: i32, %arg1: i32) -> (i32, i32) {
    %c0_i32 = arith.constant 0 : i32
    %c0_i32_0 = arith.constant 0 : i32
    return %arg1, %c0_i32 : i32, i32
  }
  func.func @transform_4(%arg0: i32, %arg1: i32) -> (i32, i32) {
    %c0_i32 = arith.constant 0 : i32
    %c0_i32_0 = arith.constant 0 : i32
    %c0_i32_1 = arith.constant 0 : i32
    return %c0_i32, %c0_i32_0 : i32, i32
  }
  func.func @transform_5(%arg0: i32, %arg1: i32) -> (i32, i32) {
    %c0_i32 = arith.constant 0 : i32
    %c0_i32_0 = arith.constant 0 : i32
    %c0_i32_1 = arith.constant 0 : i32
    return %c0_i32, %c0_i32_0 : i32, i32
  }
  func.func @transform_6(%arg0: i32, %arg1: i32) -> (i32, i32, i32) {
    %c0_i32 = arith.constant 0 : i32
    %c0_i32_0 = arith.constant 0 : i32
    %c0_i32_1 = arith.constant 0 : i32
    %c0_i32_2 = arith.constant 0 : i32
    return %c0_i32, %c0_i32_0, %c0_i32_1 : i32, i32, i32
  }
  func.func @transform_7(%arg0: i32, %arg1: i32) -> (i32, i32, i32) {
    %c0_i32 = arith.constant 0 : i32
    %c0_i32_0 = arith.constant 0 : i32
    %c0_i32_1 = arith.constant 0 : i32
    %c0_i32_2 = arith.constant 0 : i32
    return %c0_i32, %c0_i32_0, %c0_i32_1 : i32, i32, i32
  }
  func.func @transform_8(%arg0: i32, %arg1: i32) -> (i32, i32, i32) {
    %c0_i32 = arith.constant 0 : i32
    %c0_i32_0 = arith.constant 0 : i32
    %c0_i32_1 = arith.constant 0 : i32
    %c0_i32_2 = arith.constant 0 : i32
    return %c0_i32, %c0_i32_0, %c0_i32_1 : i32, i32, i32
  }
  func.func @transform_9(%arg0: i32, %arg1: i32) -> (i32, i32, i32) {
    %c0_i32 = arith.constant 0 : i32
    %c0_i32_0 = arith.constant 0 : i32
    %c0_i32_1 = arith.constant 0 : i32
    %c0_i32_2 = arith.constant 0 : i32
    return %c0_i32, %c0_i32_0, %c0_i32_1 : i32, i32, i32
  }
  func.func @transform_10(%arg0: i32, %arg1: i32) -> (i32, i32) {
    %c0_i32 = arith.constant 0 : i32
    %c0_i32_0 = arith.constant 0 : i32
    %c0_i32_1 = arith.constant 0 : i32
    return %c0_i32, %c0_i32_0 : i32, i32
  }
  func.func @transform_11(%arg0: i32, %arg1: i32) -> (i32, i32) {
    %c0_i32 = arith.constant 0 : i32
    %c0_i32_0 = arith.constant 0 : i32
    %c0_i32_1 = arith.constant 0 : i32
    return %c0_i32, %c0_i32_0 : i32, i32
  }
  func.func @transform_12(%arg0: i32, %arg1: i32) -> (i32, i32) {
    %c0_i32 = arith.constant 0 : i32
    %c0_i32_0 = arith.constant 0 : i32
    %c0_i32_1 = arith.constant 0 : i32
    return %c0_i32, %c0_i32_0 : i32, i32
  }
  func.func @transform_13(%arg0: i32, %arg1: i32) -> (i32, i32) {
    %c0_i32 = arith.constant 0 : i32
    %c0_i32_0 = arith.constant 0 : i32
    %c0_i32_1 = arith.constant 0 : i32
    return %c0_i32, %c0_i32_0 : i32, i32
  }
  func.func @transform_14(%arg0: i32, %arg1: i32) -> (i32, i32, i32) {
    %c0_i32 = arith.constant 0 : i32
    %c0_i32_0 = arith.constant 0 : i32
    %c0_i32_1 = arith.constant 0 : i32
    %c0_i32_2 = arith.constant 0 : i32
    return %c0_i32, %c0_i32_0, %c0_i32_1 : i32, i32, i32
  }
  func.func @transform_15(%arg0: i32, %arg1: i32) -> (i32, i32, i32) {
    %c0_i32 = arith.constant 0 : i32
    %c0_i32_0 = arith.constant 0 : i32
    %c0_i32_1 = arith.constant 0 : i32
    %c0_i32_2 = arith.constant 0 : i32
    return %c0_i32, %c0_i32_0, %c0_i32_1 : i32, i32, i32
  }
  func.func @transform_16(%arg0: i32, %arg1: i32) -> (i32, i32, i32) {
    %c0_i32 = arith.constant 0 : i32
    %c0_i32_0 = arith.constant 0 : i32
    %c0_i32_1 = arith.constant 0 : i32
    %c0_i32_2 = arith.constant 0 : i32
    return %c0_i32, %c0_i32_0, %c0_i32_1 : i32, i32, i32
  }
  func.func @transform_17(%arg0: i32, %arg1: i32) -> (i32, i32, i32) {
    %c0_i32 = arith.constant 0 : i32
    %c0_i32_0 = arith.constant 0 : i32
    %c0_i32_1 = arith.constant 0 : i32
    %c0_i32_2 = arith.constant 0 : i32
    return %c0_i32, %c0_i32_0, %c0_i32_1 : i32, i32, i32
  }
  func.func @transform_18(%arg0: i32, %arg1: i32) -> (i32, i32) {
    %c0_i32 = arith.constant 0 : i32
    %c0_i32_0 = arith.constant 0 : i32
    %c0_i32_1 = arith.constant 0 : i32
    return %c0_i32, %c0_i32_0 : i32, i32
  }
  func.func @transform_19(%arg0: i32, %arg1: i32) -> (i32, i32) {
    %c0_i32 = arith.constant 0 : i32
    %c0_i32_0 = arith.constant 0 : i32
    %c0_i32_1 = arith.constant 0 : i32
    return %c0_i32, %c0_i32_0 : i32, i32
  }
  func.func @transform_20(%arg0: i32, %arg1: i32) -> (i32, i32) {
    %c0_i32 = arith.constant 0 : i32
    %c0_i32_0 = arith.constant 0 : i32
    %c0_i32_1 = arith.constant 0 : i32
    return %c0_i32, %c0_i32_0 : i32, i32
  }
  func.func @transform_21(%arg0: i32, %arg1: i32) -> (i32, i32) {
    %c0_i32 = arith.constant 0 : i32
    %c0_i32_0 = arith.constant 0 : i32
    %c0_i32_1 = arith.constant 0 : i32
    return %c0_i32, %c0_i32_0 : i32, i32
  }
  func.func @transform_22(%arg0: i32, %arg1: i32) -> (i32, i32) {
    %c0_i32 = arith.constant 0 : i32
    %c0_i32_0 = arith.constant 0 : i32
    %c0_i32_1 = arith.constant 0 : i32
    return %c0_i32, %c0_i32_0 : i32, i32
  }
  func.func @transform_23(%arg0: i32, %arg1: i32) -> (i32, i32) {
    %c0_i32 = arith.constant 0 : i32
    %c0_i32_0 = arith.constant 0 : i32
    %c0_i32_1 = arith.constant 0 : i32
    return %c0_i32, %c0_i32_0 : i32, i32
  }
  func.func @transform_24(%arg0: i32, %arg1: i32) -> (i32, i32, i32) {
    %c0_i32 = arith.constant 0 : i32
    %c0_i32_0 = arith.constant 0 : i32
    %c0_i32_1 = arith.constant 0 : i32
    %c0_i32_2 = arith.constant 0 : i32
    return %c0_i32, %c0_i32_0, %c0_i32_1 : i32, i32, i32
  }
  func.func @transform_25(%arg0: i32, %arg1: i32) -> (i32, i32, i32) {
    %c0_i32 = arith.constant 0 : i32
    %c0_i32_0 = arith.constant 0 : i32
    %c0_i32_1 = arith.constant 0 : i32
    %c0_i32_2 = arith.constant 0 : i32
    return %c0_i32, %c0_i32_0, %c0_i32_1 : i32, i32, i32
  }
  func.func @transform_26(%arg0: i32, %arg1: i32) -> (i32, i32, i32) {
    %c0_i32 = arith.constant 0 : i32
    %c0_i32_0 = arith.constant 0 : i32
    return %arg0, %arg1, %c0_i32 : i32, i32, i32
  }
}

</mosaic_0001>

<bundles_post_ra>
// kernel: tpu_custom_call.1
= control target key start
LH: loop header
LB: loop body
LE: loop exit
PB: predicated region body
PF: predicated region fallthrough
CT: control target
= control target key end

     0   :  { %s3635_s0 = inlined_call_operand.vmem [shape: bf16[2,8,32], index: 0, kind: input, shape index: {}]   ;;  %s3636_s1 = inlined_call_operand.vmem [shape: bf16[2,8,32], index: 1, kind: input, shape index: {}]   ;;  %s3637_s2 = inlined_call_operand.vmem [shape: s8[8,8], index: 2, kind: input, shape index: {}]   ;;  %s3638_s3 = inlined_call_operand.vmem [shape: s8[8,8], index: 3, kind: input, shape index: {}]   ;;  %s3639_s4 = inlined_call_operand.vmem [shape: bf16[32,32], index: 4, kind: input, shape index: {}]   ;;  %s3640_s5 = inlined_call_operand.vmem [shape: f32[1,32], index: 5, kind: input, shape index: {}]   ;;  %s3641_s6 = inlined_call_operand.vmem [shape: bf16[4,32,8], index: 6, kind: input, shape index: {}]   ;;  %s3642_s7 = inlined_call_operand.vmem [shape: f32[4,1,8], index: 7, kind: input, shape index: {}]   ;;  %s3643_s8 = inlined_call_operand.vmem [shape: bf16[4,32,8], index: 8, kind: input, shape index: {}]   ;;  %s3644_s9 = inlined_call_operand.vmem [shape: f32[4,1,8], index: 9, kind: input, shape index: {}]   ;;  %s3645_s10 = inlined_call_operand.vmem [shape: bf16[32,32], index: 10, kind: input, shape index: {}]   ;;  %s3646_s11 = inlined_call_operand.vmem [shape: f32[1,32], index: 11, kind: input, shape index: {}]   ;;  %s3647_s12 = inlined_call_operand.vmem [shape: bf16[32,32], index: 12, kind: input, shape index: {}]   ;;  %s3648_s13 = inlined_call_operand.vmem [shape: f32[1,32], index: 13, kind: input, shape index: {}]   ;;  %s3649_s14 = inlined_call_operand.vmem [shape: bf16[4,32,8], index: 14, kind: input, shape index: {}]   ;;  %s3650_s15 = inlined_call_operand.vmem [shape: f32[4,1,8], index: 15, kind: input, shape index: {}]   ;;  %s3651_s16 = inlined_call_operand.vmem [shape: bf16[4,32,8], index: 16, kind: input, shape index: {}]   ;;  %s3652_s17 = inlined_call_operand.vmem [shape: f32[4,1,8], index: 17, kind: input, shape index: {}]   ;;  %s3653_s18 = inlined_call_operand.vmem [shape: bf16[32,32], index: 18, kind: input, shape index: {}]   ;;  %s3654_s19 = inlined_call_operand.vmem [shape: f32[1,32], index: 19, kind: input, shape index: {}]   ;;  %s3655_s20 = inlined_call_operand.vmem [shape: bf16[32,64], index: 20, kind: input, shape index: {}]   ;;  %s3656_s21 = inlined_call_operand.vmem [shape: f32[1,64], index: 21, kind: input, shape index: {}]   ;;  %s3657_s22 = inlined_call_operand.vmem [shape: bf16[64,32], index: 22, kind: input, shape index: {}]   ;;  %s3658_s23 = inlined_call_operand.vmem [shape: f32[1,32], index: 23, kind: input, shape index: {}]   ;;  %s3659_s24 = inlined_call_operand.vmem [shape: f32[3,1,32], index: 24, kind: input, shape index: {}]   ;;  %s3660_s25 = inlined_call_operand.vmem [shape: f32[3,1,32], index: 25, kind: input, shape index: {}]   ;;  %s3661_s26 = inlined_call_operand.hbm [shape: bf16[2,8,32], index: 26, kind: output, shape index: {}]  }
   0x1   :  { %3687 = sst [smem:[#allocation20_spill]] %s3635_s0 }
   0x2   :  { %3688 = sst [smem:[#allocation21_spill]] %s3636_s1 }
   0x3   :  { %3689 = sst [smem:[#allocation22_spill]] %s3637_s2 }
   0x4   :  { %3690 = sst [smem:[#allocation23_spill]] %s3638_s3 }
   0x5   :  { %3691 = sst [smem:[#allocation24_spill]] %s3639_s4 }
   0x6   :  { %3692 = sst [smem:[#allocation25_spill]] %s3640_s5 }
   0x7   :  { %3693 = sst [smem:[#allocation26_spill]] %s3641_s6 }
   0x8   :  { %3694 = sst [smem:[#allocation27_spill]] %s3642_s7 }
   0x9   :  { %3695 = sst [smem:[#allocation28_spill]] %s3643_s8 }
   0xa   :  { %3696 = sst [smem:[#allocation29_spill]] %s3644_s9 }
   0xb   :  { %3697 = sst [smem:[#allocation30_spill]] %s3645_s10 }
   0xc   :  { %3698 = sst [smem:[#allocation31_spill]] %s3646_s11 }
   0xd   :  { %3699 = sst [smem:[#allocation32_spill]] %s3647_s12 }
   0xe   :  { %3700 = sst [smem:[#allocation33_spill]] %s3648_s13 }
   0xf   :  { %3701 = sst [smem:[#allocation34_spill]] %s3661_s26 }
  0x10   :  { %31 = vsyncpa [#allocation8], 0 }
  0x11   :  { %33 = vsyncpa [#allocation8 + $0x1], 0  ;;  %s3156_s27 = smov 0   ;;  %s3158_s3 = smov 0  }
  0x12   :  { %s3160_s7 = smov 0   ;;  %s3162_s28 = smov 0  }
  0x13   :  { %s3164_s8 = smov 0   ;;  %s3166_s4 = smov 0  }
  0x14 LB: > { %3702 = sst [smem:[#allocation10_spill]] %s2991_s27  ;;  %s2456_s29 = sadd.s32 4294967295, %s3011_s4   ;;  %s3011_s4 = sphi %s3166_s4, %s39_s4   ;;  %s3007_s8 = sphi %s3164_s8, %s3748_s8   ;;  %s3003_s28 = sphi %s3162_s28, %s3747_s28   ;;  %s2999_s7 = sphi %s3160_s7, %s3746_s7   ;;  %s2995_s3 = sphi %s3158_s3, %s3745_s3   ;;  %s2991_s27 = sphi %s3156_s27, %s3744_s27  }
  0x15   : > { %3703 = sst [smem:[#allocation11_spill]] %s2995_s3  ;;  %s2457_s0 = sadd.s32 4294967294, %s3011_s4  }
  0x16   : > { %3704 = sst [smem:[#allocation12_spill]] %s2999_s7  ;;  %s51_s9 = sadd.s32 1, %s3007_s8 }
  0x17   : > { %3705 = sst [smem:[#allocation13_spill]] %s3003_s28  ;;  %s626_s30 = sadd.s32 1, %s2999_s7 }
  0x18   : > { %3706 = sst [smem:[#allocation14_spill]] %s3007_s8  ;;  %p53_p0 = scmp.ge.s32.totalorder %s51_s9, 2 }
  0x19   : > { %3707 = sst [smem:[#allocation15_spill]] %s3011_s4  ;;  %p636_p1 = scmp.ne.s32.totalorder %s2999_s7, %s2995_s3 }
  0x1a   : > { %p637_p2 = scmp.eq.s32.totalorder %s2456_s29, 1  ;;  %p642_p3 = scmp.ne.s32.totalorder %s2995_s3, %s2991_s27 }
  0x1b   : > { %s3750_s9 = smov (%p53_p0, %s51_s9), 0  ;;  %p643_p5 = scmp.eq.s32.totalorder %s2457_s0, 1 }
  0x1c   : > { %3708 = sst [smem:[#allocation16_spill]] %s3750_s9  ;;  %p3196_p4 = por %p637_p2, %p636_p1 }
  0x1d   : > { %s621_s5 = ssub.s32 %s3007_s8, %s3750_s9  ;;  %p2462_p6 = scmp.ge.s32.totalorder %s3011_s4, 1 }
  0x1e   : > { %s3709_s2 = scalar_select %p3196_p4, 1, 0 }
  0x1f   : > { %p624_p7 = scmp.eq.s32.totalorder %s621_s5, 0  ;;  %p3203_p8 = por %p643_p5, %p642_p3 }
  0x20   : > { %3710 = sst [smem:[#allocation17_spill]] %s3709_s2  ;;  %p755_p9 = scmp.lt.s32.totalorder %s3011_s4, 3 }
  0x21   : > { %s3711_s10 = scalar_select %p3203_p8, 1, 0 }
  0x22   : > { %s3209_s6 = scalar_select %p624_p7, %s2999_s7, %s626_s30  }
  0x23   : > { %3712 = sst [smem:[#allocation18_spill]] %s3711_s10  ;;  %p756_p10 = pnand %p2462_p6, %p755_p9 }
  0x24   : > { %3713 = sst [smem:[#allocation19_spill]] %s3209_s6  ;;  %p836_p11 = scmp.lt.s32.totalorder (!%p756_p10), %s3003_s28, 1 }
  0x25   : > { %759 = sbr.rel (%p756_p10) target bundleno = 3267 (0xcc3), region = 124  ;;  %s3714_s27 = sld [smem:[#allocation26_spill]] (!%p756_p10) }
  0x26   : > { %s3717_s4 = sld [smem:[#allocation24_spill]] (!%p756_p10)  ;;  %s3014_s9 = smov (!%p756_p10), 120  }
  0x27   : > { %s3719_s2 = sld [smem:[#allocation28_spill]] (!%p756_p10)  ;;  %s3682_s0 = smov (!%p756_p10), 112  }
  0x28   : > { %s3721_s3 = sld [smem:[#allocation21_spill]] (!%p756_p10) }
  0x29   : > { %s3724_s1 = sld [smem:[#allocation29_spill]] (!%p756_p10) }
  0x2a   : > { %s3219_s5 = scalar_select %p836_p11, %s3003_s28, 1  ;;  %vm879_vm0 = vcmask 261120   ;;  %v2763_v11 = vld [vmem:[%s3651_s16 + $0x8] sm:$0xff]  ;;  %v2762_v14 = vld [vmem:[%s3651_s16] sm:$0xff]  ;;  %v2771_v20 = vld [vmem:[%s3651_s16 + $0x18] sm:$0xff]  ;;  %vm897_vm1 = vcmask 60416  }
  0x2b   : > { %s3715_s26 = smov %s3714_s27  ;;  %v2757_v0 = vld [vmem:[%s3714_s27 + $0x8] sm:$0xff]  ;;  %s3716_s27 = sld [smem:[#allocation20_spill]]  ;;  %998 = vmatpush.bf16.msra.mxu3 %v2763_v11  ;;  %v2770_v23 = vld [vmem:[%s3651_s16 + $0x10] sm:$0xff]  ;;  %v2778_v26 = vld [vmem:[%s3651_s16 + $0x20] sm:$0xff]  ;;  %vm1518_vm2 = vcmask 64512   ;;  %vm1554_vm3 = vcmask 1043456  }
  0x2c   : > { %v2756_v1 = vld [vmem:[%s3715_s26] sm:$0xff]  ;;  %889 = vmatpush.bf16.msra.mxu0 %v2757_v0  ;;  %v2765_v2 = vld [vmem:[%s3715_s26 + $0x18] sm:$0xff]  ;;  %s3676_s30 = sshll.u32 %s3219_s5, 2  ;;  %v2764_v3 = vld [vmem:[%s3715_s26 + $0x10] sm:$0xff]  ;;  %s3718_s10 = smov %s3717_s4  ;;  %vm1638_vm5 = vcmask 126016   ;;  %vm1701_vm6 = vcmask 191616  }
  0x2d   : > { %v2773_v5 = vld [vmem:[%s3715_s26 + $0x28] sm:$0xff]  ;;  %v2772_v6 = vld [vmem:[%s3715_s26 + $0x20] sm:$0xff]  ;;  %v2781_v7 = vld [vmem:[%s3715_s26 + $0x38] sm:$0xff]  ;;  %s3720_s8 = sshll.u32 %s3219_s5, 2  ;;  %s3681_s5 = smov 104   ;;  %vm1764_vm7 = vcmask 257216  }
  0x2e   : > { %v2780_v8 = vld [vmem:[%s3715_s26 + $0x30] sm:$0xff]  ;;  %v2789_v9 = vld [vmem:[%s3717_s4 + $0x8] sm:$0xff]  ;;  %v2788_v12 = vld [vmem:[%s3718_s10] sm:$0xff]  ;;  %s843_s28 = scalar_lea.vmem %s3721_s3, %s3720_s8  ;;  %s3722_s3 = sld [smem:[#allocation27_spill]] }
  0x2f   : > { %v2759_v10 = vld [vmem:[%s3719_s2 + $0x8] sm:$0xff]  ;;  %v2758_v13 = vld [vmem:[%s3719_s2] sm:$0xff]  ;;  %v2767_v15 = vld [vmem:[%s3719_s2 + $0x18] sm:$0xff]  ;;  %999 = vmatpush.bf16.msra.mxu3 %v2762_v14  ;;  %s3726_s7 = sld [smem:[#allocation22_spill]]  ;;  %s3683_s4 = smov 24  }
  0x30   : > { %890 = vmatpush.bf16.msra.mxu0 %v2756_v1  ;;  %925 = vmatpush.bf16.msra.mxu1 %v2759_v10  ;;  %v3277_v16 = vld [vmem:[%s843_s28] sm:$0xf]  ;;  %v2766_v17 = vld [vmem:[%s3719_s2 + $0x10] sm:$0xff]  ;;  %v2775_v19 = vld [vmem:[%s3719_s2 + $0x28] sm:$0xff]  ;;  %s3727_s12 = sld [smem:[#allocation32_spill]] }
  0x31   : > { %s3230_s6 = scalar_lea.vmem %s3716_s27, %s3676_s30  ;;  %v2774_v21 = vld [vmem:[%s3719_s2 + $0x20] sm:$0xff]  ;;  %v2783_v22 = vld [vmem:[%s3719_s2 + $0x38] sm:$0xff]  ;;  %v2782_v24 = vld [vmem:[%s3719_s2 + $0x30] sm:$0xff]  ;;  %s3730_s11 = sld [smem:[#allocation31_spill]] }
  0x32   : > { %v857_v4 = vld [vmem:[%s3230_s6] sm:$0xf]  ;;  %2501 = vmatmul.msk.bf16.vlgmr.msra.gmra.mxu3 %vm879_vm0, %v3277_v16  ;;  %v2779_v25 = vld [vmem:[%s3651_s16 + $0x28] sm:$0xff]  ;;  %v2787_v27 = vld [vmem:[%s3651_s16 + $0x38] sm:$0xff]  ;;  %s3731_s13 = sld [smem:[#allocation33_spill]] }
  0x33   : > { %2474 = vmatmul.msk.bf16.vlgmr.msra.gmra.mxu0 %vm879_vm0, %v857_v4  ;;  %v3288_v18 = vld [vmem:[%s3230_s6] sm:$0xf]  ;;  %1149 = vmatpush.bf16.msrb.mxu3 %v2771_v20  ;;  %v2786_v28 = vld [vmem:[%s3651_s16 + $0x30] sm:$0xff]  ;;  %s3737_s28 = sld [smem:[#allocation13_spill]] }
  0x34   : > { %1035 = vmatpush.bf16.msrb.mxu0 %v2765_v2  ;;  %926 = vmatpush.bf16.msra.mxu1 %v2758_v13  ;;  %s3723_s29 = smov %s3722_s3  ;;  %v2865_v29 = vld [vmem:[%s3722_s3] ss:$0 sm:$0xff]  ;;  %s3725_s3 = sld [smem:[#allocation25_spill]]  ;;  %v2871_v63 = vld [vmem:[%s3724_s1 + $0x1] ss:$0 sm:$0xff] }
  0x35   : > { %v2866_v36 = vld [vmem:[%s3723_s29 + $0x1] ss:$0 sm:$0xff]  ;;  %v2867_v43 = vld [vmem:[%s3723_s29 + $0x2] ss:$0 sm:$0xff]  ;;  %v2868_v50 = vld [vmem:[%s3723_s29 + $0x3] ss:$0 sm:$0xff] }
  0x36   : > { %v2870_v53 = vld [vmem:[%s3724_s1] ss:$0 sm:$0xff]  ;;  %v2872_v10 = vld [vmem:[%s3724_s1 + $0x2] ss:$0 sm:$0xff] }
  0x37   : > { %2483 = vmatmul.msk.bf16.vlgmr.msra.gmra.mxu1 %vm879_vm0, %v857_v4  ;;  %1150 = vmatpush.bf16.msrb.mxu3 %v2770_v23 }
  0x38   : > { %1036 = vmatpush.bf16.msrb.mxu0 %v2764_v3  ;;  %1073 = vmatpush.bf16.msrb.mxu1 %v2767_v15  ;;  %v2873_v15 = vld [vmem:[%s3724_s1 + $0x3] ss:$0 sm:$0xff] }
  0x3a   : > { %v2869_v62 = vld [vmem:[%s3725_s3] ss:$0 sm:$0xff]  ;;  %s3728_s3 = sld [smem:[#allocation30_spill]] }
  0x3b   : > { %1301 = vmatpush.bf16.msra.mxu3 %v2779_v25  ;;  %v2760_v25 = vld [vmem:[%s3649_s14] sm:$0xff] }
  0x3c   : > { %1187 = vmatpush.bf16.msra.mxu0 %v2773_v5  ;;  %1074 = vmatpush.bf16.msrb.mxu1 %v2766_v17 }
  0x3f   : > { %1302 = vmatpush.bf16.msra.mxu3 %v2778_v26  ;;  %v2769_v26 = vld [vmem:[%s3649_s14 + $0x18] sm:$0xff] }
  0x40   : > { %1188 = vmatpush.bf16.msra.mxu0 %v2772_v6  ;;  %1225 = vmatpush.bf16.msra.mxu1 %v2775_v19  ;;  %s3729_s30 = smov %s3728_s3 }
  0x42   : > { %2557 = vmatmul.msk.bf16.vlgmr.msrb.gmra.mxu3 %vm879_vm0, %v3277_v16 }
  0x43   : > { %2515 = vmatmul.msk.bf16.vlgmr.msrb.gmra.mxu0 %vm879_vm0, %v857_v4  ;;  %1453 = vmatpush.bf16.msrb.mxu3 %v2787_v27 }
  0x44   : > { %1339 = vmatpush.bf16.msrb.mxu0 %v2781_v7  ;;  %1226 = vmatpush.bf16.msra.mxu1 %v2774_v21 }
  0x47   : > { %2529 = vmatmul.msk.bf16.vlgmr.msrb.gmra.mxu1 %vm879_vm0, %v857_v4  ;;  %1454 = vmatpush.bf16.msrb.mxu3 %v2786_v28 }
  0x48   : > { %1340 = vmatpush.bf16.msrb.mxu0 %v2780_v8  ;;  %1377 = vmatpush.bf16.msrb.mxu1 %v2783_v22  ;;  %v2761_v22 = vld [vmem:[%s3649_s14 + $0x8] sm:$0xff] }
  0x49   : > { %963 = vmatpush.bf16.msra.mxu2 %v2761_v22 }
  0x4c   : > { %1378 = vmatpush.bf16.msrb.mxu1 %v2782_v24  ;;  %v2874_v24 = vld [vmem:[%s3652_s17] ss:$0 sm:$0xff] }
  0x4d   : > { %964 = vmatpush.bf16.msra.mxu2 %v2760_v25 }
  0x50   : > { %2492 = vmatmul.msk.bf16.vlgmr.msra.gmra.mxu2 %vm879_vm0, %v3277_v16 }
  0x51   : > { %1111 = vmatpush.bf16.msrb.mxu2 %v2769_v26 }
  0x52   : > { %2613 = vmatmul.msk.bf16.vlgmr.msra.gmra.mxu3 %vm879_vm0, %v3277_v16 }
  0x53   : > { %2571 = vmatmul.msk.bf16.vlgmr.msra.gmra.mxu0 %vm879_vm0, %v857_v4 }
  0x54   : > { %1509 = vmatpush.bf16.msra.mxu0 %v2789_v9 }
  0x57   : > { %2585 = vmatmul.msk.bf16.vlgmr.msra.gmra.mxu1 %vm879_vm0, %v857_v4 }
  0x58   : > { %1510 = vmatpush.bf16.msra.mxu0 %v2788_v12 }
  0x62   : > { %2669 = vmatmul.msk.bf16.vlgmr.msrb.gmra.mxu3 %vm879_vm0, %v3277_v16 }
  0x63   : > { %2627 = vmatmul.msk.bf16.vlgmr.msrb.gmra.mxu0 %vm879_vm0, %v857_v4 }
  0x67   : > { %2641 = vmatmul.msk.bf16.vlgmr.msrb.gmra.mxu1 %vm879_vm0, %v857_v4 }
  0x73   : > { %2678 = vmatmul.msk.bf16.vlgmr.msra.gmra.mxu0 %vm879_vm0, %v3288_v18 }
  0xb0   : > { %v892_v30 = vpop.f32.mrf.mxu0 }
  0xb1   : > { %v893_v31 = vadd.f32 %v2865_v29, %v892_v30  ;;  %v1469_v29 = vld [vmem:[%s3726_s7] sm:$0x3]  ;;  %v2768_v30 = vld [vmem:[%s3649_s14 + $0x10] sm:$0xff]  ;;  %s3732_s7 = smov 112  }
  0xb2   : > { %1112 = vmatpush.bf16.msrb.mxu2 %v2768_v30 }
  0xb3   : > { %v896_v32 = vpack.c.bf16 %v893_v31, %v893_v31  ;;  %v2777_v31 = vld [vmem:[%s3649_s14 + $0x28] sm:$0xff] }
  0xb4   : > { %v928_v54 = vpop.f32.mrf.mxu1 }
  0xb5   : > { %898 = vst.msk [vmem:[#allocation2] sm:$0xf] %vm897_vm1, %v896_v32  ;;  %v929_v56 = vadd.f32 %v2870_v53, %v928_v54  ;;  %v1001_v23 = vpop.f32.mrf.mxu3  ;;  %2543 = vmatmul.msk.bf16.vlgmr.msrb.gmra.mxu2 %vm879_vm0, %v3277_v16  ;;  %v2876_v54 = vld [vmem:[%s3652_s17 + $0x2] ss:$0 sm:$0xff] }
  0xb6   : > { %v1002_v27 = vadd.f32 %v2874_v24, %v1001_v23  ;;  %1263 = vmatpush.bf16.msra.mxu2 %v2777_v31  ;;  %v2878_v24 = vld [vmem:[%s3650_s15] ss:$0 sm:$0xff] }
  0xb7   : > { %v932_v57 = vpack.c.bf16 %v929_v56, %v929_v56 }
  0xb8   : > { %v894_v33 = vpop.f32.mrf.mxu0  ;;  %v1005_v28 = vpack.c.bf16 %v1002_v27, %v1002_v27 }
  0xb9   : > { %933 = vst.msk [vmem:[#allocation3] sm:$0xf] %vm897_vm1, %v932_v57  ;;  %v1470_v33 = vunpack.c.0.s8 %v1469_v29 }
  0xba   : > { %1006 = vst.msk [vmem:[#allocation5] sm:$0xf] %vm897_vm1, %v1005_v28 }
  0xbc   : > { %v1517_v34 = vld [vmem:[#allocation2] sm:$0xf]  ;;  %v930_v59 = vpop.f32.mrf.mxu1 }
  0xbd   : > { %v1523_v35 = vsel %vm1518_vm2, %v1517_v34, 0  ;;  %v1003_v32 = vpop.f32.mrf.mxu3 }
  0xbe   : > { %1532 = vmatpush.bf16.xpose.msra.mxu1 %v1523_v35 }
  0xc0   : > { %v1038_v37 = vpop.f32.mrf.mxu0 }
  0xc1   : > { %v1039_v38 = vadd.f32 %v2866_v36, %v1038_v37  ;;  %v2776_v36 = vld [vmem:[%s3649_s14 + $0x20] sm:$0xff]  ;;  %v1471_v37 = vcvt.s32.f32 %v1470_v33 }
  0xc2   : > { %1264 = vmatpush.bf16.msra.mxu2 %v2776_v36 }
  0xc3   : > { %v1042_v39 = vpack.c.bf16 %v1039_v38, %v1039_v38  ;;  %v2875_v38 = vld [vmem:[%s3652_s17 + $0x1] ss:$0 sm:$0xff]  ;;  %vm1472_vm4 = vcmp.eq.f32.partialorder %v1471_v37, 0.0 }
  0xc4   : > { %v1076_v2 = vpop.f32.mrf.mxu1 }
  0xc5   : > { %1044 = vst.msk [vmem:[#allocation2 + $0x4] sm:$0xf] %vm897_vm1, %v1042_v39  ;;  %v1077_v3 = vadd.f32 %v2871_v63, %v1076_v2  ;;  %2599 = vmatmul.msk.bf16.vlgmr.msra.gmra.mxu2 %vm879_vm0, %v3277_v16  ;;  %v2877_v63 = vld [vmem:[%s3652_s17 + $0x3] ss:$0 sm:$0xff] }
  0xc7   : > { %v1080_v5 = vpack.c.bf16 %v1077_v3, %v1077_v3 }
  0xc8   : > { %v1040_v40 = vpop.f32.mrf.mxu0 }
  0xc9   : > { %1082 = vst.msk [vmem:[#allocation3 + $0x4] sm:$0xf] %vm897_vm1, %v1080_v5  ;;  %v1152_v40 = vpop.f32.mrf.mxu3 }
  0xcc   : > { %v1575_v41 = vld [vmem:[#allocation2 + $0x4] sm:$0xf]  ;;  %v1078_v9 = vpop.f32.mrf.mxu1 }
  0xcd   : > { %v1585_v42 = vsel %vm1518_vm2, %v1575_v41, 0  ;;  %v1153_v41 = vadd.f32 %v2875_v38, %v1152_v40 }
  0xce   : > { %1594 = vmatpush.bf16.xpose.msra.mxu3 %v1585_v42 }
  0xcf   : > { %v1156_v42 = vpack.c.bf16 %v1153_v41, %v1153_v41 }
  0xd0   : > { %v1190_v44 = vpop.f32.mrf.mxu0  ;;  %v1613_v34 = vld [vmem:[#allocation3 + $0x4] sm:$0xf] }
  0xd1   : > { %v1191_v45 = vadd.f32 %v2867_v43, %v1190_v44  ;;  %v1618_v35 = vsel %vm1554_vm3, %v1613_v34, 0  ;;  %v3016_v43 = vmov 0.0   ;;  %1158 = vst.msk [vmem:[#allocation5 + $0x4] sm:$0xf] %vm897_vm1, %v1156_v42  ;;  %v2879_v34 = vld [vmem:[%s3650_s15 + $0x1] ss:$0 sm:$0xff] }
  0xd2   : > { %1627 = vmatpush.bf16.msrb.mxu0 %v1618_v35  ;;  %v1473_v44 = vsel %vm1472_vm4, -1e+09, %v3016_v43 }
  0xd3   : > { %v1194_v46 = vpack.c.bf16 %v1191_v45, %v1191_v45  ;;  %v966_v25 = vpop.f32.mrf.mxu2 }
  0xd4   : > { %v1228_v11 = vpop.f32.mrf.mxu1  ;;  %v967_v26 = vadd.f32 %v2878_v24, %v966_v25 }
  0xd5   : > { %1196 = vst.msk [vmem:[#allocation2 + $0x8] sm:$0xf] %vm897_vm1, %v1194_v46  ;;  %v1229_v12 = vadd.f32 %v2872_v10, %v1228_v11  ;;  %v2785_v46 = vld [vmem:[%s3649_s14 + $0x38] sm:$0xff] }
  0xd6   : > { %1415 = vmatpush.bf16.msrb.mxu2 %v2785_v46  ;;  %v970_v29 = vpack.c.bf16 %v967_v26, %v967_v26 }
  0xd7   : > { %v1232_v13 = vpack.c.bf16 %v1229_v12, %v1229_v12 }
  0xd8   : > { %v1192_v47 = vpop.f32.mrf.mxu0  ;;  %971 = vst.msk [vmem:[#allocation4] sm:$0xf] %vm897_vm1, %v970_v29 }
  0xd9   : > { %1234 = vst.msk [vmem:[#allocation3 + $0x8] sm:$0xf] %vm897_vm1, %v1232_v13 }
  0xdb   : > { %v968_v31 = vpop.f32.mrf.mxu2 }
  0xdc   : > { %v1641_v48 = vld [vmem:[#allocation2 + $0x8] sm:$0xf]  ;;  %v1230_v14 = vpop.f32.mrf.mxu1 }
  0xdd   : > { %v1648_v49 = vsel %vm1518_vm2, %v1641_v48, 0 }
  0xde   : > { %1657 = vmatpush.bf16.xpose.msrb.mxu1 %v1648_v49  ;;  %v1154_v49 = vpop.f32.mrf.mxu3 }
  0xe0   : > { %v1342_v51 = vpop.f32.mrf.mxu0  ;;  %v1676_v3 = vld [vmem:[#allocation3 + $0x8] sm:$0xf] }
  0xe1   : > { %v1343_v52 = vadd.f32 %v2868_v50, %v1342_v51  ;;  %v2784_v51 = vld [vmem:[%s3649_s14 + $0x30] sm:$0xff] }
  0xe2   : > { %1416 = vmatpush.bf16.msrb.mxu2 %v2784_v51 }
  0xe3   : > { %v1346_v55 = vpack.c.bf16 %v1343_v52, %v1343_v52 }
  0xe4   : > { %v1380_v17 = vpop.f32.mrf.mxu1 }
  0xe5   : > { %1348 = vst.msk [vmem:[#allocation2 + $0xc] sm:$0xf] %vm897_vm1, %v1346_v55  ;;  %v1381_v19 = vadd.f32 %v2873_v15, %v1380_v17  ;;  %2655 = vmatmul.msk.bf16.vlgmr.msrb.gmra.mxu2 %vm879_vm0, %v3277_v16 }
  0xe6   : > { %v1304_v57 = vpop.f32.mrf.mxu3 }
  0xe7   : > { %v1384_v20 = vpack.c.bf16 %v1381_v19, %v1381_v19 }
  0xe8   : > { %v1344_v58 = vpop.f32.mrf.mxu0 }
  0xe9   : > { %1386 = vst.msk [vmem:[#allocation3 + $0xc] sm:$0xf] %vm897_vm1, %v1384_v20  ;;  %v1305_v58 = vadd.f32 %v2876_v54, %v1304_v57 }
  0xeb   : > { %v1308_v59 = vpack.c.bf16 %v1305_v58, %v1305_v58 }
  0xec   : > { %v1704_v60 = vld [vmem:[#allocation2 + $0xc] sm:$0xf]  ;;  %v1382_v21 = vpop.f32.mrf.mxu1 }
  0xed   : > { %v1711_v61 = vsel %vm1518_vm2, %v1704_v60, 0  ;;  %v1550_v60 = vld [vmem:[#allocation3] sm:$0xf]  ;;  %1310 = vst.msk [vmem:[#allocation5 + $0x8] sm:$0xf] %vm897_vm1, %v1308_v59  ;;  %v2793_v59 = vld [vmem:[%s3727_s12 + $0x8] sm:$0xff] }
  0xee   : > { %1720 = vmatpush.bf16.xpose.msrb.mxu3 %v1711_v61  ;;  %v1556_v61 = vsel %vm1554_vm3, %v1550_v60, 0 }
  0xef   : > { %1565 = vmatpush.bf16.msra.mxu2 %v1556_v61  ;;  %v2881_v61 = vld [vmem:[%s3650_s15 + $0x3] ss:$0 sm:$0xff] }
  0xf0   : > { %v1512_v0 = vpop.f32.mrf.mxu0  ;;  %v1739_v52 = vld [vmem:[#allocation3 + $0xc] sm:$0xf] }
  0xf1   : > { %v1513_v1 = vadd.f32 %v2869_v62, %v1512_v0  ;;  %v1744_v53 = vsel %vm1554_vm3, %v1739_v52, 0  ;;  %v1306_v62 = vpop.f32.mrf.mxu3  ;;  %v2880_v52 = vld [vmem:[%s3650_s15 + $0x2] ss:$0 sm:$0xff] }
  0xf2   : > { %1753 = vmatpush.bf16.msra.mxu0 %v1744_v53  ;;  %v2792_v62 = vld [vmem:[%s3727_s12] sm:$0xff] }
  0xf3   : > { %v1516_v4 = vpack.c.bf16 %v1513_v1, %v1513_v1 }
  0xf4   : > { %v2037_v26 = vld [vmem:[#allocation5 + $0x8] sm:$0xf] }
  0xf5   : > { %v1577_v6 = vunpack.c.l.b16 %v1516_v4  ;;  %2679 = vmatmul.msk.bf16.vlgmr.msra.gmra.mxu1 %vm1518_vm2, %v1516_v4  ;;  %v1681_v4 = vsel %vm1554_vm3, %v1676_v3, 0 }
  0xf6   : > { %1690 = vmatpush.bf16.msrb.mxu2 %v1681_v4  ;;  %v1882_v4 = vld [vmem:[#allocation4] sm:$0xf] }
  0xf7   : > { %v1578_v7 = vpack.c.b16 %v1577_v6, %v1577_v6 }
  0xf8   : > { %v1514_v8 = vpop.f32.mrf.mxu0 }
  0xf9   : > { %1705 = vrot.lane.b32.xlu1 %v1578_v7, %s3681_s5  ;;  %1579 = vrot.lane.b32.xlu0 %v1578_v7, %s3014_s9  ;;  %v1456_v0 = vpop.f32.mrf.mxu3  ;;  %s3017_s5 = smov 8  }
  0xfa   : > { %v1457_v1 = vadd.f32 %v2877_v63, %v1456_v0 }
  0xfc   : > { %v1460_v2 = vpack.c.bf16 %v1457_v1, %v1457_v1 }
  0xfe   : > { %1462 = vst.msk [vmem:[#allocation5 + $0xc] sm:$0xf] %vm897_vm1, %v1460_v2 }
 0x101   : > { %1642 = vrot.lane.b32.xlu0 %v1578_v7, %s3682_s0  ;;  %v1458_v5 = vpop.f32.mrf.mxu3  ;;  %s3018_s0 = smov 16  }
 0x102   : > { %v2791_v5 = vld [vmem:[%s3728_s3 + $0x8] sm:$0xff]  ;;  %s3733_s3 = smov 104  }
 0x103   : > { %1796 = vmatpush.bf16.msra.mxu1 %v2791_v5 }
 0x138   : > { %v1114_v38 = vpop.f32.mrf.mxu2 }
 0x16b   : > { %v1580_v39 = vpop.permute.xlu0 %1579  ;;  %v1706_v56 = vpop.permute.xlu1 %1705 }
 0x16c   : > { %2681 = vmatmul.msk.bf16.vlgmr.msra.gmra.mxu3 %vm1518_vm2, %v1580_v39  ;;  %v1115_v39 = vadd.f32 %v2879_v34, %v1114_v38 }
 0x16e   : > { %v1118_v42 = vpack.c.bf16 %v1115_v39, %v1115_v39 }
 0x170   : > { %1120 = vst.msk [vmem:[#allocation4 + $0x4] sm:$0xf] %vm897_vm1, %v1118_v42 }
 0x172   : > { %v1534_v45 = vpop.f32.mrf.mxu1 }
 0x173   : > { %v1535_v47 = vadd.f32 %v1534_v45, %v1473_v44  ;;  %v1643_v48 = vpop.permute.xlu0 %1642 }
 0x174   : > { %2683 = vmatmul.msk.bf16.vlgmr.msrb.gmra.mxu1 %vm1518_vm2, %v1643_v48  ;;  %v1116_v48 = vpop.f32.mrf.mxu2 }
 0x175   : > { %v1538_v50 = vsel %vm1518_vm2, %v1535_v47, -inf  ;;  %v2882_v48 = vld [vmem:[%s3730_s11] ss:$0 sm:$0xff] }
 0x176   : > { %1539 = vmax.xlane.f32.xlu1 %v1538_v50 }
 0x17a   : > { %v1536_v55 = vpop.f32.mrf.mxu1 }
 0x17c   : > { %2685 = vmatmul.msk.bf16.vlgmr.msrb.gmra.mxu3 %vm1518_vm2, %v1706_v56  ;;  %v1266_v55 = vpop.f32.mrf.mxu2 }
 0x17d   : > { %v1267_v56 = vadd.f32 %v2880_v52, %v1266_v55  ;;  %v3020_v55 = vmov 32.0  }
 0x17f   : > { %v1270_v57 = vpack.c.bf16 %v1267_v56, %v1267_v56 }
 0x181   : > { %1272 = vst.msk [vmem:[#allocation4 + $0x8] sm:$0xf] %vm897_vm1, %v1270_v57 }
 0x184   : > { %v1268_v58 = vpop.f32.mrf.mxu2 }
 0x18c   : > { %v1418_v60 = vpop.f32.mrf.mxu2 }
 0x18d   : > { %v1419_v63 = vadd.f32 %v2881_v61, %v1418_v60 }
 0x18f   : > { %v1422_v0 = vpack.c.bf16 %v1419_v63, %v1419_v63 }
 0x191   : > { %1424 = vst.msk [vmem:[#allocation4 + $0xc] sm:$0xf] %vm897_vm1, %v1422_v0 }
 0x194   : > { %v1420_v1 = vpop.f32.mrf.mxu2 }
 0x1e9   : > { %v1540_v6 = vpop.xlane.xlu1 %1539 }
 0x1ea   : > { %v1541_v9 = vsub.f32 %v1535_v47, %v1540_v6 }
 0x1ec   : > { %v1542_v12 = vmul.f32 1.442695, %v1541_v9  ;;  %v1937_v9 = vld [vmem:[#allocation4 + $0x4] sm:$0xf] }
 0x1ee   : > { %2893 = vpow2.f32 %v1542_v12  ;;  %v2790_v12 = vld [vmem:[%s3729_s30] sm:$0xff] }
 0x1ef   : > { %v1596_v7 = vpop.f32.mrf.mxu3  ;;  %1797 = vmatpush.bf16.msra.mxu1 %v2790_v12 }
 0x1f0   : > { %v1597_v8 = vadd.f32 %v1596_v7, %v1473_v44 }
 0x1f1   : > { %v1659_v10 = vpop.f32.mrf.mxu1 }
 0x1f2   : > { %v1600_v11 = vsel %vm1518_vm2, %v1597_v8, -inf  ;;  %v1660_v13 = vadd.f32 %v1659_v10, %v1473_v44  ;;  %v2002_v10 = vld [vmem:[#allocation4 + $0x8] sm:$0xf] }
 0x1f3   : > { %1601 = vmax.xlane.f32.xlu2 %v1600_v11  ;;  %v1914_v11 = vld [vmem:[#allocation5] sm:$0xf] }
 0x1f4   : > { %v1663_v17 = vsel %vm1518_vm2, %v1660_v13, -inf  ;;  %v2894_v19 = vpop.eup %2893 }
 0x1f5   : > { %v1544_v22 = vsel %vm1518_vm2, %v2894_v19, 0.0 }
 0x1f7   : > { %v1598_v14 = vpop.f32.mrf.mxu3 }
 0x1f9   : > { %v1661_v15 = vpop.f32.mrf.mxu1 }
 0x1fa   : > { %v1947_v15 = vsel %vm1518_vm2, %v1937_v9, 0 }
 0x1fb   : > { %1664 = vmax.xlane.f32.xlu2 %v1663_v17  ;;  %v1919_v17 = vsel %vm1554_vm3, %v1914_v11, 0  ;;  %1956 = vmatpush.bf16.xpose.msrb.mxu1 %v1947_v15  ;;  %v2883_v11 = vld [vmem:[%s3659_s24] ss:$0 sm:$0xff] }
 0x1ff   : > { %v1722_v20 = vpop.f32.mrf.mxu3 }
 0x200   : > { %v1723_v16 = vadd.f32 %v1722_v20, %v1473_v44 }
 0x202   : > { %v1726_v21 = vsel %vm1518_vm2, %v1723_v16, -inf }
 0x203   : > { %1727 = vmax.xlane.f32.xlu0 %v1726_v21  ;;  %1545 = vadd.xlane.f32.xlu2 %v1544_v22  ;;  %v1975_v21 = vld [vmem:[#allocation5 + $0x4] sm:$0xf] }
 0x207   : > { %v1724_v23 = vpop.f32.mrf.mxu3 }
 0x208   : > { %v1980_v23 = vsel %vm1554_vm3, %v1975_v21, 0  ;;  %v2885_v21 = vld [vmem:[%s3731_s13] ss:$0 sm:$0xff] }
 0x266   : > { %v1602_v27 = vpop.xlane.xlu2 %1601 }
 0x267   : > { %v1603_v28 = vsub.f32 %v1597_v8, %v1602_v27  ;;  %v1887_v8 = vsel %vm1518_vm2, %v1882_v4, 0 }
 0x268   : > { %1896 = vmatpush.bf16.xpose.msra.mxu3 %v1887_v8 }
 0x269   : > { %v1604_v30 = vmul.f32 1.442695, %v1603_v28  ;;  %v2042_v28 = vsel %vm1554_vm3, %v2037_v26, 0 }
 0x26b   : > { %2895 = vpow2.f32 %v1604_v30 }
 0x26e   : > { %v1665_v32 = vpop.xlane.xlu2 %1664 }
 0x26f   : > { %v1666_v33 = vsub.f32 %v1660_v13, %v1665_v32  ;;  %v2009_v13 = vsel %vm1518_vm2, %v2002_v10, 0 }
 0x270   : > { %2018 = vmatpush.bf16.xpose.msrb.mxu3 %v2009_v13  ;;  %v2884_v13 = vld [vmem:[%s3660_s25] ss:$0 sm:$0xff] }
 0x271   : > { %v2896_v35 = vpop.eup %2895  ;;  %v1667_v36 = vmul.f32 1.442695, %v1666_v33 }
 0x272   : > { %v1606_v37 = vsel %vm1518_vm2, %v2896_v35, 0.0 }
 0x273   : > { %2897 = vpow2.f32 %v1667_v36  ;;  %1607 = vadd.xlane.f32.xlu2 %v1606_v37 }
 0x276   : > { %v1728_v40 = vpop.xlane.xlu0 %1727  ;;  %v1546_v41 = vpop.xlane.xlu2 %1545 }
 0x277   : > { %v1729_v44 = vsub.f32 %v1723_v16, %v1728_v40  ;;  %2899 = vrcp.f32 %v1546_v41 }
 0x279   : > { %v2898_v45 = vpop.eup %2897  ;;  %v1730_v46 = vmul.f32 1.442695, %v1729_v44 }
 0x27a   : > { %v1669_v47 = vsel %vm1518_vm2, %v2898_v45, 0.0 }
 0x27b   : > { %2901 = vpow2.f32 %v1730_v46  ;;  %1670 = vadd.xlane.f32.xlu2 %v1669_v47 }
 0x27d   : > { %v2900_v49 = vpop.eup %2899 }
 0x27e   : > { %v1548_v50 = vmul.f32 %v2900_v49, %v2894_v19  ;;  %v1803_v49 = vunpack.c.l.bf16 %v3288_v18 }
 0x280   : > { %v1549_v51 = vpack.c.bf16 %v1548_v50, %v1548_v50 }
 0x281   : > { %v2902_v53 = vpop.eup %2901 }
 0x282   : > { %2680 = vmatmul.msk.bf16.vlgmr.msra.gmra.mxu2 %vm1518_vm2, %v1549_v51  ;;  %v1732_v54 = vsel %vm1518_vm2, %v2902_v53, 0.0 }
 0x283   : > { %1733 = vadd.xlane.f32.xlu2 %v1732_v54  ;;  %1874 = vmatpush.bf16.msra.mxu2 %v2793_v59 }
 0x287   : > { %1875 = vmatpush.bf16.msra.mxu2 %v2792_v62 }
 0x2e6   : > { %v1608_v2 = vpop.xlane.xlu2 %1607 }
 0x2e7   : > { %2903 = vrcp.f32 %v1608_v2 }
 0x2ed   : > { %v2904_v3 = vpop.eup %2903 }
 0x2ee   : > { %v1610_v6 = vmul.f32 %v2904_v3, %v2896_v35  ;;  %v1671_v7 = vpop.xlane.xlu2 %1670 }
 0x2ef   : > { %2905 = vrcp.f32 %v1671_v7 }
 0x2f0   : > { %v1611_v14 = vpack.c.bf16 %v1610_v6, %v1610_v6 }
 0x2f2   : > { %2682 = vmatmul.msk.bf16.vlgmr.msrb.gmra.mxu0 %vm1518_vm2, %v1611_v14 }
 0x2f3   : > { %1928 = vmatpush.bf16.msrb.mxu0 %v1919_v17 }
 0x2f5   : > { %v2906_v19 = vpop.eup %2905 }
 0x2f6   : > { %v1673_v20 = vmul.f32 %v2906_v19, %v2898_v45  ;;  %v1734_v16 = vpop.xlane.xlu2 %1733  ;;  %v2064_v45 = vld [vmem:[#allocation4 + $0xc] sm:$0xf]  ;;  %v2099_v19 = vld [vmem:[#allocation5 + $0xc] sm:$0xf] }
 0x2f7   : > { %2907 = vrcp.f32 %v1734_v16  ;;  %v2071_v47 = vsel %vm1518_vm2, %v2064_v45, 0  ;;  %v2104_v16 = vsel %vm1554_vm3, %v2099_v19, 0 }
 0x2f8   : > { %v1674_v22 = vpack.c.bf16 %v1673_v20, %v1673_v20  ;;  %2909 = vrcp.f32 %v3020_v55 }
 0x2fa   : > { %2684 = vmatmul.msk.bf16.vlgmr.msrb.gmra.mxu2 %vm1518_vm2, %v1674_v22 }
 0x2fb   : > { %1989 = vmatpush.bf16.msrb.mxu2 %v1980_v23 }
 0x2fd   : > { %v2908_v24 = vpop.eup %2907 }
 0x2fe   : > { %v1736_v25 = vmul.f32 %v2908_v24, %v2902_v53  ;;  %v2910_v56 = vpop.eup %2909 }
 0x2ff   : > { %v1811_v57 = vmul.f32 32.0, %v2910_v56  ;;  %vm1815_vm8 = vweird.f32 %v2910_v56 }
 0x300   : > { %v1737_v27 = vpack.c.bf16 %v1736_v25, %v1736_v25 }
 0x301   : > { %v1812_v58 = vsub.f32 1.0, %v1811_v57 }
 0x302   : > { %2686 = vmatmul.msk.bf16.vlgmr.msra.gmra.mxu0 %vm1518_vm2, %v1737_v27 }
 0x303   : > { %2051 = vmatpush.bf16.msra.mxu0 %v2042_v28  ;;  %v1813_v59 = vmul.f32 %v2910_v56, %v1812_v58 }
 0x305   : > { %v1567_v29 = vpop.f32.mrf.mxu2  ;;  %v1814_v60 = vadd.f32 %v2910_v56, %v1813_v59 }
 0x306   : > { %v1571_v30 = vpack.c.bf16 %v1567_v29, %v1567_v29 }
 0x307   : > { %v3492_v61 = vsel %vm1815_vm8, %v2910_v56, %v1814_v60 }
 0x308   : > { %1573 = vst.msk [vmem:[#allocation6] sm:$0xf] %vm897_vm1, %v1571_v30 }
 0x30d   : > { %v1569_v31 = vpop.f32.mrf.mxu2 }
 0x36f   : > { %v1629_v32 = vpop.f32.mrf.mxu0 }
 0x370   : > { %v1633_v33 = vpack.c.bf16 %v1629_v32, %v1629_v32 }
 0x372   : > { %1635 = vrot.lane.b32.xlu2 %v1633_v33, %s3017_s5 }
 0x377   : > { %v1631_v34 = vpop.f32.mrf.mxu0 }
 0x37d   : > { %v1692_v35 = vpop.f32.mrf.mxu2 }
 0x37e   : > { %v1696_v36 = vpack.c.bf16 %v1692_v35, %v1692_v35 }
 0x37f   : > { %v1755_v37 = vpop.f32.mrf.mxu0 }
 0x380   : > { %v1759_v38 = vpack.c.bf16 %v1755_v37, %v1755_v37  ;;  %1698 = vrot.lane.b32.xlu1 %v1696_v36, %s3018_s0 }
 0x382   : > { %1761 = vrot.lane.b32.xlu0 %v1759_v38, %s3683_s4  ;;  %s3734_s4 = sld [smem:[#allocation23_spill]] }
 0x385   : > { %v1694_v39 = vpop.f32.mrf.mxu2 }
 0x387   : > { %v1757_v40 = vpop.f32.mrf.mxu0 }
 0x388   : > { %v1474_v28 = vld [vmem:[%s3734_s4] sm:$0x3]  ;;  %s2753_s4 = sshll.u32 %s3737_s28, 2 }
 0x389   : > { %v1475_v30 = vunpack.c.0.s8 %v1474_v28 }
 0x38b   : > { %v1476_v31 = vcvt.s32.f32 %v1475_v30 }
 0x38d   : > { %vm1477_vm12 = vcmp.eq.f32.partialorder %v1476_v31, 0.0 }
 0x38e   : > { %v1478_v33 = vsel %vm1477_vm12, -1e+09, %v3016_v43 }
 0x3cc   : > { %v1636_v41 = vpop.permute.xlu2 %1635 }
 0x3cd   : > { %1639 = vst.msk [vmem:[#allocation6] sm:$0xf] %vm1638_vm5, %v1636_v41 }
 0x3f2   : > { %v1699_v42 = vpop.permute.xlu1 %1698 }
 0x3f3   : > { %1702 = vst.msk [vmem:[#allocation6] sm:$0xf] %vm1701_vm6, %v1699_v42 }
 0x3f4   : > { %v1762_v44 = vpop.permute.xlu0 %1761 }
 0x3f5   : > { %1765 = vst.msk [vmem:[#allocation6] sm:$0xf] %vm1764_vm7, %v1762_v44 }
 0x3fc   : > { %v1766_v46 = vld [vmem:[#allocation6] sm:$0xf] }
 0x3fd   : > { %2695 = vmatmul.msk.bf16.vlgmr.msra.gmra.mxu1 %vm879_vm0, %v1766_v46 }
 0x3fe   : > { %2080 = vmatpush.bf16.xpose.msra.mxu1 %v2071_v47 }
 0x47a   : > { %v1799_v50 = vpop.f32.mrf.mxu1 }
 0x47b   : > { %v1800_v51 = vadd.f32 %v2882_v48, %v1799_v50 }
 0x47d   : > { %v1804_v52 = vadd.f32 %v1803_v49, %v1800_v51 }
 0x47f   : > { %v1807_v53 = vsel %vm879_vm0, %v1804_v52, 0.0 }
 0x480   : > { %1808 = vadd.xlane.f32.xlu2 %v1807_v53 }
 0x482   : > { %v1801_v54 = vpop.f32.mrf.mxu1 }
 0x4f3   : > { %v1809_v62 = vpop.xlane.xlu2 %1808 }
 0x4f4   : > { %v1817_v18 = vmul.f32 %v3492_v61, %v1809_v62 }
 0x4f6   : > { %v1818_v63 = vsub.f32 %v1804_v52, %v1817_v18 }
 0x4f8   : > { %v1819_v0 = vmul.f32 %v1818_v63, %v1818_v63 }
 0x4fa   : > { %v1820_v1 = vsel %vm879_vm0, %v1819_v0, 0.0 }
 0x4fb   : > { %1821 = vadd.xlane.f32.xlu1 %v1820_v1 }
 0x56e   : > { %v1822_v2 = vpop.xlane.xlu1 %1821 }
 0x56f   : > { %v1823_v3 = vmul.f32 %v1822_v2, %v3492_v61 }
 0x571   : > { %v1824_v4 = vadd.f32 1e-05, %v1823_v3 }
 0x573   : > { %2911 = vrsqrt.f32 %v1824_v4  ;;  %vm1831_vm10 = vweird.f32 %v1824_v4 }
 0x579   : > { %v2912_v5 = vpop.eup %2911 }
 0x57a   : > { %v1826_v6 = vmul.f32 %v2912_v5, %v1824_v4  ;;  %vm1832_vm9 = vweird.f32 %v2912_v5 }
 0x57b   : > { %vm1833_vm11 = vmor %vm1831_vm10, %vm1832_vm9 }
 0x57c   : > { %v1827_v7 = vmul.f32 %v2912_v5, %v1826_v6 }
 0x57e   : > { %v1828_v8 = vmul.f32 0.5, %v1827_v7 }
 0x580   : > { %v1829_v9 = vsub.f32 1.5, %v1828_v8 }
 0x582   : > { %v1830_v10 = vmul.f32 %v2912_v5, %v1829_v9 }
 0x584   : > { %v1834_v12 = vsel %vm1833_vm11, %v2912_v5, %v1830_v10 }
 0x585   : > { %v1835_v14 = vmul.f32 %v1834_v12, %v1818_v63 }
 0x587   : > { %v1839_v15 = vmul.f32 %v2883_v11, %v1835_v14 }
 0x589   : > { %v3503_v17 = vadd.f32 %v2884_v13, %v1839_v15 }
 0x58b   : > { %v1844_v20 = vpack.c.bf16 %v3503_v17, %v3503_v17 }
 0x58d   : > { %2704 = vmatmul.msk.bf16.vlgmr.msra.gmra.mxu2 %vm879_vm0, %v1844_v20 }
 0x58e   : > { %2113 = vmatpush.bf16.msra.mxu2 %v2104_v16 }
 0x610   : > { %v1877_v22 = vpop.f32.mrf.mxu2 }
 0x611   : > { %v1878_v23 = vadd.f32 %v2885_v21, %v1877_v22 }
 0x613   : > { %v1881_v24 = vpack.c.bf16 %v1878_v23, %v1878_v23 }
 0x615   : > { %v1939_v25 = vunpack.c.l.b16 %v1881_v24  ;;  %2705 = vmatmul.msk.bf16.vlgmr.msra.gmra.mxu3 %vm1518_vm2, %v1881_v24 }
 0x617   : > { %v1940_v26 = vpack.c.b16 %v1939_v25, %v1939_v25 }
 0x618   : > { %v1879_v27 = vpop.f32.mrf.mxu2 }
 0x619   : > { %1941 = vrot.lane.b32.xlu0 %v1940_v26, %s3014_s9  ;;  %s3735_s9 = smov 24  }
 0x621   : > { %2003 = vrot.lane.b32.xlu0 %v1940_v26, %s3732_s7 }
 0x629   : > { %2065 = vrot.lane.b32.xlu0 %v1940_v26, %s3733_s3  ;;  %s3736_s3 = sld [smem:[#allocation11_spill]] }
 0x62f   : > { %s833_s27 = sand.u32 1, %s3736_s3   ;;  %s3738_s3 = sld [smem:[#allocation34_spill]] }
 0x630   : > { %s2328_s8 = scalar_lea.sflag [#allocation8], %s833_s27 }
 0x635   : > { %s3739_s2 = smov %s3738_s3  ;;  %s2339_s10 = scalar_lea.hbm %s3738_s3, %s2753_s4 }
 0x636   : > { %s2343_s28 = sshll.u32 %s2339_s10, 4  ;;  %s2344_s28 = int_to_ptr.hbm [resolvable:$true] %s2343_s28 }
 0x637   : > { %s2947_s6 = sshra.s32 %s2344_s28, 4  ;;  %s2948_s6 = int_to_ptr.hbm [resolvable:$true] %s2947_s6 }
 0x638   : > { %s2949_s7 = scalar_lea.hbm %s2948_s6, 4  ;;  %p2954_p1 = scmp.lt.s32.totalorder %s2948_s6, %s3739_s2 }
 0x639   : > { %p2950_p12 = scmp.ne.s32.totalorder %s2948_s6, %s2949_s7 }
 0x63b   : > { %p2951_p13 = pnand %p2950_p12, %p3196_p4 }
 0x63d   : > { %p2952_p0 = pneg %p2951_p13 }
 0x68b   : > { %v1942_v29 = vpop.permute.xlu0 %1941 }
 0x68c   : > { %2707 = vmatmul.msk.bf16.vlgmr.msrb.gmra.mxu1 %vm1518_vm2, %v1942_v29 }
 0x693   : > { %v2004_v32 = vpop.permute.xlu0 %2003 }
 0x694   : > { %2709 = vmatmul.msk.bf16.vlgmr.msrb.gmra.mxu3 %vm1518_vm2, %v2004_v32 }
 0x698   : > { %v1898_v34 = vpop.f32.mrf.mxu3 }
 0x699   : > { %v1899_v35 = vadd.f32 %v1898_v34, %v1478_v33 }
 0x69b   : > { %v2066_v36 = vpop.permute.xlu0 %2065  ;;  %v1902_v37 = vsel %vm1518_vm2, %v1899_v35, -inf }
 0x69c   : > { %2711 = vmatmul.msk.bf16.vlgmr.msra.gmra.mxu1 %vm1518_vm2, %v2066_v36  ;;  %1903 = vmax.xlane.f32.xlu2 %v1902_v37  ;;  %v2795_v37 = vld [vmem:[%s3653_s18 + $0x8] sm:$0xff] }
 0x69d   : > { %2155 = vmatpush.bf16.msra.mxu3 %v2795_v37 }
 0x6a0   : > { %v1900_v38 = vpop.f32.mrf.mxu3 }
 0x6a1   : > { %v2794_v38 = vld [vmem:[%s3653_s18] sm:$0xff] }
 0x6a2   : > { %2156 = vmatpush.bf16.msra.mxu3 %v2794_v38 }
 0x709   : > { %v1958_v39 = vpop.f32.mrf.mxu1 }
 0x70a   : > { %v1959_v40 = vadd.f32 %v1958_v39, %v1478_v33 }
 0x70c   : > { %v1962_v41 = vsel %vm1518_vm2, %v1959_v40, -inf }
 0x70d   : > { %1963 = vmax.xlane.f32.xlu0 %v1962_v41 }
 0x70f   : > { %v1904_v42 = vpop.xlane.xlu2 %1903 }
 0x710   : > { %v1905_v44 = vsub.f32 %v1899_v35, %v1904_v42 }
 0x711   : > { %v1960_v45 = vpop.f32.mrf.mxu1 }
 0x712   : > { %v1906_v46 = vmul.f32 1.442695, %v1905_v44  ;;  %v2886_v44 = vld [vmem:[%s3654_s19] ss:$0 sm:$0xff] }
 0x714   : > { %2913 = vpow2.f32 %v1906_v46 }
 0x717   : > { %v2020_v47 = vpop.f32.mrf.mxu3 }
 0x718   : > { %v2021_v43 = vadd.f32 %v2020_v47, %v1478_v33 }
 0x719   : > { %v2082_v48 = vpop.f32.mrf.mxu1 }
 0x71a   : > { %v2083_v49 = vadd.f32 %v2082_v48, %v1478_v33  ;;  %v2024_v50 = vsel %vm1518_vm2, %v2021_v43, -inf  ;;  %v2914_v52 = vpop.eup %2913 }
 0x71b   : > { %2025 = vmax.xlane.f32.xlu2 %v2024_v50  ;;  %v1908_v55 = vsel %vm1518_vm2, %v2914_v52, 0.0 }
 0x71c   : > { %v2086_v51 = vsel %vm1518_vm2, %v2083_v49, -inf }
 0x71d   : > { %2087 = vmax.xlane.f32.xlu1 %v2086_v51 }
 0x71f   : > { %v2022_v53 = vpop.f32.mrf.mxu3 }
 0x721   : > { %v2084_v54 = vpop.f32.mrf.mxu1 }
 0x722   : > { %v2797_v54 = vld [vmem:[%s3655_s20 + $0x8] sm:$0xff] }
 0x723   : > { %1909 = vadd.xlane.f32.xlu2 %v1908_v55  ;;  %v2801_v55 = vld [vmem:[%s3657_s22 + $0x18] sm:$0xff] }
 0x724   : > { %2280 = vmatpush.bf16.msrb.mxu1 %v2801_v55 }
 0x780   : > { %v1964_v56 = vpop.xlane.xlu0 %1963 }
 0x781   : > { %v1965_v57 = vsub.f32 %v1959_v40, %v1964_v56 }
 0x783   : > { %v1966_v58 = vmul.f32 1.442695, %v1965_v57 }
 0x785   : > { %2915 = vpow2.f32 %v1966_v58  ;;  %v2800_v58 = vld [vmem:[%s3657_s22 + $0x10] sm:$0xff] }
 0x786   : > { %2281 = vmatpush.bf16.msrb.mxu1 %v2800_v58 }
 0x78b   : > { %v2916_v59 = vpop.eup %2915 }
 0x78c   : > { %v1968_v60 = vsel %vm1518_vm2, %v2916_v59, 0.0 }
 0x78d   : > { %1969 = vadd.xlane.f32.xlu1 %v1968_v60  ;;  %v2799_v60 = vld [vmem:[%s3657_s22 + $0x8] sm:$0xff] }
 0x78e   : > { %v2026_v62 = vpop.xlane.xlu2 %2025  ;;  %2282 = vmatpush.bf16.msrb.mxu1 %v2799_v60 }
 0x78f   : > { %v2027_v18 = vsub.f32 %v2021_v43, %v2026_v62 }
 0x790   : > { %v2088_v63 = vpop.xlane.xlu1 %2087 }
 0x791   : > { %v2028_v0 = vmul.f32 1.442695, %v2027_v18  ;;  %v2089_v1 = vsub.f32 %v2083_v49, %v2088_v63 }
 0x793   : > { %2917 = vpow2.f32 %v2028_v0  ;;  %v2090_v2 = vmul.f32 1.442695, %v2089_v1 }
 0x795   : > { %2919 = vpow2.f32 %v2090_v2 }
 0x796   : > { %v1910_v3 = vpop.xlane.xlu2 %1909 }
 0x797   : > { %2921 = vrcp.f32 %v1910_v3  ;;  %v2887_v3 = vld [vmem:[%s3659_s24 + $0x1] ss:$0 sm:$0xff] }
 0x799   : > { %v2918_v4 = vpop.eup %2917 }
 0x79a   : > { %v2030_v5 = vsel %vm1518_vm2, %v2918_v4, 0.0 }
 0x79b   : > { %v2920_v6 = vpop.eup %2919  ;;  %2031 = vadd.xlane.f32.xlu2 %v2030_v5  ;;  %v2888_v5 = vld [vmem:[%s3660_s25 + $0x1] ss:$0 sm:$0xff] }
 0x79c   : > { %v2092_v7 = vsel %vm1518_vm2, %v2920_v6, 0.0 }
 0x79d   : > { %v2922_v8 = vpop.eup %2921  ;;  %2093 = vadd.xlane.f32.xlu1 %v2092_v7 }
 0x79e   : > { %v1912_v9 = vmul.f32 %v2922_v8, %v2914_v52 }
 0x7a0   : > { %v1913_v10 = vpack.c.bf16 %v1912_v9, %v1912_v9 }
 0x7a2   : > { %2706 = vmatmul.msk.bf16.vlgmr.msrb.gmra.mxu0 %vm1518_vm2, %v1913_v10  ;;  %v2798_v10 = vld [vmem:[%s3657_s22] sm:$0xff] }
 0x7a3   : > { %2227 = vmatpush.bf16.msrb.mxu0 %v2797_v54  ;;  %2283 = vmatpush.bf16.msrb.mxu1 %v2798_v10 }
 0x800   : > { %v1970_v11 = vpop.xlane.xlu1 %1969 }
 0x801   : > { %2923 = vrcp.f32 %v1970_v11  ;;  %v2889_v11 = vld [vmem:[%s3656_s21] ss:$0 sm:$0xff] }
 0x807   : > { %v2924_v12 = vpop.eup %2923 }
 0x808   : > { %v1972_v13 = vmul.f32 %v2924_v12, %v2916_v59 }
 0x80a   : > { %v1973_v14 = vpack.c.bf16 %v1972_v13, %v1972_v13 }
 0x80c   : > { %2708 = vmatmul.msk.bf16.vlgmr.msrb.gmra.mxu2 %vm1518_vm2, %v1973_v14 }
 0x80e   : > { %v2032_v15 = vpop.xlane.xlu2 %2031 }
 0x80f   : > { %2925 = vrcp.f32 %v2032_v15 }
 0x810   : > { %v2094_v19 = vpop.xlane.xlu1 %2093 }
 0x811   : > { %2927 = vrcp.f32 %v2094_v19 }
 0x815   : > { %v2926_v20 = vpop.eup %2925 }
 0x816   : > { %v2034_v16 = vmul.f32 %v2926_v20, %v2918_v4  ;;  %v2890_v20 = vld [vmem:[%s3658_s23] ss:$0 sm:$0xff] }
 0x817   : > { %v2928_v21 = vpop.eup %2927 }
 0x818   : > { %v2035_v22 = vpack.c.bf16 %v2034_v16, %v2034_v16  ;;  %v2096_v23 = vmul.f32 %v2928_v21, %v2920_v6 }
 0x81a   : > { %v2097_v24 = vpack.c.bf16 %v2096_v23, %v2096_v23  ;;  %2710 = vmatmul.msk.bf16.vlgmr.msra.gmra.mxu0 %vm1518_vm2, %v2035_v22 }
 0x81c   : > { %2712 = vmatmul.msk.bf16.vlgmr.msra.gmra.mxu2 %vm1518_vm2, %v2097_v24 }
 0x81f   : > { %v1930_v25 = vpop.f32.mrf.mxu0 }
 0x820   : > { %v1934_v26 = vpack.c.bf16 %v1930_v25, %v1930_v25 }
 0x822   : > { %1935 = vst.msk [vmem:[#allocation6] sm:$0xf] %vm897_vm1, %v1934_v26  ;;  %vm2272_vm1 = vcmask 523264  }
 0x827   : > { %v1932_v27 = vpop.f32.mrf.mxu0 }
 0x88f   : > { %v1991_v28 = vpop.f32.mrf.mxu2 }
 0x890   : > { %v1995_v29 = vpack.c.bf16 %v1991_v28, %v1991_v28 }
 0x892   : > { %1997 = vrot.lane.b32.xlu1 %v1995_v29, %s3017_s5 }
 0x897   : > { %v1993_v30 = vpop.f32.mrf.mxu2  ;;  %v2053_v31 = vpop.f32.mrf.mxu0 }
 0x898   : > { %v2057_v32 = vpack.c.bf16 %v2053_v31, %v2053_v31 }
 0x89a   : > { %2059 = vrot.lane.b32.xlu0 %v2057_v32, %s3018_s0 }
 0x89f   : > { %v2055_v33 = vpop.f32.mrf.mxu0  ;;  %v2115_v34 = vpop.f32.mrf.mxu2 }
 0x8a0   : > { %v2119_v35 = vpack.c.bf16 %v2115_v34, %v2115_v34 }
 0x8a2   : > { %2121 = vrot.lane.b32.xlu2 %v2119_v35, %s3735_s9  ;;  %s2463_s9 = sshll.u32 %s833_s27, 2 }
 0x8a3   : > { %s835_s12 = scalar_lea.vmem [#allocation7], %s2463_s9  ;;  %s2953_s9 = scalar_lea.hbm %s3739_s2, 8 }
 0x8a4   : > { %s2341_s13 = sshll.u32 %s835_s12, 4  ;;  %p2955_p2 = scmp.lt.s32.totalorder %s2953_s9, %s2949_s7  ;;  %s2342_s13 = int_to_ptr.vmem [resolvable:$true] %s2341_s13 }
 0x8a6   : > { %p2956_p3 = por %p2955_p2, %p2954_p1 }
 0x8a7   : > { %v2117_v36 = vpop.f32.mrf.mxu2 }
 0x8a8   : > { %p2957_p5 = pnand %p2956_p3, %p2952_p0 }
 0x8fc   : > { %v2122_v41 = vpop.permute.xlu2 %2121 }
 0x904   : > { %v1998_v39 = vpop.permute.xlu1 %1997 }
 0x905   : > { %2000 = vst.msk [vmem:[#allocation6] sm:$0xf] %vm1638_vm5, %v1998_v39  ;;  %v2891_v39 = vld [vmem:[%s3659_s24 + $0x2] ss:$0 sm:$0xff] }
 0x90c   : > { %v2060_v40 = vpop.permute.xlu0 %2059 }
 0x90d   : > { %2062 = vst.msk [vmem:[#allocation6] sm:$0xf] %vm1701_vm6, %v2060_v40 }
 0x90e   : > { %2124 = vst.msk [vmem:[#allocation6] sm:$0xf] %vm1764_vm7, %v2122_v41  ;;  %v2892_v41 = vld [vmem:[%s3660_s25 + $0x2] ss:$0 sm:$0xff] }
 0x915   : > { %v2125_v42 = vld [vmem:[#allocation6] sm:$0xf] }
 0x916   : > { %2721 = vmatmul.msk.bf16.vlgmr.msra.gmra.mxu3 %vm879_vm0, %v2125_v42 }
 0x999   : > { %v2158_v45 = vpop.f32.mrf.mxu3 }
 0x99a   : > { %v2159_v46 = vadd.f32 %v2886_v44, %v2158_v45 }
 0x99c   : > { %v2162_v47 = vadd.f32 %v2159_v46, %v3503_v17  ;;  %v2796_v17 = vld [vmem:[%s3655_s20] sm:$0xff] }
 0x99d   : > { %2228 = vmatpush.bf16.msrb.mxu0 %v2796_v17 }
 0x99e   : > { %v2167_v43 = vsel %vm879_vm0, %v2162_v47, 0.0 }
 0x99f   : > { %2168 = vadd.xlane.f32.xlu0 %v2167_v43 }
 0x9a1   : > { %v2160_v48 = vpop.f32.mrf.mxu3 }
 0xa12   : > { %v2169_v49 = vpop.xlane.xlu0 %2168 }
 0xa13   : > { %v2170_v50 = vmul.f32 %v2169_v49, %v3492_v61 }
 0xa15   : > { %v2171_v51 = vsub.f32 %v2162_v47, %v2170_v50 }
 0xa17   : > { %v2172_v52 = vmul.f32 %v2171_v51, %v2171_v51 }
 0xa19   : > { %v2173_v53 = vsel %vm879_vm0, %v2172_v52, 0.0 }
 0xa1a   : > { %2174 = vadd.xlane.f32.xlu1 %v2173_v53 }
 0xa8d   : > { %v2175_v56 = vpop.xlane.xlu1 %2174 }
 0xa8e   : > { %v2176_v57 = vmul.f32 %v2175_v56, %v3492_v61 }
 0xa90   : > { %v2177_v59 = vadd.f32 1e-05, %v2176_v57 }
 0xa92   : > { %2929 = vrsqrt.f32 %v2177_v59  ;;  %vm2184_vm14 = vweird.f32 %v2177_v59 }
 0xa98   : > { %v2930_v62 = vpop.eup %2929 }
 0xa99   : > { %v2179_v18 = vmul.f32 %v2930_v62, %v2177_v59  ;;  %vm2185_vm13 = vweird.f32 %v2930_v62 }
 0xa9a   : > { %vm2186_vm15 = vmor %vm2184_vm14, %vm2185_vm13 }
 0xa9b   : > { %v2180_v63 = vmul.f32 %v2930_v62, %v2179_v18 }
 0xa9d   : > { %v2181_v0 = vmul.f32 0.5, %v2180_v63 }
 0xa9f   : > { %v2182_v1 = vsub.f32 1.5, %v2181_v0 }
 0xaa1   : > { %v2183_v2 = vmul.f32 %v2930_v62, %v2182_v1 }
 0xaa3   : > { %v2187_v4 = vsel %vm2186_vm15, %v2930_v62, %v2183_v2 }
 0xaa4   : > { %v2188_v6 = vmul.f32 %v2187_v4, %v2171_v51 }
 0xaa6   : > { %v2192_v7 = vmul.f32 %v2887_v3, %v2188_v6 }
 0xaa8   : > { %v2196_v8 = vadd.f32 %v2888_v5, %v2192_v7 }
 0xaaa   : > { %v2197_v9 = vpack.c.bf16 %v2196_v8, %v2196_v8 }
 0xaac   : > { %2732 = vmatmul.msk.bf16.vlgmr.msrb.gmra.mxu0 %vm879_vm0, %v2197_v9 }
 0xb29   : > { %v2230_v12 = vpop.f32.mrf.mxu0 }
 0xb2a   : > { %v2231_v13 = vadd.f32 %v2889_v11, %v2230_v12 }
 0xb2c   : > { %v2234_v14 = vmax.f32 %v2231_v13, 0.0 }
 0xb2e   : > { %v2235_v15 = vpack.c.bf16 %v2234_v14, %v2234_v14 }
 0xb30   : > { %2749 = vmatmul.msk.bf16.vlgmr.msrb.gmra.mxu1 %vm2272_vm1, %v2235_v15 }
 0xb31   : > { %v2232_v19 = vpop.f32.mrf.mxu0 }
 0xbad   : > { %v2285_v16 = vpop.f32.mrf.mxu1 }
 0xbae   : > { %v2286_v21 = vadd.f32 %v2890_v20, %v2285_v16 }
 0xbb0   : > { %v2289_v22 = vadd.f32 %v2286_v21, %v2196_v8 }
 0xbb2   : > { %v2294_v23 = vsel %vm879_vm0, %v2289_v22, 0.0 }
 0xbb3   : > { %2295 = vadd.xlane.f32.xlu2 %v2294_v23 }
 0xbb5   : > { %v2287_v24 = vpop.f32.mrf.mxu1 }
 0xc26   : > { %v2296_v25 = vpop.xlane.xlu2 %2295 }
 0xc27   : > { %v2297_v26 = vmul.f32 %v2296_v25, %v3492_v61 }
 0xc29   : > { %v2298_v27 = vsub.f32 %v2289_v22, %v2297_v26 }
 0xc2b   : > { %v2299_v28 = vmul.f32 %v2298_v27, %v2298_v27 }
 0xc2d   : > { %v2300_v29 = vsel %vm879_vm0, %v2299_v28, 0.0  ;;  %vm2325_vm0 = vcmask 257024  }
 0xc2e   : > { %2301 = vadd.xlane.f32.xlu0 %v2300_v29 }
 0xca1   : > { %v2302_v30 = vpop.xlane.xlu0 %2301 }
 0xca2   : > { %v2303_v31 = vmul.f32 %v2302_v30, %v3492_v61 }
 0xca4   : > { %v2304_v32 = vadd.f32 1e-05, %v2303_v31 }
 0xca6   : > { %2931 = vrsqrt.f32 %v2304_v32  ;;  %vm2311_vm3 = vweird.f32 %v2304_v32 }
 0xcac   : > { %v2932_v33 = vpop.eup %2931 }
 0xcad   : > { %v2306_v34 = vmul.f32 %v2932_v33, %v2304_v32  ;;  %vm2312_vm2 = vweird.f32 %v2932_v33 }
 0xcae   : > { %vm2313_vm4 = vmor %vm2311_vm3, %vm2312_vm2 }
 0xcaf   : > { %v2307_v35 = vmul.f32 %v2932_v33, %v2306_v34 }
 0xcb1   : > { %v2308_v36 = vmul.f32 0.5, %v2307_v35 }
 0xcb3   : > { %v2309_v37 = vsub.f32 1.5, %v2308_v36 }
 0xcb5   : > { %v2310_v38 = vmul.f32 %v2932_v33, %v2309_v37 }
 0xcb7   : > { %v2314_v40 = vsel %vm2313_vm4, %v2932_v33, %v2310_v38 }
 0xcb8   : > { %v2315_v61 = vmul.f32 %v2314_v40, %v2298_v27 }
 0xcba   : > { %v2319_v42 = vmul.f32 %v2891_v39, %v2315_v61 }
 0xcbc   : > { %v2323_v44 = vadd.f32 %v2892_v41, %v2319_v42 }
 0xcbe   : > { %v2324_v45 = vpack.c.bf16 %v2323_v44, %v2323_v44 }
 0xcc0   : > { %2326 = vst.msk [vmem:[%s835_s12] sm:$0xf] %vm2325_vm0, %v2324_v45 }
 0xcc1   : > { %2960 = shalt.err (!%p2957_p5)
}
 0xcc2   : > { %2802 = dma.vmem_to_hbm [thread:$0]  (%p3196_p4), %s2342_s13, 64, %s2344_s28, %s2328_s8  }
 0xcc3 PF: > { %s3741_s12 = sld [smem:[#allocation15_spill]] }
 0xcc4   : > { %s3742_s27 = sld [smem:[#allocation10_spill]] }
 0xcc9   : > { %p2808_p6 = scmp.ge.s32.totalorder %s3741_s12, 2 }
 0xcca   : > { %s2355_s3 = sand.u32 1, %s3742_s27  }
 0xccb   : > { %p2805_p7 = pnand %p2808_p6, %p3203_p8  ;;  %s2356_s1 = scalar_lea.sflag [#allocation8], %s2355_s3 }
 0xccd   : > { %p2806_p9 = pneg %p2805_p7 }
 0xccf   : > { %2986 = dma.done.wait (%p2806_p9), %s2356_s1, 64  }
 0xcd0   : > { %2988 = vsyncadd (%p2806_p9), %s2356_s1, 4294967232  ;;  %s39_s4 = sadd.s32 1, %s3741_s12   ;;  %s3744_s27 = sld [smem:[#allocation11_spill]] }
 0xcd1   : > { %p36_p10 = scmp.ge.s32.totalorder %s39_s4, 4   ;;  %s3745_s3 = sld [smem:[#allocation12_spill]] }
 0xcd2   : > { %s3746_s7 = sld [smem:[#allocation19_spill]] }
 0xcd3   : > { %s3747_s28 = sld [smem:[#allocation14_spill]]  ;;  %38 = sbr.rel (!%p36_p10) target bundleno = 20 (0x14), region = 225 }
 0xcd4   : > { %s3748_s8 = sld [smem:[#allocation16_spill]] }
 0xcd8   :  { %2362 = vsyncpa [#allocation8], 1 }
 0xcd9   :  { %2364 = vsyncpa [#allocation8 + $0x1], 1 }

// kernel: tpu_custom_call.1
= control target key start
LH: loop header
LB: loop body
LE: loop exit
PB: predicated region body
PF: predicated region fallthrough
CT: control target
= control target key end

     0   :  { %s3635_s0 = inlined_call_operand.vmem [shape: bf16[2,8,32], index: 0, kind: input, shape index: {}]   ;;  %s3636_s1 = inlined_call_operand.vmem [shape: bf16[2,8,32], index: 1, kind: input, shape index: {}]   ;;  %s3637_s2 = inlined_call_operand.vmem [shape: s8[8,8], index: 2, kind: input, shape index: {}]   ;;  %s3638_s3 = inlined_call_operand.vmem [shape: s8[8,8], index: 3, kind: input, shape index: {}]   ;;  %s3639_s4 = inlined_call_operand.vmem [shape: bf16[32,32], index: 4, kind: input, shape index: {}]   ;;  %s3640_s5 = inlined_call_operand.vmem [shape: f32[1,32], index: 5, kind: input, shape index: {}]   ;;  %s3641_s6 = inlined_call_operand.vmem [shape: bf16[4,32,8], index: 6, kind: input, shape index: {}]   ;;  %s3642_s7 = inlined_call_operand.vmem [shape: f32[4,1,8], index: 7, kind: input, shape index: {}]   ;;  %s3643_s8 = inlined_call_operand.vmem [shape: bf16[4,32,8], index: 8, kind: input, shape index: {}]   ;;  %s3644_s9 = inlined_call_operand.vmem [shape: f32[4,1,8], index: 9, kind: input, shape index: {}]   ;;  %s3645_s10 = inlined_call_operand.vmem [shape: bf16[32,32], index: 10, kind: input, shape index: {}]   ;;  %s3646_s11 = inlined_call_operand.vmem [shape: f32[1,32], index: 11, kind: input, shape index: {}]   ;;  %s3647_s12 = inlined_call_operand.vmem [shape: bf16[32,32], index: 12, kind: input, shape index: {}]   ;;  %s3648_s13 = inlined_call_operand.vmem [shape: f32[1,32], index: 13, kind: input, shape index: {}]   ;;  %s3649_s14 = inlined_call_operand.vmem [shape: bf16[4,32,8], index: 14, kind: input, shape index: {}]   ;;  %s3650_s15 = inlined_call_operand.vmem [shape: f32[4,1,8], index: 15, kind: input, shape index: {}]   ;;  %s3651_s16 = inlined_call_operand.vmem [shape: bf16[4,32,8], index: 16, kind: input, shape index: {}]   ;;  %s3652_s17 = inlined_call_operand.vmem [shape: f32[4,1,8], index: 17, kind: input, shape index: {}]   ;;  %s3653_s18 = inlined_call_operand.vmem [shape: bf16[32,32], index: 18, kind: input, shape index: {}]   ;;  %s3654_s19 = inlined_call_operand.vmem [shape: f32[1,32], index: 19, kind: input, shape index: {}]   ;;  %s3655_s20 = inlined_call_operand.vmem [shape: bf16[32,64], index: 20, kind: input, shape index: {}]   ;;  %s3656_s21 = inlined_call_operand.vmem [shape: f32[1,64], index: 21, kind: input, shape index: {}]   ;;  %s3657_s22 = inlined_call_operand.vmem [shape: bf16[64,32], index: 22, kind: input, shape index: {}]   ;;  %s3658_s23 = inlined_call_operand.vmem [shape: f32[1,32], index: 23, kind: input, shape index: {}]   ;;  %s3659_s24 = inlined_call_operand.vmem [shape: f32[3,1,32], index: 24, kind: input, shape index: {}]   ;;  %s3660_s25 = inlined_call_operand.vmem [shape: f32[3,1,32], index: 25, kind: input, shape index: {}]   ;;  %s3661_s26 = inlined_call_operand.hbm [shape: bf16[2,8,32], index: 26, kind: output, shape index: {}]  }
   0x1   :  { %3687 = sst [smem:[#allocation20_spill]] %s3635_s0 }
   0x2   :  { %3688 = sst [smem:[#allocation21_spill]] %s3636_s1 }
   0x3   :  { %3689 = sst [smem:[#allocation22_spill]] %s3637_s2 }
   0x4   :  { %3690 = sst [smem:[#allocation23_spill]] %s3638_s3 }
   0x5   :  { %3691 = sst [smem:[#allocation24_spill]] %s3639_s4 }
   0x6   :  { %3692 = sst [smem:[#allocation25_spill]] %s3640_s5 }
   0x7   :  { %3693 = sst [smem:[#allocation26_spill]] %s3641_s6 }
   0x8   :  { %3694 = sst [smem:[#allocation27_spill]] %s3642_s7 }
   0x9   :  { %3695 = sst [smem:[#allocation28_spill]] %s3643_s8 }
   0xa   :  { %3696 = sst [smem:[#allocation29_spill]] %s3644_s9 }
   0xb   :  { %3697 = sst [smem:[#allocation30_spill]] %s3645_s10 }
   0xc   :  { %3698 = sst [smem:[#allocation31_spill]] %s3646_s11 }
   0xd   :  { %3699 = sst [smem:[#allocation32_spill]] %s3647_s12 }
   0xe   :  { %3700 = sst [smem:[#allocation33_spill]] %s3648_s13 }
   0xf   :  { %3701 = sst [smem:[#allocation34_spill]] %s3661_s26 }
  0x10   :  { %31 = vsyncpa [#allocation8], 0 }
  0x11   :  { %33 = vsyncpa [#allocation8 + $0x1], 0  ;;  %s3156_s27 = smov 0   ;;  %s3158_s3 = smov 0  }
  0x12   :  { %s3160_s7 = smov 0   ;;  %s3162_s28 = smov 0  }
  0x13   :  { %s3164_s8 = smov 0   ;;  %s3166_s4 = smov 0  }
  0x14 LB: > { %3702 = sst [smem:[#allocation10_spill]] %s2991_s27  ;;  %s2456_s29 = sadd.s32 4294967295, %s3011_s4   ;;  %s3011_s4 = sphi %s3166_s4, %s39_s4   ;;  %s3007_s8 = sphi %s3164_s8, %s3748_s8   ;;  %s3003_s28 = sphi %s3162_s28, %s3747_s28   ;;  %s2999_s7 = sphi %s3160_s7, %s3746_s7   ;;  %s2995_s3 = sphi %s3158_s3, %s3745_s3   ;;  %s2991_s27 = sphi %s3156_s27, %s3744_s27  }
  0x15   : > { %3703 = sst [smem:[#allocation11_spill]] %s2995_s3  ;;  %s2457_s0 = sadd.s32 4294967294, %s3011_s4  }
  0x16   : > { %3704 = sst [smem:[#allocation12_spill]] %s2999_s7  ;;  %s51_s9 = sadd.s32 1, %s3007_s8 }
  0x17   : > { %3705 = sst [smem:[#allocation13_spill]] %s3003_s28  ;;  %s626_s30 = sadd.s32 1, %s2999_s7 }
  0x18   : > { %3706 = sst [smem:[#allocation14_spill]] %s3007_s8  ;;  %p53_p0 = scmp.ge.s32.totalorder %s51_s9, 2 }
  0x19   : > { %3707 = sst [smem:[#allocation15_spill]] %s3011_s4  ;;  %p636_p1 = scmp.ne.s32.totalorder %s2999_s7, %s2995_s3 }
  0x1a   : > { %p637_p2 = scmp.eq.s32.totalorder %s2456_s29, 1  ;;  %p642_p3 = scmp.ne.s32.totalorder %s2995_s3, %s2991_s27 }
  0x1b   : > { %s3750_s9 = smov (%p53_p0, %s51_s9), 0  ;;  %p643_p5 = scmp.eq.s32.totalorder %s2457_s0, 1 }
  0x1c   : > { %3708 = sst [smem:[#allocation16_spill]] %s3750_s9  ;;  %p3196_p4 = por %p637_p2, %p636_p1 }
  0x1d   : > { %s621_s5 = ssub.s32 %s3007_s8, %s3750_s9  ;;  %p2462_p6 = scmp.ge.s32.totalorder %s3011_s4, 1 }
  0x1e   : > { %s3709_s2 = scalar_select %p3196_p4, 1, 0 }
  0x1f   : > { %p624_p7 = scmp.eq.s32.totalorder %s621_s5, 0  ;;  %p3203_p8 = por %p643_p5, %p642_p3 }
  0x20   : > { %3710 = sst [smem:[#allocation17_spill]] %s3709_s2  ;;  %p755_p9 = scmp.lt.s32.totalorder %s3011_s4, 3 }
  0x21   : > { %s3711_s10 = scalar_select %p3203_p8, 1, 0 }
  0x22   : > { %s3209_s6 = scalar_select %p624_p7, %s2999_s7, %s626_s30  }
  0x23   : > { %3712 = sst [smem:[#allocation18_spill]] %s3711_s10  ;;  %p756_p10 = pnand %p2462_p6, %p755_p9 }
  0x24   : > { %3713 = sst [smem:[#allocation19_spill]] %s3209_s6  ;;  %p836_p11 = scmp.lt.s32.totalorder (!%p756_p10), %s3003_s28, 1 }
  0x25   : > { %759 = sbr.rel (%p756_p10) target bundleno = 3267 (0xcc3), region = 124  ;;  %s3714_s27 = sld [smem:[#allocation26_spill]] (!%p756_p10) }
  0x26   : > { %s3717_s4 = sld [smem:[#allocation24_spill]] (!%p756_p10)  ;;  %s3014_s9 = smov (!%p756_p10), 120  }
  0x27   : > { %s3719_s2 = sld [smem:[#allocation28_spill]] (!%p756_p10)  ;;  %s3682_s0 = smov (!%p756_p10), 112  }
  0x28   : > { %s3721_s3 = sld [smem:[#allocation21_spill]] (!%p756_p10) }
  0x29   : > { %s3724_s1 = sld [smem:[#allocation29_spill]] (!%p756_p10) }
  0x2a   : > { %s3219_s5 = scalar_select %p836_p11, %s3003_s28, 1  ;;  %vm879_vm0 = vcmask 261120   ;;  %v2763_v11 = vld [vmem:[%s3651_s16 + $0x8] sm:$0xff]  ;;  %v2762_v14 = vld [vmem:[%s3651_s16] sm:$0xff]  ;;  %v2771_v20 = vld [vmem:[%s3651_s16 + $0x18] sm:$0xff]  ;;  %vm897_vm1 = vcmask 60416  }
  0x2b   : > { %s3715_s26 = smov %s3714_s27  ;;  %v2757_v0 = vld [vmem:[%s3714_s27 + $0x8] sm:$0xff]  ;;  %s3716_s27 = sld [smem:[#allocation20_spill]]  ;;  %998 = vmatpush.bf16.msra.mxu3 %v2763_v11  ;;  %v2770_v23 = vld [vmem:[%s3651_s16 + $0x10] sm:$0xff]  ;;  %v2778_v26 = vld [vmem:[%s3651_s16 + $0x20] sm:$0xff]  ;;  %vm1518_vm2 = vcmask 64512   ;;  %vm1554_vm3 = vcmask 1043456  }
  0x2c   : > { %v2756_v1 = vld [vmem:[%s3715_s26] sm:$0xff]  ;;  %889 = vmatpush.bf16.msra.mxu0 %v2757_v0  ;;  %v2765_v2 = vld [vmem:[%s3715_s26 + $0x18] sm:$0xff]  ;;  %s3676_s30 = sshll.u32 %s3219_s5, 2  ;;  %v2764_v3 = vld [vmem:[%s3715_s26 + $0x10] sm:$0xff]  ;;  %s3718_s10 = smov %s3717_s4  ;;  %vm1638_vm5 = vcmask 126016   ;;  %vm1701_vm6 = vcmask 191616  }
  0x2d   : > { %v2773_v5 = vld [vmem:[%s3715_s26 + $0x28] sm:$0xff]  ;;  %v2772_v6 = vld [vmem:[%s3715_s26 + $0x20] sm:$0xff]  ;;  %v2781_v7 = vld [vmem:[%s3715_s26 + $0x38] sm:$0xff]  ;;  %s3720_s8 = sshll.u32 %s3219_s5, 2  ;;  %s3681_s5 = smov 104   ;;  %vm1764_vm7 = vcmask 257216  }
  0x2e   : > { %v2780_v8 = vld [vmem:[%s3715_s26 + $0x30] sm:$0xff]  ;;  %v2789_v9 = vld [vmem:[%s3717_s4 + $0x8] sm:$0xff]  ;;  %v2788_v12 = vld [vmem:[%s3718_s10] sm:$0xff]  ;;  %s843_s28 = scalar_lea.vmem %s3721_s3, %s3720_s8  ;;  %s3722_s3 = sld [smem:[#allocation27_spill]] }
  0x2f   : > { %v2759_v10 = vld [vmem:[%s3719_s2 + $0x8] sm:$0xff]  ;;  %v2758_v13 = vld [vmem:[%s3719_s2] sm:$0xff]  ;;  %v2767_v15 = vld [vmem:[%s3719_s2 + $0x18] sm:$0xff]  ;;  %999 = vmatpush.bf16.msra.mxu3 %v2762_v14  ;;  %s3726_s7 = sld [smem:[#allocation22_spill]]  ;;  %s3683_s4 = smov 24  }
  0x30   : > { %890 = vmatpush.bf16.msra.mxu0 %v2756_v1  ;;  %925 = vmatpush.bf16.msra.mxu1 %v2759_v10  ;;  %v3277_v16 = vld [vmem:[%s843_s28] sm:$0xf]  ;;  %v2766_v17 = vld [vmem:[%s3719_s2 + $0x10] sm:$0xff]  ;;  %v2775_v19 = vld [vmem:[%s3719_s2 + $0x28] sm:$0xff]  ;;  %s3727_s12 = sld [smem:[#allocation32_spill]] }
  0x31   : > { %s3230_s6 = scalar_lea.vmem %s3716_s27, %s3676_s30  ;;  %v2774_v21 = vld [vmem:[%s3719_s2 + $0x20] sm:$0xff]  ;;  %v2783_v22 = vld [vmem:[%s3719_s2 + $0x38] sm:$0xff]  ;;  %v2782_v24 = vld [vmem:[%s3719_s2 + $0x30] sm:$0xff]  ;;  %s3730_s11 = sld [smem:[#allocation31_spill]] }
  0x32   : > { %v857_v4 = vld [vmem:[%s3230_s6] sm:$0xf]  ;;  %2501 = vmatmul.msk.bf16.vlgmr.msra.gmra.mxu3 %vm879_vm0, %v3277_v16  ;;  %v2779_v25 = vld [vmem:[%s3651_s16 + $0x28] sm:$0xff]  ;;  %v2787_v27 = vld [vmem:[%s3651_s16 + $0x38] sm:$0xff]  ;;  %s3731_s13 = sld [smem:[#allocation33_spill]] }
  0x33   : > { %2474 = vmatmul.msk.bf16.vlgmr.msra.gmra.mxu0 %vm879_vm0, %v857_v4  ;;  %v3288_v18 = vld [vmem:[%s3230_s6] sm:$0xf]  ;;  %1149 = vmatpush.bf16.msrb.mxu3 %v2771_v20  ;;  %v2786_v28 = vld [vmem:[%s3651_s16 + $0x30] sm:$0xff]  ;;  %s3737_s28 = sld [smem:[#allocation13_spill]] }
  0x34   : > { %1035 = vmatpush.bf16.msrb.mxu0 %v2765_v2  ;;  %926 = vmatpush.bf16.msra.mxu1 %v2758_v13  ;;  %s3723_s29 = smov %s3722_s3  ;;  %v2865_v29 = vld [vmem:[%s3722_s3] ss:$0 sm:$0xff]  ;;  %s3725_s3 = sld [smem:[#allocation25_spill]]  ;;  %v2871_v63 = vld [vmem:[%s3724_s1 + $0x1] ss:$0 sm:$0xff] }
  0x35   : > { %v2866_v36 = vld [vmem:[%s3723_s29 + $0x1] ss:$0 sm:$0xff]  ;;  %v2867_v43 = vld [vmem:[%s3723_s29 + $0x2] ss:$0 sm:$0xff]  ;;  %v2868_v50 = vld [vmem:[%s3723_s29 + $0x3] ss:$0 sm:$0xff] }
  0x36   : > { %v2870_v53 = vld [vmem:[%s3724_s1] ss:$0 sm:$0xff]  ;;  %v2872_v10 = vld [vmem:[%s3724_s1 + $0x2] ss:$0 sm:$0xff] }
  0x37   : > { %2483 = vmatmul.msk.bf16.vlgmr.msra.gmra.mxu1 %vm879_vm0, %v857_v4  ;;  %1150 = vmatpush.bf16.msrb.mxu3 %v2770_v23 }
  0x38   : > { %1036 = vmatpush.bf16.msrb.mxu0 %v2764_v3  ;;  %1073 = vmatpush.bf16.msrb.mxu1 %v2767_v15  ;;  %v2873_v15 = vld [vmem:[%s3724_s1 + $0x3] ss:$0 sm:$0xff] }
  0x3a   : > { %v2869_v62 = vld [vmem:[%s3725_s3] ss:$0 sm:$0xff]  ;;  %s3728_s3 = sld [smem:[#allocation30_spill]] }
  0x3b   : > { %1301 = vmatpush.bf16.msra.mxu3 %v2779_v25  ;;  %v2760_v25 = vld [vmem:[%s3649_s14] sm:$0xff] }
  0x3c   : > { %1187 = vmatpush.bf16.msra.mxu0 %v2773_v5  ;;  %1074 = vmatpush.bf16.msrb.mxu1 %v2766_v17 }
  0x3f   : > { %1302 = vmatpush.bf16.msra.mxu3 %v2778_v26  ;;  %v2769_v26 = vld [vmem:[%s3649_s14 + $0x18] sm:$0xff] }
  0x40   : > { %1188 = vmatpush.bf16.msra.mxu0 %v2772_v6  ;;  %1225 = vmatpush.bf16.msra.mxu1 %v2775_v19  ;;  %s3729_s30 = smov %s3728_s3 }
  0x42   : > { %2557 = vmatmul.msk.bf16.vlgmr.msrb.gmra.mxu3 %vm879_vm0, %v3277_v16 }
  0x43   : > { %2515 = vmatmul.msk.bf16.vlgmr.msrb.gmra.mxu0 %vm879_vm0, %v857_v4  ;;  %1453 = vmatpush.bf16.msrb.mxu3 %v2787_v27 }
  0x44   : > { %1339 = vmatpush.bf16.msrb.mxu0 %v2781_v7  ;;  %1226 = vmatpush.bf16.msra.mxu1 %v2774_v21 }
  0x47   : > { %2529 = vmatmul.msk.bf16.vlgmr.msrb.gmra.mxu1 %vm879_vm0, %v857_v4  ;;  %1454 = vmatpush.bf16.msrb.mxu3 %v2786_v28 }
  0x48   : > { %1340 = vmatpush.bf16.msrb.mxu0 %v2780_v8  ;;  %1377 = vmatpush.bf16.msrb.mxu1 %v2783_v22  ;;  %v2761_v22 = vld [vmem:[%s3649_s14 + $0x8] sm:$0xff] }
  0x49   : > { %963 = vmatpush.bf16.msra.mxu2 %v2761_v22 }
  0x4c   : > { %1378 = vmatpush.bf16.msrb.mxu1 %v2782_v24  ;;  %v2874_v24 = vld [vmem:[%s3652_s17] ss:$0 sm:$0xff] }
  0x4d   : > { %964 = vmatpush.bf16.msra.mxu2 %v2760_v25 }
  0x50   : > { %2492 = vmatmul.msk.bf16.vlgmr.msra.gmra.mxu2 %vm879_vm0, %v3277_v16 }
  0x51   : > { %1111 = vmatpush.bf16.msrb.mxu2 %v2769_v26 }
  0x52   : > { %2613 = vmatmul.msk.bf16.vlgmr.msra.gmra.mxu3 %vm879_vm0, %v3277_v16 }
  0x53   : > { %2571 = vmatmul.msk.bf16.vlgmr.msra.gmra.mxu0 %vm879_vm0, %v857_v4 }
  0x54   : > { %1509 = vmatpush.bf16.msra.mxu0 %v2789_v9 }
  0x57   : > { %2585 = vmatmul.msk.bf16.vlgmr.msra.gmra.mxu1 %vm879_vm0, %v857_v4 }
  0x58   : > { %1510 = vmatpush.bf16.msra.mxu0 %v2788_v12 }
  0x62   : > { %2669 = vmatmul.msk.bf16.vlgmr.msrb.gmra.mxu3 %vm879_vm0, %v3277_v16 }
  0x63   : > { %2627 = vmatmul.msk.bf16.vlgmr.msrb.gmra.mxu0 %vm879_vm0, %v857_v4 }
  0x67   : > { %2641 = vmatmul.msk.bf16.vlgmr.msrb.gmra.mxu1 %vm879_vm0, %v857_v4 }
  0x73   : > { %2678 = vmatmul.msk.bf16.vlgmr.msra.gmra.mxu0 %vm879_vm0, %v3288_v18 }
  0xb0   : > { %v892_v30 = vpop.f32.mrf.mxu0 }
  0xb1   : > { %v893_v31 = vadd.f32 %v2865_v29, %v892_v30  ;;  %v1469_v29 = vld [vmem:[%s3726_s7] sm:$0x3]  ;;  %v2768_v30 = vld [vmem:[%s3649_s14 + $0x10] sm:$0xff]  ;;  %s3732_s7 = smov 112  }
  0xb2   : > { %1112 = vmatpush.bf16.msrb.mxu2 %v2768_v30 }
  0xb3   : > { %v896_v32 = vpack.c.bf16 %v893_v31, %v893_v31  ;;  %v2777_v31 = vld [vmem:[%s3649_s14 + $0x28] sm:$0xff] }
  0xb4   : > { %v928_v54 = vpop.f32.mrf.mxu1 }
  0xb5   : > { %898 = vst.msk [vmem:[#allocation2] sm:$0xf] %vm897_vm1, %v896_v32  ;;  %v929_v56 = vadd.f32 %v2870_v53, %v928_v54  ;;  %v1001_v23 = vpop.f32.mrf.mxu3  ;;  %2543 = vmatmul.msk.bf16.vlgmr.msrb.gmra.mxu2 %vm879_vm0, %v3277_v16  ;;  %v2876_v54 = vld [vmem:[%s3652_s17 + $0x2] ss:$0 sm:$0xff] }
  0xb6   : > { %v1002_v27 = vadd.f32 %v2874_v24, %v1001_v23  ;;  %1263 = vmatpush.bf16.msra.mxu2 %v2777_v31  ;;  %v2878_v24 = vld [vmem:[%s3650_s15] ss:$0 sm:$0xff] }
  0xb7   : > { %v932_v57 = vpack.c.bf16 %v929_v56, %v929_v56 }
  0xb8   : > { %v894_v33 = vpop.f32.mrf.mxu0  ;;  %v1005_v28 = vpack.c.bf16 %v1002_v27, %v1002_v27 }
  0xb9   : > { %933 = vst.msk [vmem:[#allocation3] sm:$0xf] %vm897_vm1, %v932_v57  ;;  %v1470_v33 = vunpack.c.0.s8 %v1469_v29 }
  0xba   : > { %1006 = vst.msk [vmem:[#allocation5] sm:$0xf] %vm897_vm1, %v1005_v28 }
  0xbc   : > { %v1517_v34 = vld [vmem:[#allocation2] sm:$0xf]  ;;  %v930_v59 = vpop.f32.mrf.mxu1 }
  0xbd   : > { %v1523_v35 = vsel %vm1518_vm2, %v1517_v34, 0  ;;  %v1003_v32 = vpop.f32.mrf.mxu3 }
  0xbe   : > { %1532 = vmatpush.bf16.xpose.msra.mxu1 %v1523_v35 }
  0xc0   : > { %v1038_v37 = vpop.f32.mrf.mxu0 }
  0xc1   : > { %v1039_v38 = vadd.f32 %v2866_v36, %v1038_v37  ;;  %v2776_v36 = vld [vmem:[%s3649_s14 + $0x20] sm:$0xff]  ;;  %v1471_v37 = vcvt.s32.f32 %v1470_v33 }
  0xc2   : > { %1264 = vmatpush.bf16.msra.mxu2 %v2776_v36 }
  0xc3   : > { %v1042_v39 = vpack.c.bf16 %v1039_v38, %v1039_v38  ;;  %v2875_v38 = vld [vmem:[%s3652_s17 + $0x1] ss:$0 sm:$0xff]  ;;  %vm1472_vm4 = vcmp.eq.f32.partialorder %v1471_v37, 0.0 }
  0xc4   : > { %v1076_v2 = vpop.f32.mrf.mxu1 }
  0xc5   : > { %1044 = vst.msk [vmem:[#allocation2 + $0x4] sm:$0xf] %vm897_vm1, %v1042_v39  ;;  %v1077_v3 = vadd.f32 %v2871_v63, %v1076_v2  ;;  %2599 = vmatmul.msk.bf16.vlgmr.msra.gmra.mxu2 %vm879_vm0, %v3277_v16  ;;  %v2877_v63 = vld [vmem:[%s3652_s17 + $0x3] ss:$0 sm:$0xff] }
  0xc7   : > { %v1080_v5 = vpack.c.bf16 %v1077_v3, %v1077_v3 }
  0xc8   : > { %v1040_v40 = vpop.f32.mrf.mxu0 }
  0xc9   : > { %1082 = vst.msk [vmem:[#allocation3 + $0x4] sm:$0xf] %vm897_vm1, %v1080_v5  ;;  %v1152_v40 = vpop.f32.mrf.mxu3 }
  0xcc   : > { %v1575_v41 = vld [vmem:[#allocation2 + $0x4] sm:$0xf]  ;;  %v1078_v9 = vpop.f32.mrf.mxu1 }
  0xcd   : > { %v1585_v42 = vsel %vm1518_vm2, %v1575_v41, 0  ;;  %v1153_v41 = vadd.f32 %v2875_v38, %v1152_v40 }
  0xce   : > { %1594 = vmatpush.bf16.xpose.msra.mxu3 %v1585_v42 }
  0xcf   : > { %v1156_v42 = vpack.c.bf16 %v1153_v41, %v1153_v41 }
  0xd0   : > { %v1190_v44 = vpop.f32.mrf.mxu0  ;;  %v1613_v34 = vld [vmem:[#allocation3 + $0x4] sm:$0xf] }
  0xd1   : > { %v1191_v45 = vadd.f32 %v2867_v43, %v1190_v44  ;;  %v1618_v35 = vsel %vm1554_vm3, %v1613_v34, 0  ;;  %v3016_v43 = vmov 0.0   ;;  %1158 = vst.msk [vmem:[#allocation5 + $0x4] sm:$0xf] %vm897_vm1, %v1156_v42  ;;  %v2879_v34 = vld [vmem:[%s3650_s15 + $0x1] ss:$0 sm:$0xff] }
  0xd2   : > { %1627 = vmatpush.bf16.msrb.mxu0 %v1618_v35  ;;  %v1473_v44 = vsel %vm1472_vm4, -1e+09, %v3016_v43 }
  0xd3   : > { %v1194_v46 = vpack.c.bf16 %v1191_v45, %v1191_v45  ;;  %v966_v25 = vpop.f32.mrf.mxu2 }
  0xd4   : > { %v1228_v11 = vpop.f32.mrf.mxu1  ;;  %v967_v26 = vadd.f32 %v2878_v24, %v966_v25 }
  0xd5   : > { %1196 = vst.msk [vmem:[#allocation2 + $0x8] sm:$0xf] %vm897_vm1, %v1194_v46  ;;  %v1229_v12 = vadd.f32 %v2872_v10, %v1228_v11  ;;  %v2785_v46 = vld [vmem:[%s3649_s14 + $0x38] sm:$0xff] }
  0xd6   : > { %1415 = vmatpush.bf16.msrb.mxu2 %v2785_v46  ;;  %v970_v29 = vpack.c.bf16 %v967_v26, %v967_v26 }
  0xd7   : > { %v1232_v13 = vpack.c.bf16 %v1229_v12, %v1229_v12 }
  0xd8   : > { %v1192_v47 = vpop.f32.mrf.mxu0  ;;  %971 = vst.msk [vmem:[#allocation4] sm:$0xf] %vm897_vm1, %v970_v29 }
  0xd9   : > { %1234 = vst.msk [vmem:[#allocation3 + $0x8] sm:$0xf] %vm897_vm1, %v1232_v13 }
  0xdb   : > { %v968_v31 = vpop.f32.mrf.mxu2 }
  0xdc   : > { %v1641_v48 = vld [vmem:[#allocation2 + $0x8] sm:$0xf]  ;;  %v1230_v14 = vpop.f32.mrf.mxu1 }
  0xdd   : > { %v1648_v49 = vsel %vm1518_vm2, %v1641_v48, 0 }
  0xde   : > { %1657 = vmatpush.bf16.xpose.msrb.mxu1 %v1648_v49  ;;  %v1154_v49 = vpop.f32.mrf.mxu3 }
  0xe0   : > { %v1342_v51 = vpop.f32.mrf.mxu0  ;;  %v1676_v3 = vld [vmem:[#allocation3 + $0x8] sm:$0xf] }
  0xe1   : > { %v1343_v52 = vadd.f32 %v2868_v50, %v1342_v51  ;;  %v2784_v51 = vld [vmem:[%s3649_s14 + $0x30] sm:$0xff] }
  0xe2   : > { %1416 = vmatpush.bf16.msrb.mxu2 %v2784_v51 }
  0xe3   : > { %v1346_v55 = vpack.c.bf16 %v1343_v52, %v1343_v52 }
  0xe4   : > { %v1380_v17 = vpop.f32.mrf.mxu1 }
  0xe5   : > { %1348 = vst.msk [vmem:[#allocation2 + $0xc] sm:$0xf] %vm897_vm1, %v1346_v55  ;;  %v1381_v19 = vadd.f32 %v2873_v15, %v1380_v17  ;;  %2655 = vmatmul.msk.bf16.vlgmr.msrb.gmra.mxu2 %vm879_vm0, %v3277_v16 }
  0xe6   : > { %v1304_v57 = vpop.f32.mrf.mxu3 }
  0xe7   : > { %v1384_v20 = vpack.c.bf16 %v1381_v19, %v1381_v19 }
  0xe8   : > { %v1344_v58 = vpop.f32.mrf.mxu0 }
  0xe9   : > { %1386 = vst.msk [vmem:[#allocation3 + $0xc] sm:$0xf] %vm897_vm1, %v1384_v20  ;;  %v1305_v58 = vadd.f32 %v2876_v54, %v1304_v57 }
  0xeb   : > { %v1308_v59 = vpack.c.bf16 %v1305_v58, %v1305_v58 }
  0xec   : > { %v1704_v60 = vld [vmem:[#allocation2 + $0xc] sm:$0xf]  ;;  %v1382_v21 = vpop.f32.mrf.mxu1 }
  0xed   : > { %v1711_v61 = vsel %vm1518_vm2, %v1704_v60, 0  ;;  %v1550_v60 = vld [vmem:[#allocation3] sm:$0xf]  ;;  %1310 = vst.msk [vmem:[#allocation5 + $0x8] sm:$0xf] %vm897_vm1, %v1308_v59  ;;  %v2793_v59 = vld [vmem:[%s3727_s12 + $0x8] sm:$0xff] }
  0xee   : > { %1720 = vmatpush.bf16.xpose.msrb.mxu3 %v1711_v61  ;;  %v1556_v61 = vsel %vm1554_vm3, %v1550_v60, 0 }
  0xef   : > { %1565 = vmatpush.bf16.msra.mxu2 %v1556_v61  ;;  %v2881_v61 = vld [vmem:[%s3650_s15 + $0x3] ss:$0 sm:$0xff] }
  0xf0   : > { %v1512_v0 = vpop.f32.mrf.mxu0  ;;  %v1739_v52 = vld [vmem:[#allocation3 + $0xc] sm:$0xf] }
  0xf1   : > { %v1513_v1 = vadd.f32 %v2869_v62, %v1512_v0  ;;  %v1744_v53 = vsel %vm1554_vm3, %v1739_v52, 0  ;;  %v1306_v62 = vpop.f32.mrf.mxu3  ;;  %v2880_v52 = vld [vmem:[%s3650_s15 + $0x2] ss:$0 sm:$0xff] }
  0xf2   : > { %1753 = vmatpush.bf16.msra.mxu0 %v1744_v53  ;;  %v2792_v62 = vld [vmem:[%s3727_s12] sm:$0xff] }
  0xf3   : > { %v1516_v4 = vpack.c.bf16 %v1513_v1, %v1513_v1 }
  0xf4   : > { %v2037_v26 = vld [vmem:[#allocation5 + $0x8] sm:$0xf] }
  0xf5   : > { %v1577_v6 = vunpack.c.l.b16 %v1516_v4  ;;  %2679 = vmatmul.msk.bf16.vlgmr.msra.gmra.mxu1 %vm1518_vm2, %v1516_v4  ;;  %v1681_v4 = vsel %vm1554_vm3, %v1676_v3, 0 }
  0xf6   : > { %1690 = vmatpush.bf16.msrb.mxu2 %v1681_v4  ;;  %v1882_v4 = vld [vmem:[#allocation4] sm:$0xf] }
  0xf7   : > { %v1578_v7 = vpack.c.b16 %v1577_v6, %v1577_v6 }
  0xf8   : > { %v1514_v8 = vpop.f32.mrf.mxu0 }
  0xf9   : > { %1705 = vrot.lane.b32.xlu1 %v1578_v7, %s3681_s5  ;;  %1579 = vrot.lane.b32.xlu0 %v1578_v7, %s3014_s9  ;;  %v1456_v0 = vpop.f32.mrf.mxu3  ;;  %s3017_s5 = smov 8  }
  0xfa   : > { %v1457_v1 = vadd.f32 %v2877_v63, %v1456_v0 }
  0xfc   : > { %v1460_v2 = vpack.c.bf16 %v1457_v1, %v1457_v1 }
  0xfe   : > { %1462 = vst.msk [vmem:[#allocation5 + $0xc] sm:$0xf] %vm897_vm1, %v1460_v2 }
 0x101   : > { %1642 = vrot.lane.b32.xlu0 %v1578_v7, %s3682_s0  ;;  %v1458_v5 = vpop.f32.mrf.mxu3  ;;  %s3018_s0 = smov 16  }
 0x102   : > { %v2791_v5 = vld [vmem:[%s3728_s3 + $0x8] sm:$0xff]  ;;  %s3733_s3 = smov 104  }
 0x103   : > { %1796 = vmatpush.bf16.msra.mxu1 %v2791_v5 }
 0x138   : > { %v1114_v38 = vpop.f32.mrf.mxu2 }
 0x16b   : > { %v1580_v39 = vpop.permute.xlu0 %1579  ;;  %v1706_v56 = vpop.permute.xlu1 %1705 }
 0x16c   : > { %2681 = vmatmul.msk.bf16.vlgmr.msra.gmra.mxu3 %vm1518_vm2, %v1580_v39  ;;  %v1115_v39 = vadd.f32 %v2879_v34, %v1114_v38 }
 0x16e   : > { %v1118_v42 = vpack.c.bf16 %v1115_v39, %v1115_v39 }
 0x170   : > { %1120 = vst.msk [vmem:[#allocation4 + $0x4] sm:$0xf] %vm897_vm1, %v1118_v42 }
 0x172   : > { %v1534_v45 = vpop.f32.mrf.mxu1 }
 0x173   : > { %v1535_v47 = vadd.f32 %v1534_v45, %v1473_v44  ;;  %v1643_v48 = vpop.permute.xlu0 %1642 }
 0x174   : > { %2683 = vmatmul.msk.bf16.vlgmr.msrb.gmra.mxu1 %vm1518_vm2, %v1643_v48  ;;  %v1116_v48 = vpop.f32.mrf.mxu2 }
 0x175   : > { %v1538_v50 = vsel %vm1518_vm2, %v1535_v47, -inf  ;;  %v2882_v48 = vld [vmem:[%s3730_s11] ss:$0 sm:$0xff] }
 0x176   : > { %1539 = vmax.xlane.f32.xlu1 %v1538_v50 }
 0x17a   : > { %v1536_v55 = vpop.f32.mrf.mxu1 }
 0x17c   : > { %2685 = vmatmul.msk.bf16.vlgmr.msrb.gmra.mxu3 %vm1518_vm2, %v1706_v56  ;;  %v1266_v55 = vpop.f32.mrf.mxu2 }
 0x17d   : > { %v1267_v56 = vadd.f32 %v2880_v52, %v1266_v55  ;;  %v3020_v55 = vmov 32.0  }
 0x17f   : > { %v1270_v57 = vpack.c.bf16 %v1267_v56, %v1267_v56 }
 0x181   : > { %1272 = vst.msk [vmem:[#allocation4 + $0x8] sm:$0xf] %vm897_vm1, %v1270_v57 }
 0x184   : > { %v1268_v58 = vpop.f32.mrf.mxu2 }
 0x18c   : > { %v1418_v60 = vpop.f32.mrf.mxu2 }
 0x18d   : > { %v1419_v63 = vadd.f32 %v2881_v61, %v1418_v60 }
 0x18f   : > { %v1422_v0 = vpack.c.bf16 %v1419_v63, %v1419_v63 }
 0x191   : > { %1424 = vst.msk [vmem:[#allocation4 + $0xc] sm:$0xf] %vm897_vm1, %v1422_v0 }
 0x194   : > { %v1420_v1 = vpop.f32.mrf.mxu2 }
 0x1e9   : > { %v1540_v6 = vpop.xlane.xlu1 %1539 }
 0x1ea   : > { %v1541_v9 = vsub.f32 %v1535_v47, %v1540_v6 }
 0x1ec   : > { %v1542_v12 = vmul.f32 1.442695, %v1541_v9  ;;  %v1937_v9 = vld [vmem:[#allocation4 + $0x4] sm:$0xf] }
 0x1ee   : > { %2893 = vpow2.f32 %v1542_v12  ;;  %v2790_v12 = vld [vmem:[%s3729_s30] sm:$0xff] }
 0x1ef   : > { %v1596_v7 = vpop.f32.mrf.mxu3  ;;  %1797 = vmatpush.bf16.msra.mxu1 %v2790_v12 }
 0x1f0   : > { %v1597_v8 = vadd.f32 %v1596_v7, %v1473_v44 }
 0x1f1   : > { %v1659_v10 = vpop.f32.mrf.mxu1 }
 0x1f2   : > { %v1600_v11 = vsel %vm1518_vm2, %v1597_v8, -inf  ;;  %v1660_v13 = vadd.f32 %v1659_v10, %v1473_v44  ;;  %v2002_v10 = vld [vmem:[#allocation4 + $0x8] sm:$0xf] }
 0x1f3   : > { %1601 = vmax.xlane.f32.xlu2 %v1600_v11  ;;  %v1914_v11 = vld [vmem:[#allocation5] sm:$0xf] }
 0x1f4   : > { %v1663_v17 = vsel %vm1518_vm2, %v1660_v13, -inf  ;;  %v2894_v19 = vpop.eup %2893 }
 0x1f5   : > { %v1544_v22 = vsel %vm1518_vm2, %v2894_v19, 0.0 }
 0x1f7   : > { %v1598_v14 = vpop.f32.mrf.mxu3 }
 0x1f9   : > { %v1661_v15 = vpop.f32.mrf.mxu1 }
 0x1fa   : > { %v1947_v15 = vsel %vm1518_vm2, %v1937_v9, 0 }
 0x1fb   : > { %1664 = vmax.xlane.f32.xlu2 %v1663_v17  ;;  %v1919_v17 = vsel %vm1554_vm3, %v1914_v11, 0  ;;  %1956 = vmatpush.bf16.xpose.msrb.mxu1 %v1947_v15  ;;  %v2883_v11 = vld [vmem:[%s3659_s24] ss:$0 sm:$0xff] }
 0x1ff   : > { %v1722_v20 = vpop.f32.mrf.mxu3 }
 0x200   : > { %v1723_v16 = vadd.f32 %v1722_v20, %v1473_v44 }
 0x202   : > { %v1726_v21 = vsel %vm1518_vm2, %v1723_v16, -inf }
 0x203   : > { %1727 = vmax.xlane.f32.xlu0 %v1726_v21  ;;  %1545 = vadd.xlane.f32.xlu2 %v1544_v22  ;;  %v1975_v21 = vld [vmem:[#allocation5 + $0x4] sm:$0xf] }
 0x207   : > { %v1724_v23 = vpop.f32.mrf.mxu3 }
 0x208   : > { %v1980_v23 = vsel %vm1554_vm3, %v1975_v21, 0  ;;  %v2885_v21 = vld [vmem:[%s3731_s13] ss:$0 sm:$0xff] }
 0x266   : > { %v1602_v27 = vpop.xlane.xlu2 %1601 }
 0x267   : > { %v1603_v28 = vsub.f32 %v1597_v8, %v1602_v27  ;;  %v1887_v8 = vsel %vm1518_vm2, %v1882_v4, 0 }
 0x268   : > { %1896 = vmatpush.bf16.xpose.msra.mxu3 %v1887_v8 }
 0x269   : > { %v1604_v30 = vmul.f32 1.442695, %v1603_v28  ;;  %v2042_v28 = vsel %vm1554_vm3, %v2037_v26, 0 }
 0x26b   : > { %2895 = vpow2.f32 %v1604_v30 }
 0x26e   : > { %v1665_v32 = vpop.xlane.xlu2 %1664 }
 0x26f   : > { %v1666_v33 = vsub.f32 %v1660_v13, %v1665_v32  ;;  %v2009_v13 = vsel %vm1518_vm2, %v2002_v10, 0 }
 0x270   : > { %2018 = vmatpush.bf16.xpose.msrb.mxu3 %v2009_v13  ;;  %v2884_v13 = vld [vmem:[%s3660_s25] ss:$0 sm:$0xff] }
 0x271   : > { %v2896_v35 = vpop.eup %2895  ;;  %v1667_v36 = vmul.f32 1.442695, %v1666_v33 }
 0x272   : > { %v1606_v37 = vsel %vm1518_vm2, %v2896_v35, 0.0 }
 0x273   : > { %2897 = vpow2.f32 %v1667_v36  ;;  %1607 = vadd.xlane.f32.xlu2 %v1606_v37 }
 0x276   : > { %v1728_v40 = vpop.xlane.xlu0 %1727  ;;  %v1546_v41 = vpop.xlane.xlu2 %1545 }
 0x277   : > { %v1729_v44 = vsub.f32 %v1723_v16, %v1728_v40  ;;  %2899 = vrcp.f32 %v1546_v41 }
 0x279   : > { %v2898_v45 = vpop.eup %2897  ;;  %v1730_v46 = vmul.f32 1.442695, %v1729_v44 }
 0x27a   : > { %v1669_v47 = vsel %vm1518_vm2, %v2898_v45, 0.0 }
 0x27b   : > { %2901 = vpow2.f32 %v1730_v46  ;;  %1670 = vadd.xlane.f32.xlu2 %v1669_v47 }
 0x27d   : > { %v2900_v49 = vpop.eup %2899 }
 0x27e   : > { %v1548_v50 = vmul.f32 %v2900_v49, %v2894_v19  ;;  %v1803_v49 = vunpack.c.l.bf16 %v3288_v18 }
 0x280   : > { %v1549_v51 = vpack.c.bf16 %v1548_v50, %v1548_v50 }
 0x281   : > { %v2902_v53 = vpop.eup %2901 }
 0x282   : > { %2680 = vmatmul.msk.bf16.vlgmr.msra.gmra.mxu2 %vm1518_vm2, %v1549_v51  ;;  %v1732_v54 = vsel %vm1518_vm2, %v2902_v53, 0.0 }
 0x283   : > { %1733 = vadd.xlane.f32.xlu2 %v1732_v54  ;;  %1874 = vmatpush.bf16.msra.mxu2 %v2793_v59 }
 0x287   : > { %1875 = vmatpush.bf16.msra.mxu2 %v2792_v62 }
 0x2e6   : > { %v1608_v2 = vpop.xlane.xlu2 %1607 }
 0x2e7   : > { %2903 = vrcp.f32 %v1608_v2 }
 0x2ed   : > { %v2904_v3 = vpop.eup %2903 }
 0x2ee   : > { %v1610_v6 = vmul.f32 %v2904_v3, %v2896_v35  ;;  %v1671_v7 = vpop.xlane.xlu2 %1670 }
 0x2ef   : > { %2905 = vrcp.f32 %v1671_v7 }
 0x2f0   : > { %v1611_v14 = vpack.c.bf16 %v1610_v6, %v1610_v6 }
 0x2f2   : > { %2682 = vmatmul.msk.bf16.vlgmr.msrb.gmra.mxu0 %vm1518_vm2, %v1611_v14 }
 0x2f3   : > { %1928 = vmatpush.bf16.msrb.mxu0 %v1919_v17 }
 0x2f5   : > { %v2906_v19 = vpop.eup %2905 }
 0x2f6   : > { %v1673_v20 = vmul.f32 %v2906_v19, %v2898_v45  ;;  %v1734_v16 = vpop.xlane.xlu2 %1733  ;;  %v2064_v45 = vld [vmem:[#allocation4 + $0xc] sm:$0xf]  ;;  %v2099_v19 = vld [vmem:[#allocation5 + $0xc] sm:$0xf] }
 0x2f7   : > { %2907 = vrcp.f32 %v1734_v16  ;;  %v2071_v47 = vsel %vm1518_vm2, %v2064_v45, 0  ;;  %v2104_v16 = vsel %vm1554_vm3, %v2099_v19, 0 }
 0x2f8   : > { %v1674_v22 = vpack.c.bf16 %v1673_v20, %v1673_v20  ;;  %2909 = vrcp.f32 %v3020_v55 }
 0x2fa   : > { %2684 = vmatmul.msk.bf16.vlgmr.msrb.gmra.mxu2 %vm1518_vm2, %v1674_v22 }
 0x2fb   : > { %1989 = vmatpush.bf16.msrb.mxu2 %v1980_v23 }
 0x2fd   : > { %v2908_v24 = vpop.eup %2907 }
 0x2fe   : > { %v1736_v25 = vmul.f32 %v2908_v24, %v2902_v53  ;;  %v2910_v56 = vpop.eup %2909 }
 0x2ff   : > { %v1811_v57 = vmul.f32 32.0, %v2910_v56  ;;  %vm1815_vm8 = vweird.f32 %v2910_v56 }
 0x300   : > { %v1737_v27 = vpack.c.bf16 %v1736_v25, %v1736_v25 }
 0x301   : > { %v1812_v58 = vsub.f32 1.0, %v1811_v57 }
 0x302   : > { %2686 = vmatmul.msk.bf16.vlgmr.msra.gmra.mxu0 %vm1518_vm2, %v1737_v27 }
 0x303   : > { %2051 = vmatpush.bf16.msra.mxu0 %v2042_v28  ;;  %v1813_v59 = vmul.f32 %v2910_v56, %v1812_v58 }
 0x305   : > { %v1567_v29 = vpop.f32.mrf.mxu2  ;;  %v1814_v60 = vadd.f32 %v2910_v56, %v1813_v59 }
 0x306   : > { %v1571_v30 = vpack.c.bf16 %v1567_v29, %v1567_v29 }
 0x307   : > { %v3492_v61 = vsel %vm1815_vm8, %v2910_v56, %v1814_v60 }
 0x308   : > { %1573 = vst.msk [vmem:[#allocation6] sm:$0xf] %vm897_vm1, %v1571_v30 }
 0x30d   : > { %v1569_v31 = vpop.f32.mrf.mxu2 }
 0x36f   : > { %v1629_v32 = vpop.f32.mrf.mxu0 }
 0x370   : > { %v1633_v33 = vpack.c.bf16 %v1629_v32, %v1629_v32 }
 0x372   : > { %1635 = vrot.lane.b32.xlu2 %v1633_v33, %s3017_s5 }
 0x377   : > { %v1631_v34 = vpop.f32.mrf.mxu0 }
 0x37d   : > { %v1692_v35 = vpop.f32.mrf.mxu2 }
 0x37e   : > { %v1696_v36 = vpack.c.bf16 %v1692_v35, %v1692_v35 }
 0x37f   : > { %v1755_v37 = vpop.f32.mrf.mxu0 }
 0x380   : > { %v1759_v38 = vpack.c.bf16 %v1755_v37, %v1755_v37  ;;  %1698 = vrot.lane.b32.xlu1 %v1696_v36, %s3018_s0 }
 0x382   : > { %1761 = vrot.lane.b32.xlu0 %v1759_v38, %s3683_s4  ;;  %s3734_s4 = sld [smem:[#allocation23_spill]] }
 0x385   : > { %v1694_v39 = vpop.f32.mrf.mxu2 }
 0x387   : > { %v1757_v40 = vpop.f32.mrf.mxu0 }
 0x388   : > { %v1474_v28 = vld [vmem:[%s3734_s4] sm:$0x3]  ;;  %s2753_s4 = sshll.u32 %s3737_s28, 2 }
 0x389   : > { %v1475_v30 = vunpack.c.0.s8 %v1474_v28 }
 0x38b   : > { %v1476_v31 = vcvt.s32.f32 %v1475_v30 }
 0x38d   : > { %vm1477_vm12 = vcmp.eq.f32.partialorder %v1476_v31, 0.0 }
 0x38e   : > { %v1478_v33 = vsel %vm1477_vm12, -1e+09, %v3016_v43 }
 0x3cc   : > { %v1636_v41 = vpop.permute.xlu2 %1635 }
 0x3cd   : > { %1639 = vst.msk [vmem:[#allocation6] sm:$0xf] %vm1638_vm5, %v1636_v41 }
 0x3f2   : > { %v1699_v42 = vpop.permute.xlu1 %1698 }
 0x3f3   : > { %1702 = vst.msk [vmem:[#allocation6] sm:$0xf] %vm1701_vm6, %v1699_v42 }
 0x3f4   : > { %v1762_v44 = vpop.permute.xlu0 %1761 }
 0x3f5   : > { %1765 = vst.msk [vmem:[#allocation6] sm:$0xf] %vm1764_vm7, %v1762_v44 }
 0x3fc   : > { %v1766_v46 = vld [vmem:[#allocation6] sm:$0xf] }
 0x3fd   : > { %2695 = vmatmul.msk.bf16.vlgmr.msra.gmra.mxu1 %vm879_vm0, %v1766_v46 }
 0x3fe   : > { %2080 = vmatpush.bf16.xpose.msra.mxu1 %v2071_v47 }
 0x47a   : > { %v1799_v50 = vpop.f32.mrf.mxu1 }
 0x47b   : > { %v1800_v51 = vadd.f32 %v2882_v48, %v1799_v50 }
 0x47d   : > { %v1804_v52 = vadd.f32 %v1803_v49, %v1800_v51 }
 0x47f   : > { %v1807_v53 = vsel %vm879_vm0, %v1804_v52, 0.0 }
 0x480   : > { %1808 = vadd.xlane.f32.xlu2 %v1807_v53 }
 0x482   : > { %v1801_v54 = vpop.f32.mrf.mxu1 }
 0x4f3   : > { %v1809_v62 = vpop.xlane.xlu2 %1808 }
 0x4f4   : > { %v1817_v18 = vmul.f32 %v3492_v61, %v1809_v62 }
 0x4f6   : > { %v1818_v63 = vsub.f32 %v1804_v52, %v1817_v18 }
 0x4f8   : > { %v1819_v0 = vmul.f32 %v1818_v63, %v1818_v63 }
 0x4fa   : > { %v1820_v1 = vsel %vm879_vm0, %v1819_v0, 0.0 }
 0x4fb   : > { %1821 = vadd.xlane.f32.xlu1 %v1820_v1 }
 0x56e   : > { %v1822_v2 = vpop.xlane.xlu1 %1821 }
 0x56f   : > { %v1823_v3 = vmul.f32 %v1822_v2, %v3492_v61 }
 0x571   : > { %v1824_v4 = vadd.f32 1e-05, %v1823_v3 }
 0x573   : > { %2911 = vrsqrt.f32 %v1824_v4  ;;  %vm1831_vm10 = vweird.f32 %v1824_v4 }
 0x579   : > { %v2912_v5 = vpop.eup %2911 }
 0x57a   : > { %v1826_v6 = vmul.f32 %v2912_v5, %v1824_v4  ;;  %vm1832_vm9 = vweird.f32 %v2912_v5 }
 0x57b   : > { %vm1833_vm11 = vmor %vm1831_vm10, %vm1832_vm9 }
 0x57c   : > { %v1827_v7 = vmul.f32 %v2912_v5, %v1826_v6 }
 0x57e   : > { %v1828_v8 = vmul.f32 0.5, %v1827_v7 }
 0x580   : > { %v1829_v9 = vsub.f32 1.5, %v1828_v8 }
 0x582   : > { %v1830_v10 = vmul.f32 %v2912_v5, %v1829_v9 }
 0x584   : > { %v1834_v12 = vsel %vm1833_vm11, %v2912_v5, %v1830_v10 }
 0x585   : > { %v1835_v14 = vmul.f32 %v1834_v12, %v1818_v63 }
 0x587   : > { %v1839_v15 = vmul.f32 %v2883_v11, %v1835_v14 }
 0x589   : > { %v3503_v17 = vadd.f32 %v2884_v13, %v1839_v15 }
 0x58b   : > { %v1844_v20 = vpack.c.bf16 %v3503_v17, %v3503_v17 }
 0x58d   : > { %2704 = vmatmul.msk.bf16.vlgmr.msra.gmra.mxu2 %vm879_vm0, %v1844_v20 }
 0x58e   : > { %2113 = vmatpush.bf16.msra.mxu2 %v2104_v16 }
 0x610   : > { %v1877_v22 = vpop.f32.mrf.mxu2 }
 0x611   : > { %v1878_v23 = vadd.f32 %v2885_v21, %v1877_v22 }
 0x613   : > { %v1881_v24 = vpack.c.bf16 %v1878_v23, %v1878_v23 }
 0x615   : > { %v1939_v25 = vunpack.c.l.b16 %v1881_v24  ;;  %2705 = vmatmul.msk.bf16.vlgmr.msra.gmra.mxu3 %vm1518_vm2, %v1881_v24 }
 0x617   : > { %v1940_v26 = vpack.c.b16 %v1939_v25, %v1939_v25 }
 0x618   : > { %v1879_v27 = vpop.f32.mrf.mxu2 }
 0x619   : > { %1941 = vrot.lane.b32.xlu0 %v1940_v26, %s3014_s9  ;;  %s3735_s9 = smov 24  }
 0x621   : > { %2003 = vrot.lane.b32.xlu0 %v1940_v26, %s3732_s7 }
 0x629   : > { %2065 = vrot.lane.b32.xlu0 %v1940_v26, %s3733_s3  ;;  %s3736_s3 = sld [smem:[#allocation11_spill]] }
 0x62f   : > { %s833_s27 = sand.u32 1, %s3736_s3   ;;  %s3738_s3 = sld [smem:[#allocation34_spill]] }
 0x630   : > { %s2328_s8 = scalar_lea.sflag [#allocation8], %s833_s27 }
 0x635   : > { %s3739_s2 = smov %s3738_s3  ;;  %s2339_s10 = scalar_lea.hbm %s3738_s3, %s2753_s4 }
 0x636   : > { %s2343_s28 = sshll.u32 %s2339_s10, 4  ;;  %s2344_s28 = int_to_ptr.hbm [resolvable:$true] %s2343_s28 }
 0x637   : > { %s2947_s6 = sshra.s32 %s2344_s28, 4  ;;  %s2948_s6 = int_to_ptr.hbm [resolvable:$true] %s2947_s6 }
 0x638   : > { %s2949_s7 = scalar_lea.hbm %s2948_s6, 4  ;;  %p2954_p1 = scmp.lt.s32.totalorder %s2948_s6, %s3739_s2 }
 0x639   : > { %p2950_p12 = scmp.ne.s32.totalorder %s2948_s6, %s2949_s7 }
 0x63b   : > { %p2951_p13 = pnand %p2950_p12, %p3196_p4 }
 0x63d   : > { %p2952_p0 = pneg %p2951_p13 }
 0x68b   : > { %v1942_v29 = vpop.permute.xlu0 %1941 }
 0x68c   : > { %2707 = vmatmul.msk.bf16.vlgmr.msrb.gmra.mxu1 %vm1518_vm2, %v1942_v29 }
 0x693   : > { %v2004_v32 = vpop.permute.xlu0 %2003 }
 0x694   : > { %2709 = vmatmul.msk.bf16.vlgmr.msrb.gmra.mxu3 %vm1518_vm2, %v2004_v32 }
 0x698   : > { %v1898_v34 = vpop.f32.mrf.mxu3 }
 0x699   : > { %v1899_v35 = vadd.f32 %v1898_v34, %v1478_v33 }
 0x69b   : > { %v2066_v36 = vpop.permute.xlu0 %2065  ;;  %v1902_v37 = vsel %vm1518_vm2, %v1899_v35, -inf }
 0x69c   : > { %2711 = vmatmul.msk.bf16.vlgmr.msra.gmra.mxu1 %vm1518_vm2, %v2066_v36  ;;  %1903 = vmax.xlane.f32.xlu2 %v1902_v37  ;;  %v2795_v37 = vld [vmem:[%s3653_s18 + $0x8] sm:$0xff] }
 0x69d   : > { %2155 = vmatpush.bf16.msra.mxu3 %v2795_v37 }
 0x6a0   : > { %v1900_v38 = vpop.f32.mrf.mxu3 }
 0x6a1   : > { %v2794_v38 = vld [vmem:[%s3653_s18] sm:$0xff] }
 0x6a2   : > { %2156 = vmatpush.bf16.msra.mxu3 %v2794_v38 }
 0x709   : > { %v1958_v39 = vpop.f32.mrf.mxu1 }
 0x70a   : > { %v1959_v40 = vadd.f32 %v1958_v39, %v1478_v33 }
 0x70c   : > { %v1962_v41 = vsel %vm1518_vm2, %v1959_v40, -inf }
 0x70d   : > { %1963 = vmax.xlane.f32.xlu0 %v1962_v41 }
 0x70f   : > { %v1904_v42 = vpop.xlane.xlu2 %1903 }
 0x710   : > { %v1905_v44 = vsub.f32 %v1899_v35, %v1904_v42 }
 0x711   : > { %v1960_v45 = vpop.f32.mrf.mxu1 }
 0x712   : > { %v1906_v46 = vmul.f32 1.442695, %v1905_v44  ;;  %v2886_v44 = vld [vmem:[%s3654_s19] ss:$0 sm:$0xff] }
 0x714   : > { %2913 = vpow2.f32 %v1906_v46 }
 0x717   : > { %v2020_v47 = vpop.f32.mrf.mxu3 }
 0x718   : > { %v2021_v43 = vadd.f32 %v2020_v47, %v1478_v33 }
 0x719   : > { %v2082_v48 = vpop.f32.mrf.mxu1 }
 0x71a   : > { %v2083_v49 = vadd.f32 %v2082_v48, %v1478_v33  ;;  %v2024_v50 = vsel %vm1518_vm2, %v2021_v43, -inf  ;;  %v2914_v52 = vpop.eup %2913 }
 0x71b   : > { %2025 = vmax.xlane.f32.xlu2 %v2024_v50  ;;  %v1908_v55 = vsel %vm1518_vm2, %v2914_v52, 0.0 }
 0x71c   : > { %v2086_v51 = vsel %vm1518_vm2, %v2083_v49, -inf }
 0x71d   : > { %2087 = vmax.xlane.f32.xlu1 %v2086_v51 }
 0x71f   : > { %v2022_v53 = vpop.f32.mrf.mxu3 }
 0x721   : > { %v2084_v54 = vpop.f32.mrf.mxu1 }
 0x722   : > { %v2797_v54 = vld [vmem:[%s3655_s20 + $0x8] sm:$0xff] }
 0x723   : > { %1909 = vadd.xlane.f32.xlu2 %v1908_v55  ;;  %v2801_v55 = vld [vmem:[%s3657_s22 + $0x18] sm:$0xff] }
 0x724   : > { %2280 = vmatpush.bf16.msrb.mxu1 %v2801_v55 }
 0x780   : > { %v1964_v56 = vpop.xlane.xlu0 %1963 }
 0x781   : > { %v1965_v57 = vsub.f32 %v1959_v40, %v1964_v56 }
 0x783   : > { %v1966_v58 = vmul.f32 1.442695, %v1965_v57 }
 0x785   : > { %2915 = vpow2.f32 %v1966_v58  ;;  %v2800_v58 = vld [vmem:[%s3657_s22 + $0x10] sm:$0xff] }
 0x786   : > { %2281 = vmatpush.bf16.msrb.mxu1 %v2800_v58 }
 0x78b   : > { %v2916_v59 = vpop.eup %2915 }
 0x78c   : > { %v1968_v60 = vsel %vm1518_vm2, %v2916_v59, 0.0 }
 0x78d   : > { %1969 = vadd.xlane.f32.xlu1 %v1968_v60  ;;  %v2799_v60 = vld [vmem:[%s3657_s22 + $0x8] sm:$0xff] }
 0x78e   : > { %v2026_v62 = vpop.xlane.xlu2 %2025  ;;  %2282 = vmatpush.bf16.msrb.mxu1 %v2799_v60 }
 0x78f   : > { %v2027_v18 = vsub.f32 %v2021_v43, %v2026_v62 }
 0x790   : > { %v2088_v63 = vpop.xlane.xlu1 %2087 }
 0x791   : > { %v2028_v0 = vmul.f32 1.442695, %v2027_v18  ;;  %v2089_v1 = vsub.f32 %v2083_v49, %v2088_v63 }
 0x793   : > { %2917 = vpow2.f32 %v2028_v0  ;;  %v2090_v2 = vmul.f32 1.442695, %v2089_v1 }
 0x795   : > { %2919 = vpow2.f32 %v2090_v2 }
 0x796   : > { %v1910_v3 = vpop.xlane.xlu2 %1909 }
 0x797   : > { %2921 = vrcp.f32 %v1910_v3  ;;  %v2887_v3 = vld [vmem:[%s3659_s24 + $0x1] ss:$0 sm:$0xff] }
 0x799   : > { %v2918_v4 = vpop.eup %2917 }
 0x79a   : > { %v2030_v5 = vsel %vm1518_vm2, %v2918_v4, 0.0 }
 0x79b   : > { %v2920_v6 = vpop.eup %2919  ;;  %2031 = vadd.xlane.f32.xlu2 %v2030_v5  ;;  %v2888_v5 = vld [vmem:[%s3660_s25 + $0x1] ss:$0 sm:$0xff] }
 0x79c   : > { %v2092_v7 = vsel %vm1518_vm2, %v2920_v6, 0.0 }
 0x79d   : > { %v2922_v8 = vpop.eup %2921  ;;  %2093 = vadd.xlane.f32.xlu1 %v2092_v7 }
 0x79e   : > { %v1912_v9 = vmul.f32 %v2922_v8, %v2914_v52 }
 0x7a0   : > { %v1913_v10 = vpack.c.bf16 %v1912_v9, %v1912_v9 }
 0x7a2   : > { %2706 = vmatmul.msk.bf16.vlgmr.msrb.gmra.mxu0 %vm1518_vm2, %v1913_v10  ;;  %v2798_v10 = vld [vmem:[%s3657_s22] sm:$0xff] }
 0x7a3   : > { %2227 = vmatpush.bf16.msrb.mxu0 %v2797_v54  ;;  %2283 = vmatpush.bf16.msrb.mxu1 %v2798_v10 }
 0x800   : > { %v1970_v11 = vpop.xlane.xlu1 %1969 }
 0x801   : > { %2923 = vrcp.f32 %v1970_v11  ;;  %v2889_v11 = vld [vmem:[%s3656_s21] ss:$0 sm:$0xff] }
 0x807   : > { %v2924_v12 = vpop.eup %2923 }
 0x808   : > { %v1972_v13 = vmul.f32 %v2924_v12, %v2916_v59 }
 0x80a   : > { %v1973_v14 = vpack.c.bf16 %v1972_v13, %v1972_v13 }
 0x80c   : > { %2708 = vmatmul.msk.bf16.vlgmr.msrb.gmra.mxu2 %vm1518_vm2, %v1973_v14 }
 0x80e   : > { %v2032_v15 = vpop.xlane.xlu2 %2031 }
 0x80f   : > { %2925 = vrcp.f32 %v2032_v15 }
 0x810   : > { %v2094_v19 = vpop.xlane.xlu1 %2093 }
 0x811   : > { %2927 = vrcp.f32 %v2094_v19 }
 0x815   : > { %v2926_v20 = vpop.eup %2925 }
 0x816   : > { %v2034_v16 = vmul.f32 %v2926_v20, %v2918_v4  ;;  %v2890_v20 = vld [vmem:[%s3658_s23] ss:$0 sm:$0xff] }
 0x817   : > { %v2928_v21 = vpop.eup %2927 }
 0x818   : > { %v2035_v22 = vpack.c.bf16 %v2034_v16, %v2034_v16  ;;  %v2096_v23 = vmul.f32 %v2928_v21, %v2920_v6 }
 0x81a   : > { %v2097_v24 = vpack.c.bf16 %v2096_v23, %v2096_v23  ;;  %2710 = vmatmul.msk.bf16.vlgmr.msra.gmra.mxu0 %vm1518_vm2, %v2035_v22 }
 0x81c   : > { %2712 = vmatmul.msk.bf16.vlgmr.msra.gmra.mxu2 %vm1518_vm2, %v2097_v24 }
 0x81f   : > { %v1930_v25 = vpop.f32.mrf.mxu0 }
 0x820   : > { %v1934_v26 = vpack.c.bf16 %v1930_v25, %v1930_v25 }
 0x822   : > { %1935 = vst.msk [vmem:[#allocation6] sm:$0xf] %vm897_vm1, %v1934_v26  ;;  %vm2272_vm1 = vcmask 523264  }
 0x827   : > { %v1932_v27 = vpop.f32.mrf.mxu0 }
 0x88f   : > { %v1991_v28 = vpop.f32.mrf.mxu2 }
 0x890   : > { %v1995_v29 = vpack.c.bf16 %v1991_v28, %v1991_v28 }
 0x892   : > { %1997 = vrot.lane.b32.xlu1 %v1995_v29, %s3017_s5 }
 0x897   : > { %v1993_v30 = vpop.f32.mrf.mxu2  ;;  %v2053_v31 = vpop.f32.mrf.mxu0 }
 0x898   : > { %v2057_v32 = vpack.c.bf16 %v2053_v31, %v2053_v31 }
 0x89a   : > { %2059 = vrot.lane.b32.xlu0 %v2057_v32, %s3018_s0 }
 0x89f   : > { %v2055_v33 = vpop.f32.mrf.mxu0  ;;  %v2115_v34 = vpop.f32.mrf.mxu2 }
 0x8a0   : > { %v2119_v35 = vpack.c.bf16 %v2115_v34, %v2115_v34 }
 0x8a2   : > { %2121 = vrot.lane.b32.xlu2 %v2119_v35, %s3735_s9  ;;  %s2463_s9 = sshll.u32 %s833_s27, 2 }
 0x8a3   : > { %s835_s12 = scalar_lea.vmem [#allocation7], %s2463_s9  ;;  %s2953_s9 = scalar_lea.hbm %s3739_s2, 8 }
 0x8a4   : > { %s2341_s13 = sshll.u32 %s835_s12, 4  ;;  %p2955_p2 = scmp.lt.s32.totalorder %s2953_s9, %s2949_s7  ;;  %s2342_s13 = int_to_ptr.vmem [resolvable:$true] %s2341_s13 }
 0x8a6   : > { %p2956_p3 = por %p2955_p2, %p2954_p1 }
 0x8a7   : > { %v2117_v36 = vpop.f32.mrf.mxu2 }
 0x8a8   : > { %p2957_p5 = pnand %p2956_p3, %p2952_p0 }
 0x8fc   : > { %v2122_v41 = vpop.permute.xlu2 %2121 }
 0x904   : > { %v1998_v39 = vpop.permute.xlu1 %1997 }
 0x905   : > { %2000 = vst.msk [vmem:[#allocation6] sm:$0xf] %vm1638_vm5, %v1998_v39  ;;  %v2891_v39 = vld [vmem:[%s3659_s24 + $0x2] ss:$0 sm:$0xff] }
 0x90c   : > { %v2060_v40 = vpop.permute.xlu0 %2059 }
 0x90d   : > { %2062 = vst.msk [vmem:[#allocation6] sm:$0xf] %vm1701_vm6, %v2060_v40 }
 0x90e   : > { %2124 = vst.msk [vmem:[#allocation6] sm:$0xf] %vm1764_vm7, %v2122_v41  ;;  %v2892_v41 = vld [vmem:[%s3660_s25 + $0x2] ss:$0 sm:$0xff] }
 0x915   : > { %v2125_v42 = vld [vmem:[#allocation6] sm:$0xf] }
 0x916   : > { %2721 = vmatmul.msk.bf16.vlgmr.msra.gmra.mxu3 %vm879_vm0, %v2125_v42 }
 0x999   : > { %v2158_v45 = vpop.f32.mrf.mxu3 }
 0x99a   : > { %v2159_v46 = vadd.f32 %v2886_v44, %v2158_v45 }
 0x99c   : > { %v2162_v47 = vadd.f32 %v2159_v46, %v3503_v17  ;;  %v2796_v17 = vld [vmem:[%s3655_s20] sm:$0xff] }
 0x99d   : > { %2228 = vmatpush.bf16.msrb.mxu0 %v2796_v17 }
 0x99e   : > { %v2167_v43 = vsel %vm879_vm0, %v2162_v47, 0.0 }
 0x99f   : > { %2168 = vadd.xlane.f32.xlu0 %v2167_v43 }
 0x9a1   : > { %v2160_v48 = vpop.f32.mrf.mxu3 }
 0xa12   : > { %v2169_v49 = vpop.xlane.xlu0 %2168 }
 0xa13   : > { %v2170_v50 = vmul.f32 %v2169_v49, %v3492_v61 }
 0xa15   : > { %v2171_v51 = vsub.f32 %v2162_v47, %v2170_v50 }
 0xa17   : > { %v2172_v52 = vmul.f32 %v2171_v51, %v2171_v51 }
 0xa19   : > { %v2173_v53 = vsel %vm879_vm0, %v2172_v52, 0.0 }
 0xa1a   : > { %2174 = vadd.xlane.f32.xlu1 %v2173_v53 }
 0xa8d   : > { %v2175_v56 = vpop.xlane.xlu1 %2174 }
 0xa8e   : > { %v2176_v57 = vmul.f32 %v2175_v56, %v3492_v61 }
 0xa90   : > { %v2177_v59 = vadd.f32 1e-05, %v2176_v57 }
 0xa92   : > { %2929 = vrsqrt.f32 %v2177_v59  ;;  %vm2184_vm14 = vweird.f32 %v2177_v59 }
 0xa98   : > { %v2930_v62 = vpop.eup %2929 }
 0xa99   : > { %v2179_v18 = vmul.f32 %v2930_v62, %v2177_v59  ;;  %vm2185_vm13 = vweird.f32 %v2930_v62 }
 0xa9a   : > { %vm2186_vm15 = vmor %vm2184_vm14, %vm2185_vm13 }
 0xa9b   : > { %v2180_v63 = vmul.f32 %v2930_v62, %v2179_v18 }
 0xa9d   : > { %v2181_v0 = vmul.f32 0.5, %v2180_v63 }
 0xa9f   : > { %v2182_v1 = vsub.f32 1.5, %v2181_v0 }
 0xaa1   : > { %v2183_v2 = vmul.f32 %v2930_v62, %v2182_v1 }
 0xaa3   : > { %v2187_v4 = vsel %vm2186_vm15, %v2930_v62, %v2183_v2 }
 0xaa4   : > { %v2188_v6 = vmul.f32 %v2187_v4, %v2171_v51 }
 0xaa6   : > { %v2192_v7 = vmul.f32 %v2887_v3, %v2188_v6 }
 0xaa8   : > { %v2196_v8 = vadd.f32 %v2888_v5, %v2192_v7 }
 0xaaa   : > { %v2197_v9 = vpack.c.bf16 %v2196_v8, %v2196_v8 }
 0xaac   : > { %2732 = vmatmul.msk.bf16.vlgmr.msrb.gmra.mxu0 %vm879_vm0, %v2197_v9 }
 0xb29   : > { %v2230_v12 = vpop.f32.mrf.mxu0 }
 0xb2a   : > { %v2231_v13 = vadd.f32 %v2889_v11, %v2230_v12 }
 0xb2c   : > { %v2234_v14 = vmax.f32 %v2231_v13, 0.0 }
 0xb2e   : > { %v2235_v15 = vpack.c.bf16 %v2234_v14, %v2234_v14 }
 0xb30   : > { %2749 = vmatmul.msk.bf16.vlgmr.msrb.gmra.mxu1 %vm2272_vm1, %v2235_v15 }
 0xb31   : > { %v2232_v19 = vpop.f32.mrf.mxu0 }
 0xbad   : > { %v2285_v16 = vpop.f32.mrf.mxu1 }
 0xbae   : > { %v2286_v21 = vadd.f32 %v2890_v20, %v2285_v16 }
 0xbb0   : > { %v2289_v22 = vadd.f32 %v2286_v21, %v2196_v8 }
 0xbb2   : > { %v2294_v23 = vsel %vm879_vm0, %v2289_v22, 0.0 }
 0xbb3   : > { %2295 = vadd.xlane.f32.xlu2 %v2294_v23 }
 0xbb5   : > { %v2287_v24 = vpop.f32.mrf.mxu1 }
 0xc26   : > { %v2296_v25 = vpop.xlane.xlu2 %2295 }
 0xc27   : > { %v2297_v26 = vmul.f32 %v2296_v25, %v3492_v61 }
 0xc29   : > { %v2298_v27 = vsub.f32 %v2289_v22, %v2297_v26 }
 0xc2b   : > { %v2299_v28 = vmul.f32 %v2298_v27, %v2298_v27 }
 0xc2d   : > { %v2300_v29 = vsel %vm879_vm0, %v2299_v28, 0.0  ;;  %vm2325_vm0 = vcmask 257024  }
 0xc2e   : > { %2301 = vadd.xlane.f32.xlu0 %v2300_v29 }
 0xca1   : > { %v2302_v30 = vpop.xlane.xlu0 %2301 }
 0xca2   : > { %v2303_v31 = vmul.f32 %v2302_v30, %v3492_v61 }
 0xca4   : > { %v2304_v32 = vadd.f32 1e-05, %v2303_v31 }
 0xca6   : > { %2931 = vrsqrt.f32 %v2304_v32  ;;  %vm2311_vm3 = vweird.f32 %v2304_v32 }
 0xcac   : > { %v2932_v33 = vpop.eup %2931 }
 0xcad   : > { %v2306_v34 = vmul.f32 %v2932_v33, %v2304_v32  ;;  %vm2312_vm2 = vweird.f32 %v2932_v33 }
 0xcae   : > { %vm2313_vm4 = vmor %vm2311_vm3, %vm2312_vm2 }
 0xcaf   : > { %v2307_v35 = vmul.f32 %v2932_v33, %v2306_v34 }
 0xcb1   : > { %v2308_v36 = vmul.f32 0.5, %v2307_v35 }
 0xcb3   : > { %v2309_v37 = vsub.f32 1.5, %v2308_v36 }
 0xcb5   : > { %v2310_v38 = vmul.f32 %v2932_v33, %v2309_v37 }
 0xcb7   : > { %v2314_v40 = vsel %vm2313_vm4, %v2932_v33, %v2310_v38 }
 0xcb8   : > { %v2315_v61 = vmul.f32 %v2314_v40, %v2298_v27 }
 0xcba   : > { %v2319_v42 = vmul.f32 %v2891_v39, %v2315_v61 }
 0xcbc   : > { %v2323_v44 = vadd.f32 %v2892_v41, %v2319_v42 }
 0xcbe   : > { %v2324_v45 = vpack.c.bf16 %v2323_v44, %v2323_v44 }
 0xcc0   : > { %2326 = vst.msk [vmem:[%s835_s12] sm:$0xf] %vm2325_vm0, %v2324_v45 }
 0xcc1   : > { %2960 = shalt.err (!%p2957_p5)
}
 0xcc2   : > { %2802 = dma.vmem_to_hbm [thread:$0]  (%p3196_p4), %s2342_s13, 64, %s2344_s28, %s2328_s8  }
 0xcc3 PF: > { %s3741_s12 = sld [smem:[#allocation15_spill]] }
 0xcc4   : > { %s3742_s27 = sld [smem:[#allocation10_spill]] }
 0xcc9   : > { %p2808_p6 = scmp.ge.s32.totalorder %s3741_s12, 2 }
 0xcca   : > { %s2355_s3 = sand.u32 1, %s3742_s27  }
 0xccb   : > { %p2805_p7 = pnand %p2808_p6, %p3203_p8  ;;  %s2356_s1 = scalar_lea.sflag [#allocation8], %s2355_s3 }
 0xccd   : > { %p2806_p9 = pneg %p2805_p7 }
 0xccf   : > { %2986 = dma.done.wait (%p2806_p9), %s2356_s1, 64  }
 0xcd0   : > { %2988 = vsyncadd (%p2806_p9), %s2356_s1, 4294967232  ;;  %s39_s4 = sadd.s32 1, %s3741_s12   ;;  %s3744_s27 = sld [smem:[#allocation11_spill]] }
 0xcd1   : > { %p36_p10 = scmp.ge.s32.totalorder %s39_s4, 4   ;;  %s3745_s3 = sld [smem:[#allocation12_spill]] }
 0xcd2   : > { %s3746_s7 = sld [smem:[#allocation19_spill]] }
 0xcd3   : > { %s3747_s28 = sld [smem:[#allocation14_spill]]  ;;  %38 = sbr.rel (!%p36_p10) target bundleno = 20 (0x14), region = 225 }
 0xcd4   : > { %s3748_s8 = sld [smem:[#allocation16_spill]] }
 0xcd8   :  { %2362 = vsyncpa [#allocation8], 1 }
 0xcd9   :  { %2364 = vsyncpa [#allocation8 + $0x1], 1 }

</bundles_post_ra>
